<compile_context>
chip_gen: v7x
topology: tpu7x:2x2x1
jax: 0.10.0
libtpu: 0.0.40
codegen_flags: <defaults>
</compile_context>

<pallas_src>
import functools

import jax
import jax.numpy as jnp
from jax.experimental import pallas as pl
from jax.experimental.pallas import tpu as pltpu

HIDDEN = 768


def _round_up(x, m):
    return pl.cdiv(x, m) * m


def _effect_enc_kernel(seed_ref,               # SMEM (1,) int32 (scalar prefetch)
                       cls_ref,                # VMEM (TB, H) bf16   CLS activations
                       wp_ref, bp_ref,         # pooler  W:(H,H) bf16, b:(1,H) f32
                       wh_ref, bh_ref,         # fused heads W:(H,2H) bf16, b:(1,2H) f32
                       eff_ref, obj_ref,       # outputs (TB, H)
                       *maybe_hid_ref,         # optional hidden_state output (TB, H) f32
                       drop_rate, training):
    # --- BERT pooler: tanh(Linear(CLS token)) --------------------------------
    pooled = jnp.tanh(
        jnp.dot(cls_ref[...], wp_ref[...], preferred_element_type=jnp.float32)
        + bp_ref[...])                                      # (TB, H) f32

    # --- Dropout (training only; eval = identity, matching nn.Dropout.eval()) -
    if training and drop_rate > 0.0:
        pltpu.prng_seed(seed_ref[0] + pl.program_id(0))     # per-block mask
        bits = pltpu.bitcast(pltpu.prng_random_bits(pooled.shape), jnp.uint32)
        thr = jnp.uint32(min(int(round(drop_rate * 2.0 ** 32)), 2 ** 32 - 1))
        keep = bits >= thr                                  # P(keep) = 1 - drop_rate
        pooled = jnp.where(keep, pooled * (1.0 / (1.0 - drop_rate)), 0.0)

    if maybe_hid_ref:                                       # only when return_hidden=True
        maybe_hid_ref[0][...] = pooled

    # --- Fused effect/object heads: one MXU pass over the (H, 2H) weights -----
    heads = (jnp.dot(pooled.astype(jnp.bfloat16), wh_ref[...],
                     preferred_element_type=jnp.float32)
             + bh_ref[...])                                 # (TB, 2H) f32
    eff_ref[...] = heads[:, :HIDDEN].astype(eff_ref.dtype)  # both slices 128-lane aligned
    obj_ref[...] = heads[:, HIDDEN:].astype(obj_ref.dtype)


def init_params(key, hidden=HIDDEN, dtype=jnp.float32):
    """Deterministic synthetic parameters (shapes match the PyTorch module)."""
    ks = jax.random.split(key, 6)
    scale = 1.0 / jnp.sqrt(hidden)

    def lin(kw, kb):
        # stored as (in, out); equals torch Linear weight (out, in) transposed
        w = jax.random.normal(kw, (hidden, hidden), dtype) * scale
        b = jax.random.normal(kb, (1, hidden), dtype) * 0.01
        return w, b

    wp, bp = lin(ks[0], ks[1])   # BERT pooler dense
    we, be = lin(ks[2], ks[3])   # effect_head
    wo, bo = lin(ks[4], ks[5])   # object_head
    return dict(wp=wp, bp=bp, we=we, be=be, wo=wo, bo=bo)


def prepare_params(params):
    """One-time weight prep (hoisted out of the forward): bf16 casts + fusion of the
    effect/object head weights into a single (768, 1536) matrix."""
    return dict(
        wp=params["wp"].astype(jnp.bfloat16),
        bp=params["bp"].astype(jnp.float32).reshape(1, HIDDEN),
        wh=jnp.concatenate([params["we"], params["wo"]], axis=1).astype(jnp.bfloat16),
        bh=jnp.concatenate([params["be"], params["bo"]], axis=1)
            .astype(jnp.float32).reshape(1, 2 * HIDDEN),
    )


def effect_enc_forward(last_hidden_state, params, *, hidden_drop_rate=0.1,
                       training=False, seed=0, return_hidden=False,
                       out_dtype=jnp.float32, block_b=512):
    B, S, H = last_hidden_state.shape
    assert H == HIDDEN

    if "wh" not in params:                       # accept raw params too (re-prepares)
        params = prepare_params(params)
    wp, bp, wh, bh = params["wp"], params["bp"], params["wh"], params["bh"]

    # Slice the CLS token in the wrapper: only (B, H) ever crosses HBM->VMEM.
    cls = last_hidden_state[:, 0, :].astype(jnp.bfloat16)

    # Batch tile: multiple of 8 sublanes, capped at block_b.
    tb = min(block_b, _round_up(B, 8))
    # Guarantee >=2 parallel grid blocks when B allows (v7x has 2 TensorCores).
    if tb > 8 and _round_up(B, tb) // tb < 2:
        tb = max(8, _round_up(pl.cdiv(B, 2), 8))
    b_pad = _round_up(B, tb)
    if b_pad != B:
        cls = jnp.pad(cls, ((0, b_pad - B), (0, 0)))
    nb = b_pad // tb

    seed_arr = jnp.array([seed], dtype=jnp.int32)
    kernel = functools.partial(_effect_enc_kernel,
                               drop_rate=float(hidden_drop_rate),
                               training=bool(training))

    # Weights/biases have a constant index_map and are DMA'd once -> single buffer.
    resident = dict(pipeline_mode=pl.Buffered(buffer_count=1))
    in_specs = [
        pl.BlockSpec((tb, H), lambda i, seed: (i, 0)),                  # cls (tiled over B)
        pl.BlockSpec((H, H), lambda i, seed: (0, 0), **resident),       # pooler W
        pl.BlockSpec((1, H), lambda i, seed: (0, 0), **resident),       # pooler b
        pl.BlockSpec((H, 2 * H), lambda i, seed: (0, 0), **resident),   # fused head W
        pl.BlockSpec((1, 2 * H), lambda i, seed: (0, 0), **resident),   # fused head b
    ]
    out_specs = [pl.BlockSpec((tb, H), lambda i, seed: (i, 0)),         # effect_embed
                 pl.BlockSpec((tb, H), lambda i, seed: (i, 0))]         # obj_embed
    out_shapes = [jax.ShapeDtypeStruct((b_pad, H), out_dtype),
                  jax.ShapeDtypeStruct((b_pad, H), out_dtype)]
    if return_hidden:                            # pay the 3rd output DMA only when asked
        out_specs.append(pl.BlockSpec((tb, H), lambda i, seed: (i, 0)))
        out_shapes.append(jax.ShapeDtypeStruct((b_pad, H), jnp.float32))

    grid_spec = pltpu.PrefetchScalarGridSpec(
        num_scalar_prefetch=1,
        grid=(nb,),
        in_specs=in_specs,
        out_specs=tuple(out_specs))

    outs = pl.pallas_call(
        kernel,
        out_shape=tuple(out_shapes),
        grid_spec=grid_spec,
        compiler_params=pltpu.CompilerParams(
            dimension_semantics=("parallel",),
            vmem_limit_bytes=32 * 1024 * 1024),
    )(seed_arr, cls, wp, bp, wh, bh)

    return tuple(o[:B] for o in outs)


if __name__ == "__main__":
    import numpy as np

    key = jax.random.PRNGKey(0)
    k_param, k_x = jax.random.split(key)

    B, S = 2, 8                      # small batch / sequence length
    params = init_params(k_param)
    prepared = prepare_params(params)            # one-time weight prep (outside forward)
    # synthetic stand-in for BERT encoder output (last_hidden_state)
    last_hidden_state = jax.random.normal(k_x, (B, S, HIDDEN), jnp.float32)

    # 3-output variant (return_hidden=True)
    effect_embed, obj_embed, hidden = effect_enc_forward(
        last_hidden_state, prepared, hidden_drop_rate=0.1,
        training=False, return_hidden=True)
    # 2-output variant (return_hidden=False): no hidden_state writeback
    effect2, obj2 = effect_enc_forward(
        last_hidden_state, prepared, hidden_drop_rate=0.1, training=False)

    jax.block_until_ready((effect_embed, obj_embed, hidden, effect2, obj2))
    assert effect_embed.shape == (B, HIDDEN)
    assert obj_embed.shape == (B, HIDDEN)
    assert hidden.shape == (B, HIDDEN)

    # Pure-JAX f32 reference (eval mode); kernel uses bf16 weights -> loose tolerance.
    cls_f32 = last_hidden_state[:, 0, :]
    pooled_ref = jnp.tanh(cls_f32 @ params["wp"] + params["bp"])
    eff_ref = pooled_ref @ params["we"] + params["be"]
    obj_ref = pooled_ref @ params["wo"] + params["bo"]
    np.testing.assert_allclose(np.asarray(hidden), np.asarray(pooled_ref),
                               atol=5e-2, rtol=5e-2)
    np.testing.assert_allclose(np.asarray(effect_embed), np.asarray(eff_ref),
                               atol=1e-1, rtol=1e-1)
    np.testing.assert_allclose(np.asarray(obj_embed), np.asarray(obj_ref),
                               atol=1e-1, rtol=1e-1)
    np.testing.assert_allclose(np.asarray(effect2), np.asarray(effect_embed), atol=1e-5)
    np.testing.assert_allclose(np.asarray(obj2), np.asarray(obj_embed), atol=1e-5)

    print("KERNEL_OK")
</pallas_src>

<mosaic_0001>
module attributes {stable_mosaic.version = 11 : i64} {
  func.func @_effect_enc_kernel(%arg0: i32, %arg1: memref<1xi32, #tpu.memory_space<smem>>, %arg2: memref<8x768xbf16, #tpu.memory_space<vmem>>, %arg3: memref<768x768xbf16, #tpu.memory_space<vmem>>, %arg4: memref<1x768xf32, #tpu.memory_space<vmem>>, %arg5: memref<768x1536xbf16, #tpu.memory_space<vmem>>, %arg6: memref<1x1536xf32, #tpu.memory_space<vmem>>, %arg7: memref<8x768xf32, #tpu.memory_space<vmem>>, %arg8: memref<8x768xf32, #tpu.memory_space<vmem>>, %arg9: memref<8x768xf32, #tpu.memory_space<vmem>>) attributes {dimension_semantics = [#tpu.dimension_semantics<parallel>], iteration_bounds = array<i64: 1>, scalar_prefetch = 1 : i64, scratch_operands = 0 : i64, tpu.core_type = #tpu.core_type<tc>, window_params = [{transform_indices = @transform_0, window_bounds = array<i64: 8, 768>}, {pipeline_mode = #tpu.pipeline_mode<synchronous>, transform_indices = @transform_1, window_bounds = array<i64: 768, 768>}, {pipeline_mode = #tpu.pipeline_mode<synchronous>, transform_indices = @transform_2, window_bounds = array<i64: 1, 768>}, {pipeline_mode = #tpu.pipeline_mode<synchronous>, transform_indices = @transform_3, window_bounds = array<i64: 768, 1536>}, {pipeline_mode = #tpu.pipeline_mode<synchronous>, transform_indices = @transform_4, window_bounds = array<i64: 1, 1536>}, {transform_indices = @transform_5, window_bounds = array<i64: 8, 768>}, {transform_indices = @transform_6, window_bounds = array<i64: 8, 768>}, {transform_indices = @transform_7, window_bounds = array<i64: 8, 768>}]} {
    %c0 = arith.constant 0 : index
    %c0_0 = arith.constant 0 : index
    %0 = vector.load %arg2[%c0, %c0_0] : memref<8x768xbf16, #tpu.memory_space<vmem>>, vector<8x768xbf16>
    %c0_1 = arith.constant 0 : index
    %c0_2 = arith.constant 0 : index
    %1 = vector.load %arg3[%c0_1, %c0_2] : memref<768x768xbf16, #tpu.memory_space<vmem>>, vector<768x768xbf16>
    %cst = arith.constant dense<0.000000e+00> : vector<8x768xf32>
    %2 = tpu.matmul %0, %1, %cst {dimension_numbers = #tpu.dot_dimension_numbers<[1], [0], [0], [1], [0, 0, 1, 1], [], []>} : vector<8x768xbf16>, vector<768x768xbf16>, vector<8x768xf32> -> vector<8x768xf32>
    %c0_3 = arith.constant 0 : index
    %c0_4 = arith.constant 0 : index
    %3 = vector.load %arg4[%c0_3, %c0_4] : memref<1x768xf32, #tpu.memory_space<vmem>>, vector<1x768xf32>
    %4 = vector.broadcast %3 : vector<1x768xf32> to vector<8x768xf32>
    %5 = arith.addf %2, %4 : vector<8x768xf32>
    %6 = math.tanh %5 : vector<8x768xf32>
    %c0_5 = arith.constant 0 : index
    %c0_6 = arith.constant 0 : index
    %7 = vector.load %arg9[%c0_5, %c0_6] : memref<8x768xf32, #tpu.memory_space<vmem>>, vector<8x768xf32>
    tpu.vector_store %arg9[%c0_5, %c0_6], %6 {strides = array<i32>} : memref<8x768xf32, #tpu.memory_space<vmem>>, vector<8x768xf32>,
    %8 = arith.truncf %6 : vector<8x768xf32> to vector<8x768xbf16>
    %c0_7 = arith.constant 0 : index
    %c0_8 = arith.constant 0 : index
    %9 = vector.load %arg5[%c0_7, %c0_8] : memref<768x1536xbf16, #tpu.memory_space<vmem>>, vector<768x1536xbf16>
    %cst_9 = arith.constant dense<0.000000e+00> : vector<8x1536xf32>
    %10 = tpu.matmul %8, %9, %cst_9 {dimension_numbers = #tpu.dot_dimension_numbers<[1], [0], [0], [1], [0, 0, 1, 1], [], []>} : vector<8x768xbf16>, vector<768x1536xbf16>, vector<8x1536xf32> -> vector<8x1536xf32>
    %c0_10 = arith.constant 0 : index
    %c0_11 = arith.constant 0 : index
    %11 = vector.load %arg6[%c0_10, %c0_11] : memref<1x1536xf32, #tpu.memory_space<vmem>>, vector<1x1536xf32>
    %12 = vector.broadcast %11 : vector<1x1536xf32> to vector<8x1536xf32>
    %13 = arith.addf %10, %12 : vector<8x1536xf32>
    %14 = vector.extract_strided_slice %13 {offsets = [0, 0], sizes = [8, 768], strides = [1, 1]} : vector<8x1536xf32> to vector<8x768xf32>
    %c0_12 = arith.constant 0 : index
    %c0_13 = arith.constant 0 : index
    %15 = vector.load %arg7[%c0_12, %c0_13] : memref<8x768xf32, #tpu.memory_space<vmem>>, vector<8x768xf32>
    tpu.vector_store %arg7[%c0_12, %c0_13], %14 {strides = array<i32>} : memref<8x768xf32, #tpu.memory_space<vmem>>, vector<8x768xf32>,
    %16 = vector.extract_strided_slice %13 {offsets = [0, 768], sizes = [8, 768], strides = [1, 1]} : vector<8x1536xf32> to vector<8x768xf32>
    %c0_14 = arith.constant 0 : index
    %c0_15 = arith.constant 0 : index
    %17 = vector.load %arg8[%c0_14, %c0_15] : memref<8x768xf32, #tpu.memory_space<vmem>>, vector<8x768xf32>
    tpu.vector_store %arg8[%c0_14, %c0_15], %16 {strides = array<i32>} : memref<8x768xf32, #tpu.memory_space<vmem>>, vector<8x768xf32>,
    return
  }
  func.func @transform_0(%arg0: i32, %arg1: memref<1xi32, #tpu.memory_space<smem>>) -> (i32, i32) {
    %c0_i32 = arith.constant 0 : i32
    %c0_i32_0 = arith.constant 0 : i32
    return %arg0, %c0_i32 : i32, i32
  }
  func.func @transform_1(%arg0: i32, %arg1: memref<1xi32, #tpu.memory_space<smem>>) -> (i32, i32) {
    %c0_i32 = arith.constant 0 : i32
    %c0_i32_0 = arith.constant 0 : i32
    %c0_i32_1 = arith.constant 0 : i32
    return %c0_i32, %c0_i32_0 : i32, i32
  }
  func.func @transform_2(%arg0: i32, %arg1: memref<1xi32, #tpu.memory_space<smem>>) -> (i32, i32) {
    %c0_i32 = arith.constant 0 : i32
    %c0_i32_0 = arith.constant 0 : i32
    %c0_i32_1 = arith.constant 0 : i32
    return %c0_i32, %c0_i32_0 : i32, i32
  }
  func.func @transform_3(%arg0: i32, %arg1: memref<1xi32, #tpu.memory_space<smem>>) -> (i32, i32) {
    %c0_i32 = arith.constant 0 : i32
    %c0_i32_0 = arith.constant 0 : i32
    %c0_i32_1 = arith.constant 0 : i32
    return %c0_i32, %c0_i32_0 : i32, i32
  }
  func.func @transform_4(%arg0: i32, %arg1: memref<1xi32, #tpu.memory_space<smem>>) -> (i32, i32) {
    %c0_i32 = arith.constant 0 : i32
    %c0_i32_0 = arith.constant 0 : i32
    %c0_i32_1 = arith.constant 0 : i32
    return %c0_i32, %c0_i32_0 : i32, i32
  }
  func.func @transform_5(%arg0: i32, %arg1: memref<1xi32, #tpu.memory_space<smem>>) -> (i32, i32) {
    %c0_i32 = arith.constant 0 : i32
    %c0_i32_0 = arith.constant 0 : i32
    return %arg0, %c0_i32 : i32, i32
  }
  func.func @transform_6(%arg0: i32, %arg1: memref<1xi32, #tpu.memory_space<smem>>) -> (i32, i32) {
    %c0_i32 = arith.constant 0 : i32
    %c0_i32_0 = arith.constant 0 : i32
    return %arg0, %c0_i32 : i32, i32
  }
  func.func @transform_7(%arg0: i32, %arg1: memref<1xi32, #tpu.memory_space<smem>>) -> (i32, i32) {
    %c0_i32 = arith.constant 0 : i32
    %c0_i32_0 = arith.constant 0 : i32
    return %arg0, %c0_i32 : i32, i32
  }
}

</mosaic_0001>

<bundles_post_ra>
// kernel: tpu_custom_call.1
= control target key start
LH: loop header
LB: loop body
LE: loop exit
PB: predicated region body
PF: predicated region fallthrough
CT: control target
= control target key end

     0   :  { %15 = vsyncpa [#allocation5], 0  ;;  %s9342_s0 = inlined_call_operand.<no memory space> [shape: s32[1], index: 0, kind: input, shape index: {}]   ;;  %s9343_s1 = inlined_call_operand.hbm [shape: bf16[8,768], index: 1, kind: input, shape index: {}]   ;;  %s9344_s2 = inlined_call_operand.hbm [shape: bf16[768,768], index: 2, kind: input, shape index: {}]   ;;  %s9345_s3 = inlined_call_operand.hbm [shape: f32[1,768], index: 3, kind: input, shape index: {}]   ;;  %s9346_s4 = inlined_call_operand.hbm [shape: bf16[768,1536], index: 4, kind: input, shape index: {}]   ;;  %s9347_s5 = inlined_call_operand.hbm [shape: f32[1,1536], index: 5, kind: input, shape index: {}]   ;;  %s9348_s6 = inlined_call_operand.hbm [shape: f32[8,768], index: 6, kind: output, shape index: {0}]   ;;  %s9349_s7 = inlined_call_operand.hbm [shape: f32[8,768], index: 7, kind: output, shape index: {1}]   ;;  %s9350_s8 = inlined_call_operand.hbm [shape: f32[8,768], index: 8, kind: output, shape index: {2}]  }
   0x1   :  { %16 = vsyncpa [#allocation8], 0 }
   0x2   :  { %17 = vsyncpa [#allocation11], 0 }
   0x3   :  { %18 = vsyncpa [#allocation6], 0 }
   0x4   :  { %19 = vsyncpa [#allocation15], 0  ;;  %s9045_s26 = smov [#allocation7]   ;;  %s8859_s30 = scalar_lea.hbm %s9344_s2, 36864 }
   0x5   :  { %s35_s27 = sshll.u32 %s9045_s26, 4  ;;  %p8860_p0 = scmp.ne.s32.totalorder %s9344_s2, %s8859_s30  ;;  %s36_s27 = int_to_ptr.vmem [resolvable:$true] %s35_s27 }
   0x6   :  { %p8863_p1 = scmp.lt.u32.totalorder %s8859_s30, %s9344_s2 }
   0x8   :  { %p8865_p2 = pnand %p8863_p1, %p8860_p0 }
   0xa   :  { %8868 = shalt.err (!%p8865_p2)
}
   0xb   :  { %s8869_s13 = scalar_lea.vmem %s36_s27, 36864  ;;  %p8874_p4 = scmp.lt.s32.totalorder %s36_s27, %s36_s27 }
   0xc   :  { %p8870_p3 = scmp.ne.s32.totalorder %s36_s27, %s8869_s13  ;;  %p8875_p5 = scmp.lt.s32.totalorder %s8869_s13, %s8869_s13 }
   0xe   :  { %p8876_p6 = por %p8875_p5, %p8874_p4 }
  0x10   :  { %p8877_p7 = pnand %p8876_p6, %p8870_p3 }
  0x12   :  { %8880 = shalt.err (!%p8877_p7)
}
  0x13   :  { %s9046_s14 = smov 384   ;;  %s9047_s15 = smov 24  }
  0x14   :  { %41 = dma.hbm_to_vmem [thread:$0]  %s9344_s2, 36864, %s36_s27, [#allocation8], %s9046_s14, %s9046_s14, %s9047_s15  }
  0x15   :  { %s9048_s18 = smov [#allocation10]   ;;  %s8881_s22 = scalar_lea.hbm %s9346_s4, 73728 }
  0x16   :  { %s57_s19 = sshll.u32 %s9048_s18, 4  ;;  %p8882_p8 = scmp.ne.s32.totalorder %s9346_s4, %s8881_s22  ;;  %s58_s19 = int_to_ptr.vmem [resolvable:$true] %s57_s19 }
  0x17   :  { %p8885_p9 = scmp.lt.u32.totalorder %s8881_s22, %s9346_s4 }
  0x19   :  { %p8887_p10 = pnand %p8885_p9, %p8882_p8 }
  0x1b   :  { %8890 = shalt.err (!%p8887_p10)
}
  0x1c   :  { %s8891_s26 = scalar_lea.vmem %s58_s19, 73728  ;;  %p8896_p12 = scmp.lt.s32.totalorder %s58_s19, %s58_s19 }
  0x1d   :  { %p8892_p11 = scmp.ne.s32.totalorder %s58_s19, %s8891_s26  ;;  %p8897_p13 = scmp.lt.s32.totalorder %s8891_s26, %s8891_s26 }
  0x1f   :  { %p8898_p0 = por %p8897_p13, %p8896_p12 }
  0x21   :  { %p8899_p1 = pnand %p8898_p0, %p8892_p11 }
  0x23   :  { %8902 = shalt.err (!%p8899_p1)
}
  0x24   :  { %s9049_s2 = smov 768   ;;  %s9050_s27 = smov 48  }
  0x25   :  { %63 = dma.hbm_to_vmem [thread:$0]  %s9346_s4, 73728, %s58_s19, [#allocation11], %s9049_s2, %s9049_s2, %s9050_s27  }
  0x26   :  { %s9051_s30 = smov [#allocation4]   ;;  %s9052_s10 = smov [#allocation9]  }
  0x27   :  { %s26_s9 = sshll.u32 %s9051_s30, 4  ;;  %s48_s11 = sshll.u32 %s9052_s10, 4  ;;  %s27_s9 = int_to_ptr.vmem [resolvable:$true] %s26_s9  ;;  %s49_s11 = int_to_ptr.vmem [resolvable:$true] %s48_s11 }
  0x28   :  { %s8903_s14 = scalar_lea.hbm %s9343_s1, 384 }
  0x29   :  { %p8904_p2 = scmp.ne.s32.totalorder %s9343_s1, %s8903_s14  ;;  %p8907_p3 = scmp.lt.u32.totalorder %s8903_s14, %s9343_s1 }
  0x2b   :  { %p8909_p4 = pnand %p8907_p3, %p8904_p2 }
  0x2d   :  { %8912 = shalt.err (!%p8909_p4)
}
  0x2e   :  { %s8913_s4 = scalar_lea.vmem %s27_s9, 384  ;;  %p8918_p6 = scmp.lt.s32.totalorder %s27_s9, %s27_s9 }
  0x2f   :  { %p8914_p5 = scmp.ne.s32.totalorder %s27_s9, %s8913_s4  ;;  %p8919_p7 = scmp.lt.s32.totalorder %s8913_s4, %s8913_s4 }
  0x31   :  { %p8920_p8 = por %p8919_p7, %p8918_p6 }
  0x33   :  { %p8921_p9 = pnand %p8920_p8, %p8914_p5 }
  0x35   :  { %8924 = shalt.err (!%p8921_p9)
}
  0x36   :  { %29 = dma.hbm_to_vmem [thread:$0]  %s9343_s1, 384, %s27_s9, [#allocation5]  }
  0x37   :  { %s8925_s23 = scalar_lea.hbm %s9345_s3, 96 }
  0x38   :  { %p8926_p10 = scmp.ne.s32.totalorder %s9345_s3, %s8925_s23  ;;  %p8929_p11 = scmp.lt.u32.totalorder %s8925_s23, %s9345_s3 }
  0x3a   :  { %p8931_p12 = pnand %p8929_p11, %p8926_p10 }
  0x3c   :  { %8934 = shalt.err (!%p8931_p12)
}
  0x3d   :  { %s8935_s2 = scalar_lea.vmem %s49_s11, 96  ;;  %p8940_p0 = scmp.lt.s32.totalorder %s49_s11, %s49_s11 }
  0x3e   :  { %p8936_p13 = scmp.ne.s32.totalorder %s49_s11, %s8935_s2  ;;  %p8941_p1 = scmp.lt.s32.totalorder %s8935_s2, %s8935_s2 }
  0x40   :  { %p8942_p2 = por %p8941_p1, %p8940_p0 }
  0x42   :  { %p8943_p3 = pnand %p8942_p2, %p8936_p13 }
  0x44   :  { %8946 = shalt.err (!%p8943_p3)
}
  0x45   :  { %51 = dma.hbm_to_vmem [thread:$0]  %s9345_s3, 96, %s49_s11, [#allocation8]  }
  0x46   :  { %s9053_s28 = smov [#allocation12]   ;;  %s8947_s10 = scalar_lea.hbm %s9347_s5, 192 }
  0x47   :  { %s70_s29 = sshll.u32 %s9053_s28, 4  ;;  %p8948_p4 = scmp.ne.s32.totalorder %s9347_s5, %s8947_s10  ;;  %s71_s29 = int_to_ptr.vmem [resolvable:$true] %s70_s29 }
  0x48   :  { %p8951_p5 = scmp.lt.u32.totalorder %s8947_s10, %s9347_s5 }
  0x4a   :  { %p8953_p6 = pnand %p8951_p5, %p8948_p4 }
  0x4c   :  { %8956 = shalt.err (!%p8953_p6)
}
  0x4d   :  { %s8957_s16 = scalar_lea.vmem %s71_s29, 192  ;;  %p8962_p8 = scmp.lt.s32.totalorder %s71_s29, %s71_s29 }
  0x4e   :  { %p8958_p7 = scmp.ne.s32.totalorder %s71_s29, %s8957_s16  ;;  %p8963_p9 = scmp.lt.s32.totalorder %s8957_s16, %s8957_s16 }
  0x50   :  { %p8964_p10 = por %p8963_p9, %p8962_p8 }
  0x52   :  { %p8965_p11 = pnand %p8964_p10, %p8958_p7 }
  0x54   :  { %8968 = shalt.err (!%p8965_p11)
}
  0x55   :  { %73 = dma.hbm_to_vmem [thread:$0]  %s9347_s5, 192, %s71_s29, [#allocation11]  }
  0x56   :  { %9035 = dma.done.wait [#allocation5], 384  }
  0x57   :  { %9036 = vsyncadd [#allocation5], 4294966912 }
  0x58   :  { %9037 = dma.done.wait [#allocation8], 36960  }
  0x59   :  { %9038 = vsyncadd [#allocation8], 4294930336 }
  0x5a   :  { %9039 = dma.done.wait [#allocation11], 73920  }
  0x5b   :  { %9040 = vsyncadd [#allocation11], 4294893376  ;;  %v7544_v0 = vld [vmem:[#allocation7 + $0x4] ss:$24 sps:$4 sm:$0xff]   ;;  %v7548_v2 = vld [vmem:[#allocation7] ss:$24 sps:$4 sm:$0xff]  }
  0x5c   :  { %v7546_v1 = vld [vmem:[#allocation7 + $0x304] ss:$24 sps:$4 sm:$0xff]   ;;  %1873 = vmatprep.subr.bf16.mxu1 %v7544_v0  ;;  %v7549_v3 = vld [vmem:[#allocation7 + $0x300] ss:$24 sps:$4 sm:$0xff]   ;;  %v7550_v4 = vld [vmem:[#allocation7 + $0x34] ss:$24 sps:$4 sm:$0xff]  }
  0x5d   :  { %1914 = vmatprep.subr.bf16.mxu0 %v7546_v1  ;;  %1874 = vmatpush1.bf16.msra.mxu1 %v7548_v2  ;;  %v7552_v5 = vld [vmem:[#allocation7 + $0x334] ss:$24 sps:$4 sm:$0xff]   ;;  %v7554_v6 = vld [vmem:[#allocation7 + $0x30] ss:$24 sps:$4 sm:$0xff]   ;;  %v7556_v8 = vld [vmem:[#allocation7 + $0x64] ss:$24 sps:$4 sm:$0xff]  }
  0x5e   :  { %1915 = vmatpush1.bf16.msra.mxu0 %v7549_v3  ;;  %1875 = vmatprep.subr.bf16.mxu1 %v7550_v4  ;;  %v7555_v7 = vld [vmem:[#allocation7 + $0x330] ss:$24 sps:$4 sm:$0xff]   ;;  %v7558_v9 = vld [vmem:[#allocation7 + $0x364] ss:$24 sps:$4 sm:$0xff]   ;;  %v7560_v10 = vld [vmem:[#allocation7 + $0x60] ss:$24 sps:$4 sm:$0xff]  }
  0x5f   :  { %1916 = vmatprep.subr.bf16.mxu0 %v7552_v5  ;;  %v7561_v11 = vld [vmem:[#allocation7 + $0x360] ss:$24 sps:$4 sm:$0xff]   ;;  %v7562_v12 = vld [vmem:[#allocation7 + $0x94] ss:$24 sps:$4 sm:$0xff]   ;;  %v7566_v14 = vld [vmem:[#allocation7 + $0x90] ss:$24 sps:$4 sm:$0xff]  }
  0x60   :  { %v7564_v13 = vld [vmem:[#allocation7 + $0x394] ss:$24 sps:$4 sm:$0xff]   ;;  %v7567_v15 = vld [vmem:[#allocation7 + $0x390] ss:$24 sps:$4 sm:$0xff]   ;;  %v7568_v16 = vld [vmem:[#allocation7 + $0xc4] ss:$24 sps:$4 sm:$0xff]  }
  0x61   :  { %1876 = vmatpush1.bf16.msra.mxu1 %v7554_v6  ;;  %v7570_v17 = vld [vmem:[#allocation7 + $0x3c4] ss:$24 sps:$4 sm:$0xff]   ;;  %v7572_v18 = vld [vmem:[#allocation7 + $0xc0] ss:$24 sps:$4 sm:$0xff]   ;;  %v7574_v20 = vld [vmem:[#allocation7 + $0xf4] ss:$24 sps:$4 sm:$0xff]  }
  0x62   :  { %1917 = vmatpush1.bf16.msra.mxu0 %v7555_v7  ;;  %1877 = vmatprep.subr.bf16.mxu1 %v7556_v8  ;;  %v7573_v19 = vld [vmem:[#allocation7 + $0x3c0] ss:$24 sps:$4 sm:$0xff]   ;;  %v7576_v21 = vld [vmem:[#allocation7 + $0x3f4] ss:$24 sps:$4 sm:$0xff]   ;;  %v7578_v22 = vld [vmem:[#allocation7 + $0xf0] ss:$24 sps:$4 sm:$0xff]  }
  0x63   :  { %1918 = vmatprep.subr.bf16.mxu0 %v7558_v9  ;;  %v7579_v23 = vld [vmem:[#allocation7 + $0x3f0] ss:$24 sps:$4 sm:$0xff]   ;;  %v7580_v24 = vld [vmem:[#allocation7 + $0x124] ss:$24 sps:$4 sm:$0xff]   ;;  %v7584_v26 = vld [vmem:[#allocation7 + $0x120] ss:$24 sps:$4 sm:$0xff]  }
  0x64   :  { %v7582_v25 = vld [vmem:[#allocation7 + $0x424] ss:$24 sps:$4 sm:$0xff]   ;;  %v7585_v27 = vld [vmem:[#allocation7 + $0x420] ss:$24 sps:$4 sm:$0xff]   ;;  %v7586_v28 = vld [vmem:[#allocation7 + $0x154] ss:$24 sps:$4 sm:$0xff]  }
  0x65   :  { %1878 = vmatpush1.bf16.msra.mxu1 %v7560_v10  ;;  %v7588_v29 = vld [vmem:[#allocation7 + $0x454] ss:$24 sps:$4 sm:$0xff]   ;;  %v7590_v30 = vld [vmem:[#allocation7 + $0x150] ss:$24 sps:$4 sm:$0xff]   ;;  %v7592_v32 = vld [vmem:[#allocation7 + $0x184] ss:$24 sps:$4 sm:$0xff]  }
  0x66   :  { %1919 = vmatpush1.bf16.msra.mxu0 %v7561_v11  ;;  %1879 = vmatprep.subr.bf16.mxu1 %v7562_v12  ;;  %v7591_v31 = vld [vmem:[#allocation7 + $0x450] ss:$24 sps:$4 sm:$0xff]   ;;  %v7594_v33 = vld [vmem:[#allocation7 + $0x484] ss:$24 sps:$4 sm:$0xff]   ;;  %v7596_v34 = vld [vmem:[#allocation7 + $0x180] ss:$24 sps:$4 sm:$0xff]  }
  0x67   :  { %1920 = vmatprep.subr.bf16.mxu0 %v7564_v13  ;;  %v7597_v35 = vld [vmem:[#allocation7 + $0x480] ss:$24 sps:$4 sm:$0xff]   ;;  %v7598_v36 = vld [vmem:[#allocation7 + $0x1b4] ss:$24 sps:$4 sm:$0xff]   ;;  %v7602_v38 = vld [vmem:[#allocation7 + $0x1b0] ss:$24 sps:$4 sm:$0xff]  }
  0x68   :  { %v7600_v37 = vld [vmem:[#allocation7 + $0x4b4] ss:$24 sps:$4 sm:$0xff]   ;;  %v7603_v39 = vld [vmem:[#allocation7 + $0x4b0] ss:$24 sps:$4 sm:$0xff]   ;;  %v7604_v40 = vld [vmem:[#allocation7 + $0x1e4] ss:$24 sps:$4 sm:$0xff]  }
  0x69   :  { %1880 = vmatpush1.bf16.msra.mxu1 %v7566_v14  ;;  %v7606_v41 = vld [vmem:[#allocation7 + $0x4e4] ss:$24 sps:$4 sm:$0xff]   ;;  %v7608_v42 = vld [vmem:[#allocation7 + $0x1e0] ss:$24 sps:$4 sm:$0xff]   ;;  %v7610_v44 = vld [vmem:[#allocation7 + $0x214] ss:$24 sps:$4 sm:$0xff]  }
  0x6a   :  { %1921 = vmatpush1.bf16.msra.mxu0 %v7567_v15  ;;  %1881 = vmatprep.subr.bf16.mxu1 %v7568_v16  ;;  %v7609_v43 = vld [vmem:[#allocation7 + $0x4e0] ss:$24 sps:$4 sm:$0xff]   ;;  %v7612_v45 = vld [vmem:[#allocation7 + $0x514] ss:$24 sps:$4 sm:$0xff]   ;;  %v7614_v49 = vld [vmem:[#allocation7 + $0x210] ss:$24 sps:$4 sm:$0xff]  }
  0x6b   :  { %1922 = vmatprep.subr.bf16.mxu0 %v7570_v17  ;;  %v89_v46 = vld [vmem:[#allocation4] sm:$0xff]  ;;  %v90_v48 = vld [vmem:[#allocation4 + $0x8] sm:$0xff]  ;;  %v7616_v52 = vld [vmem:[#allocation7 + $0x244] ss:$24 sps:$4 sm:$0xff]   ;;  %s9054_s5 = smov [#allocation13]  }
  0x6c   :  { %v9162_v47 = vcombine.high %v89_v46, %v89_v46  ;;  %v7615_v50 = vld [vmem:[#allocation7 + $0x510] ss:$24 sps:$4 sm:$0xff]   ;;  %v9164_v51 = vcombine.high %v90_v48, %v90_v48  ;;  %v7618_v53 = vld [vmem:[#allocation7 + $0x544] ss:$24 sps:$4 sm:$0xff]   ;;  %v7620_v54 = vld [vmem:[#allocation7 + $0x240] ss:$24 sps:$4 sm:$0xff]   ;;  %v9168_v6 = vcombine.low %v89_v46, %v89_v46  ;;  %v9170_v7 = vcombine.low %v90_v48, %v90_v48 }
  0x6d   :  { %1882 = vmatpush1.bf16.msra.mxu1 %v7572_v18  ;;  %v7621_v55 = vld [vmem:[#allocation7 + $0x540] ss:$24 sps:$4 sm:$0xff]   ;;  %v7622_v56 = vld [vmem:[#allocation7 + $0x274] ss:$24 sps:$4 sm:$0xff]   ;;  %v7626_v58 = vld [vmem:[#allocation7 + $0x270] ss:$24 sps:$4 sm:$0xff]  }
  0x6e   :  { %1923 = vmatpush1.bf16.msra.mxu0 %v7573_v19  ;;  %1883 = vmatprep.subr.bf16.mxu1 %v7574_v20  ;;  %v7624_v57 = vld [vmem:[#allocation7 + $0x574] ss:$24 sps:$4 sm:$0xff]   ;;  %v7627_v59 = vld [vmem:[#allocation7 + $0x570] ss:$24 sps:$4 sm:$0xff]   ;;  %v7628_v60 = vld [vmem:[#allocation7 + $0x2a4] ss:$24 sps:$4 sm:$0xff]  }
  0x6f   :  { %1924 = vmatprep.subr.bf16.mxu0 %v7576_v21  ;;  %1905 = vmatprep.mubr.bf16.mxu1 %v9162_v47  ;;  %v7630_v61 = vld [vmem:[#allocation7 + $0x5a4] ss:$24 sps:$4 sm:$0xff]   ;;  %v7632_v62 = vld [vmem:[#allocation7 + $0x2a0] ss:$24 sps:$4 sm:$0xff]   ;;  %v7634_v0 = vld [vmem:[#allocation7 + $0x2d4] ss:$24 sps:$4 sm:$0xff]  }
  0x70   :  { %1946 = vmatprep.mubr.bf16.mxu0 %v9164_v51  ;;  %v7633_v63 = vld [vmem:[#allocation7 + $0x5a0] ss:$24 sps:$4 sm:$0xff]   ;;  %v7636_v1 = vld [vmem:[#allocation7 + $0x5d4] ss:$24 sps:$4 sm:$0xff]   ;;  %v7638_v2 = vld [vmem:[#allocation7 + $0x2d0] ss:$24 sps:$4 sm:$0xff]  }
  0x71   :  { %1884 = vmatpush1.bf16.msra.mxu1 %v7578_v22  ;;  %v7639_v3 = vld [vmem:[#allocation7 + $0x5d0] ss:$24 sps:$4 sm:$0xff]   ;;  %v7645_v4 = vld [vmem:[#allocation7 + $0x604] ss:$24 sps:$4 sm:$0xff]   ;;  %v7643_v8 = vld [vmem:[#allocation7 + $0x600] ss:$24 sps:$4 sm:$0xff]  }
  0x72   :  { %1925 = vmatpush1.bf16.msra.mxu0 %v7579_v23  ;;  %1885 = vmatprep.subr.bf16.mxu1 %v7580_v24  ;;  %v7648_v5 = vld [vmem:[#allocation7 + $0xc] ss:$24 sps:$4 sm:$0xff]   ;;  %v7646_v9 = vld [vmem:[#allocation7 + $0x8] ss:$24 sps:$4 sm:$0xff]   ;;  %v7655_v11 = vld [vmem:[#allocation7 + $0x3c] ss:$24 sps:$4 sm:$0xff]  }
  0x73   :  { %1926 = vmatprep.subr.bf16.mxu0 %v7582_v25  ;;  %v7652_v10 = vld [vmem:[#allocation7 + $0x634] ss:$24 sps:$4 sm:$0xff]   ;;  %v7650_v12 = vld [vmem:[#allocation7 + $0x630] ss:$24 sps:$4 sm:$0xff]   ;;  %v7658_v14 = vld [vmem:[#allocation7 + $0x664] ss:$24 sps:$4 sm:$0xff]  }
  0x74   :  { %v7653_v13 = vld [vmem:[#allocation7 + $0x38] ss:$24 sps:$4 sm:$0xff]   ;;  %v7661_v15 = vld [vmem:[#allocation7 + $0x6c] ss:$24 sps:$4 sm:$0xff]   ;;  %v7659_v17 = vld [vmem:[#allocation7 + $0x68] ss:$24 sps:$4 sm:$0xff]  }
  0x75   :  { %1886 = vmatpush1.bf16.msra.mxu1 %v7584_v26  ;;  %v7656_v16 = vld [vmem:[#allocation7 + $0x660] ss:$24 sps:$4 sm:$0xff]   ;;  %v7664_v18 = vld [vmem:[#allocation7 + $0x694] ss:$24 sps:$4 sm:$0xff]   ;;  %v7662_v20 = vld [vmem:[#allocation7 + $0x690] ss:$24 sps:$4 sm:$0xff]  }
  0x76   :  { %1927 = vmatpush1.bf16.msra.mxu0 %v7585_v27  ;;  %1887 = vmatprep.subr.bf16.mxu1 %v7586_v28  ;;  %v7667_v19 = vld [vmem:[#allocation7 + $0x9c] ss:$24 sps:$4 sm:$0xff]   ;;  %v7665_v21 = vld [vmem:[#allocation7 + $0x98] ss:$24 sps:$4 sm:$0xff]   ;;  %v7673_v23 = vld [vmem:[#allocation7 + $0xcc] ss:$24 sps:$4 sm:$0xff]  }
  0x77   :  { %1928 = vmatprep.subr.bf16.mxu0 %v7588_v29  ;;  %v7670_v22 = vld [vmem:[#allocation7 + $0x6c4] ss:$24 sps:$4 sm:$0xff]   ;;  %v7668_v24 = vld [vmem:[#allocation7 + $0x6c0] ss:$24 sps:$4 sm:$0xff]   ;;  %v7676_v26 = vld [vmem:[#allocation7 + $0x6f4] ss:$24 sps:$4 sm:$0xff]  }
  0x78   :  { %v7671_v25 = vld [vmem:[#allocation7 + $0xc8] ss:$24 sps:$4 sm:$0xff]   ;;  %v7679_v27 = vld [vmem:[#allocation7 + $0xfc] ss:$24 sps:$4 sm:$0xff]   ;;  %v7677_v29 = vld [vmem:[#allocation7 + $0xf8] ss:$24 sps:$4 sm:$0xff]  }
  0x79   :  { %1888 = vmatpush1.bf16.msra.mxu1 %v7590_v30  ;;  %v7674_v28 = vld [vmem:[#allocation7 + $0x6f0] ss:$24 sps:$4 sm:$0xff]   ;;  %v7682_v30 = vld [vmem:[#allocation7 + $0x724] ss:$24 sps:$4 sm:$0xff]   ;;  %s6536_s17 = sshll.u32 %s9054_s5, 4  ;;  %s6537_s17 = int_to_ptr.vmem [resolvable:$true] %s6536_s17 }
  0x7a   :  { %1929 = vmatpush1.bf16.msra.mxu0 %v7591_v31  ;;  %1889 = vmatprep.subr.bf16.mxu1 %v7592_v32  ;;  %v7685_v31 = vld [vmem:[#allocation7 + $0x12c] ss:$24 sps:$4 sm:$0xff]   ;;  %v9175_v32 = vld [vmem:[#allocation4 + $0x10] sm:$0xff]  ;;  %v7698_v46 = vld [vmem:[#allocation7 + $0x7b0] ss:$24 sps:$4 sm:$0xff]   ;;  %s8969_s18 = scalar_lea.vmem %s6537_s17, 768  ;;  %p8974_p13 = scmp.lt.s32.totalorder %s6537_s17, %s6537_s17 }
  0x7b   :  { %1930 = vmatprep.subr.bf16.mxu0 %v7594_v33  ;;  %v7680_v33 = vld [vmem:[#allocation7 + $0x720] ss:$24 sps:$4 sm:$0xff]   ;;  %p8970_p12 = scmp.ne.s32.totalorder %s6537_s17, %s8969_s18  ;;  %p8975_p0 = scmp.lt.s32.totalorder %s8969_s18, %s8969_s18 }
  0x7c   :  { %v7701_v48 = vld [vmem:[#allocation7 + $0x1b8] ss:$24 sps:$4 sm:$0xff]  }
  0x7d   :  { %1890 = vmatpush1.bf16.msra.mxu1 %v7596_v34  ;;  %v9179_v34 = vcombine.high %v9175_v32, %v9175_v32  ;;  %p8976_p1 = por %p8975_p0, %p8974_p13 }
  0x7e   :  { %1931 = vmatpush1.bf16.msra.mxu0 %v7597_v35  ;;  %1891 = vmatprep.subr.bf16.mxu1 %v7598_v36  ;;  %v7683_v35 = vld [vmem:[#allocation7 + $0x128] ss:$24 sps:$4 sm:$0xff]   ;;  %v7688_v36 = vld [vmem:[#allocation7 + $0x754] ss:$24 sps:$4 sm:$0xff]  }
  0x7f   :  { %1932 = vmatprep.subr.bf16.mxu0 %v7600_v37  ;;  %v7691_v37 = vld [vmem:[#allocation7 + $0x15c] ss:$24 sps:$4 sm:$0xff]   ;;  %p8977_p2 = pnand %p8976_p1, %p8970_p12 }
  0x81   :  { %1892 = vmatpush1.bf16.msra.mxu1 %v7602_v38  ;;  %v7686_v38 = vld [vmem:[#allocation7 + $0x750] ss:$24 sps:$4 sm:$0xff]  }
  0x82   :  { %1933 = vmatpush1.bf16.msra.mxu0 %v7603_v39  ;;  %1893 = vmatprep.subr.bf16.mxu1 %v7604_v40  ;;  %v7689_v39 = vld [vmem:[#allocation7 + $0x158] ss:$24 sps:$4 sm:$0xff]   ;;  %v7694_v40 = vld [vmem:[#allocation7 + $0x784] ss:$24 sps:$4 sm:$0xff]  }
  0x83   :  { %1934 = vmatprep.subr.bf16.mxu0 %v7606_v41  ;;  %v7697_v41 = vld [vmem:[#allocation7 + $0x18c] ss:$24 sps:$4 sm:$0xff]  }
  0x85   :  { %1894 = vmatpush1.bf16.msra.mxu1 %v7608_v42  ;;  %v7692_v42 = vld [vmem:[#allocation7 + $0x780] ss:$24 sps:$4 sm:$0xff]  }
  0x86   :  { %1935 = vmatpush1.bf16.msra.mxu0 %v7609_v43  ;;  %1895 = vmatprep.subr.bf16.mxu1 %v7610_v44  ;;  %v7695_v43 = vld [vmem:[#allocation7 + $0x188] ss:$24 sps:$4 sm:$0xff]   ;;  %v7700_v44 = vld [vmem:[#allocation7 + $0x7b4] ss:$24 sps:$4 sm:$0xff]  }
  0x87   :  { %1936 = vmatprep.subr.bf16.mxu0 %v7612_v45  ;;  %v7703_v45 = vld [vmem:[#allocation7 + $0x1bc] ss:$24 sps:$4 sm:$0xff]  }
  0x89   :  { %1896 = vmatpush1.bf16.msra.mxu1 %v7614_v49  ;;  %v7706_v49 = vld [vmem:[#allocation7 + $0x7e4] ss:$24 sps:$4 sm:$0xff]  }
  0x8a   :  { %1937 = vmatpush1.bf16.msra.mxu0 %v7615_v50  ;;  %1897 = vmatprep.subr.bf16.mxu1 %v7616_v52  ;;  %v7709_v50 = vld [vmem:[#allocation7 + $0x1ec] ss:$24 sps:$4 sm:$0xff]   ;;  %v7704_v52 = vld [vmem:[#allocation7 + $0x7e0] ss:$24 sps:$4 sm:$0xff]  }
  0x8b   :  { %1938 = vmatprep.subr.bf16.mxu0 %v7618_v53  ;;  %v7707_v53 = vld [vmem:[#allocation7 + $0x1e8] ss:$24 sps:$4 sm:$0xff]  }
  0x8d   :  { %1898 = vmatpush1.bf16.msra.mxu1 %v7620_v54  ;;  %v7712_v54 = vld [vmem:[#allocation7 + $0x814] ss:$24 sps:$4 sm:$0xff]  }
  0x8e   :  { %1939 = vmatpush1.bf16.msra.mxu0 %v7621_v55  ;;  %1899 = vmatprep.subr.bf16.mxu1 %v7622_v56  ;;  %v7715_v55 = vld [vmem:[#allocation7 + $0x21c] ss:$24 sps:$4 sm:$0xff]   ;;  %v7710_v56 = vld [vmem:[#allocation7 + $0x810] ss:$24 sps:$4 sm:$0xff]  }
  0x8f   :  { %1940 = vmatprep.subr.bf16.mxu0 %v7624_v57  ;;  %v7713_v57 = vld [vmem:[#allocation7 + $0x218] ss:$24 sps:$4 sm:$0xff]  }
  0x91   :  { %1900 = vmatpush1.bf16.msra.mxu1 %v7626_v58  ;;  %v7718_v58 = vld [vmem:[#allocation7 + $0x844] ss:$24 sps:$4 sm:$0xff]  }
  0x92   :  { %1941 = vmatpush1.bf16.msra.mxu0 %v7627_v59  ;;  %1901 = vmatprep.subr.bf16.mxu1 %v7628_v60  ;;  %v7721_v59 = vld [vmem:[#allocation7 + $0x24c] ss:$24 sps:$4 sm:$0xff]   ;;  %v7716_v60 = vld [vmem:[#allocation7 + $0x840] ss:$24 sps:$4 sm:$0xff]  }
  0x93   :  { %1942 = vmatprep.subr.bf16.mxu0 %v7630_v61  ;;  %v7719_v61 = vld [vmem:[#allocation7 + $0x248] ss:$24 sps:$4 sm:$0xff]  }
  0x95   :  { %1902 = vmatpush1.bf16.msra.mxu1 %v7632_v62  ;;  %v7724_v62 = vld [vmem:[#allocation7 + $0x874] ss:$24 sps:$4 sm:$0xff]  }
  0x96   :  { %1943 = vmatpush1.bf16.msra.mxu0 %v7633_v63  ;;  %1903 = vmatprep.subr.bf16.mxu1 %v7634_v0  ;;  %v7727_v63 = vld [vmem:[#allocation7 + $0x27c] ss:$24 sps:$4 sm:$0xff]   ;;  %v7722_v0 = vld [vmem:[#allocation7 + $0x870] ss:$24 sps:$4 sm:$0xff]  }
  0x97   :  { %1944 = vmatprep.subr.bf16.mxu0 %v7636_v1  ;;  %v7725_v1 = vld [vmem:[#allocation7 + $0x278] ss:$24 sps:$4 sm:$0xff]  }
  0x99   :  { %1904 = vmatpush1.bf16.msra.mxu1 %v7638_v2  ;;  %v7730_v2 = vld [vmem:[#allocation7 + $0x8a4] ss:$24 sps:$4 sm:$0xff]  }
  0x9a   :  { %1945 = vmatpush1.bf16.msra.mxu0 %v7639_v3  ;;  %1996 = vmatprep.subr.bf16.mxu1 %v7648_v5  ;;  %v7733_v3 = vld [vmem:[#allocation7 + $0x2ac] ss:$24 sps:$4 sm:$0xff]   ;;  %v7731_v5 = vld [vmem:[#allocation7 + $0x2a8] ss:$24 sps:$4 sm:$0xff]  }
  0x9b   :  { %1955 = vmatprep.subr.bf16.mxu0 %v7645_v4  ;;  %v7728_v4 = vld [vmem:[#allocation7 + $0x8a0] ss:$24 sps:$4 sm:$0xff]  }
  0x9c   :  { %1906 = vmatmul.mubr.bf16.vlgmr.msra.gmra.mrb[0].mxu1 %v9168_v6 }
  0x9d   :  { %1947 = vmatmul.mubr.bf16.vlgmr.msra.gmra.mrb[0].mxu0 %v9170_v7  ;;  %1997 = vmatpush1.bf16.msra.mxu1 %v7646_v9  ;;  %v7739_v9 = vld [vmem:[#allocation7 + $0x2dc] ss:$24 sps:$4 sm:$0xff]  }
  0x9e   :  { %1956 = vmatpush1.bf16.msra.mxu0 %v7643_v8  ;;  %1998 = vmatprep.subr.bf16.mxu1 %v7655_v11  ;;  %v7736_v8 = vld [vmem:[#allocation7 + $0x8d4] ss:$24 sps:$4 sm:$0xff]   ;;  %v7737_v11 = vld [vmem:[#allocation7 + $0x2d8] ss:$24 sps:$4 sm:$0xff]  }
  0x9f   :  { %1957 = vmatprep.subr.bf16.mxu0 %v7652_v10  ;;  %2028 = vmatprep.mubr.bf16.mxu1 %v9162_v47  ;;  %v7734_v10 = vld [vmem:[#allocation7 + $0x8d0] ss:$24 sps:$4 sm:$0xff]  }
  0xa0   :  { %1987 = vmatprep.mubr.bf16.mxu0 %v9179_v34 }
  0xa1   :  { %1999 = vmatpush1.bf16.msra.mxu1 %v7653_v13  ;;  %v7747_v13 = vld [vmem:[#allocation7 + $0x14] ss:$24 sps:$4 sm:$0xff]  }
  0xa2   :  { %1958 = vmatpush1.bf16.msra.mxu0 %v7650_v12  ;;  %2000 = vmatprep.subr.bf16.mxu1 %v7661_v15  ;;  %v7744_v12 = vld [vmem:[#allocation7 + $0x30c] ss:$24 sps:$4 sm:$0xff]   ;;  %v7742_v15 = vld [vmem:[#allocation7 + $0x308] ss:$24 sps:$4 sm:$0xff]  }
  0xa3   :  { %1959 = vmatprep.subr.bf16.mxu0 %v7658_v14  ;;  %v9184_v14 = vcombine.low %v9175_v32, %v9175_v32  ;;  %v7774_v32 = vld [vmem:[#allocation7 + $0x3fc] ss:$24 sps:$4 sm:$0xff]  }
  0xa5   :  { %2001 = vmatpush1.bf16.msra.mxu1 %v7659_v17  ;;  %v7750_v17 = vld [vmem:[#allocation7 + $0x33c] ss:$24 sps:$4 sm:$0xff]  }
  0xa6   :  { %1960 = vmatpush1.bf16.msra.mxu0 %v7656_v16  ;;  %2002 = vmatprep.subr.bf16.mxu1 %v7667_v19  ;;  %v7745_v16 = vld [vmem:[#allocation7 + $0x10] ss:$24 sps:$4 sm:$0xff]  }
  0xa7   :  { %1961 = vmatprep.subr.bf16.mxu0 %v7664_v18  ;;  %v7753_v18 = vld [vmem:[#allocation7 + $0x44] ss:$24 sps:$4 sm:$0xff]   ;;  %v7748_v19 = vld [vmem:[#allocation7 + $0x338] ss:$24 sps:$4 sm:$0xff]  }
  0xa9   :  { %2003 = vmatpush1.bf16.msra.mxu1 %v7665_v21  ;;  %v7756_v21 = vld [vmem:[#allocation7 + $0x36c] ss:$24 sps:$4 sm:$0xff]  }
  0xaa   :  { %1962 = vmatpush1.bf16.msra.mxu0 %v7662_v20  ;;  %2004 = vmatprep.subr.bf16.mxu1 %v7673_v23  ;;  %v7751_v20 = vld [vmem:[#allocation7 + $0x40] ss:$24 sps:$4 sm:$0xff]  }
  0xab   :  { %1963 = vmatprep.subr.bf16.mxu0 %v7670_v22  ;;  %v7759_v22 = vld [vmem:[#allocation7 + $0x74] ss:$24 sps:$4 sm:$0xff]   ;;  %v7754_v23 = vld [vmem:[#allocation7 + $0x368] ss:$24 sps:$4 sm:$0xff]  }
  0xad   :  { %2005 = vmatpush1.bf16.msra.mxu1 %v7671_v25  ;;  %v7762_v25 = vld [vmem:[#allocation7 + $0x39c] ss:$24 sps:$4 sm:$0xff]  }
  0xae   :  { %1964 = vmatpush1.bf16.msra.mxu0 %v7668_v24  ;;  %2006 = vmatprep.subr.bf16.mxu1 %v7679_v27  ;;  %v7757_v24 = vld [vmem:[#allocation7 + $0x70] ss:$24 sps:$4 sm:$0xff]  }
  0xaf   :  { %1965 = vmatprep.subr.bf16.mxu0 %v7676_v26  ;;  %v7765_v26 = vld [vmem:[#allocation7 + $0xa4] ss:$24 sps:$4 sm:$0xff]   ;;  %v7760_v27 = vld [vmem:[#allocation7 + $0x398] ss:$24 sps:$4 sm:$0xff]  }
  0xb1   :  { %2007 = vmatpush1.bf16.msra.mxu1 %v7677_v29  ;;  %v7768_v29 = vld [vmem:[#allocation7 + $0x3cc] ss:$24 sps:$4 sm:$0xff]  }
  0xb2   :  { %1966 = vmatpush1.bf16.msra.mxu0 %v7674_v28  ;;  %2008 = vmatprep.subr.bf16.mxu1 %v7685_v31  ;;  %v7763_v28 = vld [vmem:[#allocation7 + $0xa0] ss:$24 sps:$4 sm:$0xff]  }
  0xb3   :  { %1967 = vmatprep.subr.bf16.mxu0 %v7682_v30  ;;  %v7771_v30 = vld [vmem:[#allocation7 + $0xd4] ss:$24 sps:$4 sm:$0xff]   ;;  %v7766_v31 = vld [vmem:[#allocation7 + $0x3c8] ss:$24 sps:$4 sm:$0xff]  }
  0xb5   :  { %2009 = vmatpush1.bf16.msra.mxu1 %v7683_v35  ;;  %v7772_v35 = vld [vmem:[#allocation7 + $0x3f8] ss:$24 sps:$4 sm:$0xff]  }
  0xb6   :  { %1968 = vmatpush1.bf16.msra.mxu0 %v7680_v33  ;;  %2010 = vmatprep.subr.bf16.mxu1 %v7691_v37  ;;  %v7777_v33 = vld [vmem:[#allocation7 + $0x104] ss:$24 sps:$4 sm:$0xff]  }
  0xb7   :  { %1969 = vmatprep.subr.bf16.mxu0 %v7688_v36  ;;  %v7775_v36 = vld [vmem:[#allocation7 + $0x100] ss:$24 sps:$4 sm:$0xff]   ;;  %v7780_v37 = vld [vmem:[#allocation7 + $0x42c] ss:$24 sps:$4 sm:$0xff]  }
  0xb9   :  { %2011 = vmatpush1.bf16.msra.mxu1 %v7689_v39  ;;  %v7778_v39 = vld [vmem:[#allocation7 + $0x428] ss:$24 sps:$4 sm:$0xff]  }
  0xba   :  { %1970 = vmatpush1.bf16.msra.mxu0 %v7686_v38  ;;  %2012 = vmatprep.subr.bf16.mxu1 %v7697_v41  ;;  %v7783_v38 = vld [vmem:[#allocation7 + $0x134] ss:$24 sps:$4 sm:$0xff]  }
  0xbb   :  { %1971 = vmatprep.subr.bf16.mxu0 %v7694_v40  ;;  %v7781_v40 = vld [vmem:[#allocation7 + $0x130] ss:$24 sps:$4 sm:$0xff]   ;;  %v7786_v41 = vld [vmem:[#allocation7 + $0x45c] ss:$24 sps:$4 sm:$0xff]  }
  0xbd   :  { %2013 = vmatpush1.bf16.msra.mxu1 %v7695_v43  ;;  %v7784_v43 = vld [vmem:[#allocation7 + $0x458] ss:$24 sps:$4 sm:$0xff]  }
  0xbe   :  { %1972 = vmatpush1.bf16.msra.mxu0 %v7692_v42  ;;  %2014 = vmatprep.subr.bf16.mxu1 %v7703_v45  ;;  %v7789_v42 = vld [vmem:[#allocation7 + $0x164] ss:$24 sps:$4 sm:$0xff]  }
  0xbf   :  { %1973 = vmatprep.subr.bf16.mxu0 %v7700_v44  ;;  %v7787_v44 = vld [vmem:[#allocation7 + $0x160] ss:$24 sps:$4 sm:$0xff]   ;;  %v7792_v45 = vld [vmem:[#allocation7 + $0x48c] ss:$24 sps:$4 sm:$0xff]  }
  0xc1   :  { %2015 = vmatpush1.bf16.msra.mxu1 %v7701_v48  ;;  %v7790_v48 = vld [vmem:[#allocation7 + $0x488] ss:$24 sps:$4 sm:$0xff]  }
  0xc2   :  { %1974 = vmatpush1.bf16.msra.mxu0 %v7698_v46  ;;  %2016 = vmatprep.subr.bf16.mxu1 %v7709_v50  ;;  %v7795_v46 = vld [vmem:[#allocation7 + $0x194] ss:$24 sps:$4 sm:$0xff]  }
  0xc3   :  { %1975 = vmatprep.subr.bf16.mxu0 %v7706_v49  ;;  %v7793_v49 = vld [vmem:[#allocation7 + $0x190] ss:$24 sps:$4 sm:$0xff]   ;;  %v7798_v50 = vld [vmem:[#allocation7 + $0x4bc] ss:$24 sps:$4 sm:$0xff]  }
  0xc5   :  { %2017 = vmatpush1.bf16.msra.mxu1 %v7707_v53  ;;  %v7796_v53 = vld [vmem:[#allocation7 + $0x4b8] ss:$24 sps:$4 sm:$0xff]  }
  0xc6   :  { %1976 = vmatpush1.bf16.msra.mxu0 %v7704_v52  ;;  %2018 = vmatprep.subr.bf16.mxu1 %v7715_v55  ;;  %v7801_v52 = vld [vmem:[#allocation7 + $0x1c4] ss:$24 sps:$4 sm:$0xff]  }
  0xc7   :  { %1977 = vmatprep.subr.bf16.mxu0 %v7712_v54  ;;  %v7799_v54 = vld [vmem:[#allocation7 + $0x1c0] ss:$24 sps:$4 sm:$0xff]   ;;  %v7804_v55 = vld [vmem:[#allocation7 + $0x4ec] ss:$24 sps:$4 sm:$0xff]  }
  0xc9   :  { %2019 = vmatpush1.bf16.msra.mxu1 %v7713_v57  ;;  %v7802_v57 = vld [vmem:[#allocation7 + $0x4e8] ss:$24 sps:$4 sm:$0xff]  }
  0xca   :  { %1978 = vmatpush1.bf16.msra.mxu0 %v7710_v56  ;;  %2020 = vmatprep.subr.bf16.mxu1 %v7721_v59  ;;  %v7807_v56 = vld [vmem:[#allocation7 + $0x1f4] ss:$24 sps:$4 sm:$0xff]  }
  0xcb   :  { %1979 = vmatprep.subr.bf16.mxu0 %v7718_v58  ;;  %v7805_v58 = vld [vmem:[#allocation7 + $0x1f0] ss:$24 sps:$4 sm:$0xff]   ;;  %v7810_v59 = vld [vmem:[#allocation7 + $0x51c] ss:$24 sps:$4 sm:$0xff]  }
  0xcd   :  { %2021 = vmatpush1.bf16.msra.mxu1 %v7719_v61  ;;  %v7808_v61 = vld [vmem:[#allocation7 + $0x518] ss:$24 sps:$4 sm:$0xff]  }
  0xce   :  { %1980 = vmatpush1.bf16.msra.mxu0 %v7716_v60  ;;  %2022 = vmatprep.subr.bf16.mxu1 %v7727_v63  ;;  %v7813_v60 = vld [vmem:[#allocation7 + $0x224] ss:$24 sps:$4 sm:$0xff]  }
  0xcf   :  { %1981 = vmatprep.subr.bf16.mxu0 %v7724_v62  ;;  %v7811_v62 = vld [vmem:[#allocation7 + $0x220] ss:$24 sps:$4 sm:$0xff]   ;;  %v7816_v63 = vld [vmem:[#allocation7 + $0x54c] ss:$24 sps:$4 sm:$0xff]  }
  0xd1   :  { %2023 = vmatpush1.bf16.msra.mxu1 %v7725_v1  ;;  %v7814_v1 = vld [vmem:[#allocation7 + $0x548] ss:$24 sps:$4 sm:$0xff]  }
  0xd2   :  { %1982 = vmatpush1.bf16.msra.mxu0 %v7722_v0  ;;  %2024 = vmatprep.subr.bf16.mxu1 %v7733_v3  ;;  %v7819_v0 = vld [vmem:[#allocation7 + $0x254] ss:$24 sps:$4 sm:$0xff]  }
  0xd3   :  { %1983 = vmatprep.subr.bf16.mxu0 %v7730_v2  ;;  %v7817_v2 = vld [vmem:[#allocation7 + $0x250] ss:$24 sps:$4 sm:$0xff]   ;;  %v7822_v3 = vld [vmem:[#allocation7 + $0x57c] ss:$24 sps:$4 sm:$0xff]  }
  0xd5   :  { %2025 = vmatpush1.bf16.msra.mxu1 %v7731_v5  ;;  %v7820_v5 = vld [vmem:[#allocation7 + $0x578] ss:$24 sps:$4 sm:$0xff]  }
  0xd6   :  { %1984 = vmatpush1.bf16.msra.mxu0 %v7728_v4  ;;  %2026 = vmatprep.subr.bf16.mxu1 %v7739_v9  ;;  %v7825_v4 = vld [vmem:[#allocation7 + $0x284] ss:$24 sps:$4 sm:$0xff]  }
  0xd7   :  { %1985 = vmatprep.subr.bf16.mxu0 %v7736_v8  ;;  %v7823_v8 = vld [vmem:[#allocation7 + $0x280] ss:$24 sps:$4 sm:$0xff]   ;;  %v7828_v9 = vld [vmem:[#allocation7 + $0x5ac] ss:$24 sps:$4 sm:$0xff]  }
  0xd9   :  { %2027 = vmatpush1.bf16.msra.mxu1 %v7737_v11  ;;  %v7826_v11 = vld [vmem:[#allocation7 + $0x5a8] ss:$24 sps:$4 sm:$0xff]  }
  0xda   :  { %1986 = vmatpush1.bf16.msra.mxu0 %v7734_v10  ;;  %2037 = vmatprep.subr.bf16.mxu1 %v7744_v12  ;;  %v7831_v10 = vld [vmem:[#allocation7 + $0x2b4] ss:$24 sps:$4 sm:$0xff]   ;;  %v7829_v12 = vld [vmem:[#allocation7 + $0x2b0] ss:$24 sps:$4 sm:$0xff]  }
  0xdb   :  { %2119 = vmatprep.subr.bf16.mxu0 %v7747_v13  ;;  %v7834_v13 = vld [vmem:[#allocation7 + $0x5dc] ss:$24 sps:$4 sm:$0xff]  }
  0xdc   :  { %2029 = vmatmul.mubr.bf16.vlgmr.msra.gmra.mrb[4].mxu1 %v9168_v6 }
  0xdd   :  { %1988 = vmatmul.mubr.bf16.vlgmr.msra.gmra.mrb[0].mxu0 %v9184_v14  ;;  %2038 = vmatpush1.bf16.msra.mxu1 %v7742_v15  ;;  %v7837_v15 = vld [vmem:[#allocation7 + $0x2e4] ss:$24 sps:$4 sm:$0xff]  }
  0xde   :  { %2120 = vmatpush1.bf16.msra.mxu0 %v7745_v16  ;;  %2039 = vmatprep.subr.bf16.mxu1 %v7750_v17  ;;  %v7832_v16 = vld [vmem:[#allocation7 + $0x5d8] ss:$24 sps:$4 sm:$0xff]  }
  0xdf   :  { %2121 = vmatprep.subr.bf16.mxu0 %v7753_v18  ;;  %2069 = vmatprep.mubr.bf16.mxu1 %v9164_v51  ;;  %v7835_v17 = vld [vmem:[#allocation7 + $0x2e0] ss:$24 sps:$4 sm:$0xff]   ;;  %v7840_v18 = vld [vmem:[#allocation7 + $0x60c] ss:$24 sps:$4 sm:$0xff]  }
  0xe0   :  { %2151 = vmatprep.mubr.bf16.mxu0 %v9162_v47  ;;  %v7769_v47 = vld [vmem:[#allocation7 + $0xd0] ss:$24 sps:$4 sm:$0xff]  }
  0xe1   :  { %2040 = vmatpush1.bf16.msra.mxu1 %v7748_v19  ;;  %v7843_v19 = vld [vmem:[#allocation7 + $0x314] ss:$24 sps:$4 sm:$0xff]  }
  0xe2   :  { %2122 = vmatpush1.bf16.msra.mxu0 %v7751_v20  ;;  %2041 = vmatprep.subr.bf16.mxu1 %v7756_v21  ;;  %v7838_v20 = vld [vmem:[#allocation7 + $0x608] ss:$24 sps:$4 sm:$0xff]  }
  0xe3   :  { %2123 = vmatprep.subr.bf16.mxu0 %v7759_v22  ;;  %v7841_v21 = vld [vmem:[#allocation7 + $0x310] ss:$24 sps:$4 sm:$0xff]   ;;  %v7846_v22 = vld [vmem:[#allocation7 + $0x63c] ss:$24 sps:$4 sm:$0xff]  }
  0xe5   :  { %2042 = vmatpush1.bf16.msra.mxu1 %v7754_v23  ;;  %v7849_v23 = vld [vmem:[#allocation7 + $0x344] ss:$24 sps:$4 sm:$0xff]  }
  0xe6   :  { %2124 = vmatpush1.bf16.msra.mxu0 %v7757_v24  ;;  %2043 = vmatprep.subr.bf16.mxu1 %v7762_v25  ;;  %v7844_v24 = vld [vmem:[#allocation7 + $0x638] ss:$24 sps:$4 sm:$0xff]  }
  0xe7   :  { %2125 = vmatprep.subr.bf16.mxu0 %v7765_v26  ;;  %v7847_v25 = vld [vmem:[#allocation7 + $0x340] ss:$24 sps:$4 sm:$0xff]   ;;  %v7852_v26 = vld [vmem:[#allocation7 + $0x66c] ss:$24 sps:$4 sm:$0xff]  }
  0xe9   :  { %2044 = vmatpush1.bf16.msra.mxu1 %v7760_v27  ;;  %v7855_v27 = vld [vmem:[#allocation7 + $0x374] ss:$24 sps:$4 sm:$0xff]  }
  0xea   :  { %2126 = vmatpush1.bf16.msra.mxu0 %v7763_v28  ;;  %2045 = vmatprep.subr.bf16.mxu1 %v7768_v29  ;;  %v7850_v28 = vld [vmem:[#allocation7 + $0x668] ss:$24 sps:$4 sm:$0xff]  }
  0xeb   :  { %2127 = vmatprep.subr.bf16.mxu0 %v7771_v30  ;;  %v7853_v29 = vld [vmem:[#allocation7 + $0x370] ss:$24 sps:$4 sm:$0xff]   ;;  %v7858_v30 = vld [vmem:[#allocation7 + $0x69c] ss:$24 sps:$4 sm:$0xff]  }
  0xed   :  { %2046 = vmatpush1.bf16.msra.mxu1 %v7766_v31  ;;  %v7856_v31 = vld [vmem:[#allocation7 + $0x698] ss:$24 sps:$4 sm:$0xff]  }
  0xee   :  { %2128 = vmatpush1.bf16.msra.mxu0 %v7769_v47  ;;  %2047 = vmatprep.subr.bf16.mxu1 %v7774_v32  ;;  %v7859_v47 = vld [vmem:[#allocation7 + $0x3a0] ss:$24 sps:$4 sm:$0xff]   ;;  %v7864_v32 = vld [vmem:[#allocation7 + $0x6cc] ss:$24 sps:$4 sm:$0xff]  }
  0xef   :  { %2129 = vmatprep.subr.bf16.mxu0 %v7777_v33  ;;  %v7867_v33 = vld [vmem:[#allocation7 + $0x3d4] ss:$24 sps:$4 sm:$0xff]  }
  0xf1   :  { %2048 = vmatpush1.bf16.msra.mxu1 %v7772_v35  ;;  %v7862_v35 = vld [vmem:[#allocation7 + $0x6c8] ss:$24 sps:$4 sm:$0xff]  }
  0xf2   :  { %2130 = vmatpush1.bf16.msra.mxu0 %v7775_v36  ;;  %2049 = vmatprep.subr.bf16.mxu1 %v7780_v37  ;;  %v7865_v36 = vld [vmem:[#allocation7 + $0x3d0] ss:$24 sps:$4 sm:$0xff]   ;;  %v7873_v37 = vld [vmem:[#allocation7 + $0x404] ss:$24 sps:$4 sm:$0xff]  }
  0xf3   :  { %2131 = vmatprep.subr.bf16.mxu0 %v7783_v38  ;;  %v7868_v38 = vld [vmem:[#allocation7 + $0x6f8] ss:$24 sps:$4 sm:$0xff]  }
  0xf5   :  { %2050 = vmatpush1.bf16.msra.mxu1 %v7778_v39  ;;  %v7871_v39 = vld [vmem:[#allocation7 + $0x400] ss:$24 sps:$4 sm:$0xff]  }
  0xf6   :  { %2132 = vmatpush1.bf16.msra.mxu0 %v7781_v40  ;;  %2051 = vmatprep.subr.bf16.mxu1 %v7786_v41  ;;  %v7876_v40 = vld [vmem:[#allocation7 + $0x72c] ss:$24 sps:$4 sm:$0xff]  }
  0xf7   :  { %2133 = vmatprep.subr.bf16.mxu0 %v7789_v42  ;;  %v7879_v41 = vld [vmem:[#allocation7 + $0x434] ss:$24 sps:$4 sm:$0xff]   ;;  %v7874_v42 = vld [vmem:[#allocation7 + $0x728] ss:$24 sps:$4 sm:$0xff]  }
  0xf9   :  { %2052 = vmatpush1.bf16.msra.mxu1 %v7784_v43  ;;  %v7877_v43 = vld [vmem:[#allocation7 + $0x430] ss:$24 sps:$4 sm:$0xff]  }
  0xfa   :  { %2134 = vmatpush1.bf16.msra.mxu0 %v7787_v44  ;;  %2053 = vmatprep.subr.bf16.mxu1 %v7792_v45  ;;  %v7882_v44 = vld [vmem:[#allocation7 + $0x75c] ss:$24 sps:$4 sm:$0xff]  }
  0xfb   :  { %2135 = vmatprep.subr.bf16.mxu0 %v7795_v46  ;;  %v7885_v45 = vld [vmem:[#allocation7 + $0x464] ss:$24 sps:$4 sm:$0xff]   ;;  %v7880_v46 = vld [vmem:[#allocation7 + $0x758] ss:$24 sps:$4 sm:$0xff]  }
  0xfd   :  { %2054 = vmatpush1.bf16.msra.mxu1 %v7790_v48  ;;  %v7883_v48 = vld [vmem:[#allocation7 + $0x460] ss:$24 sps:$4 sm:$0xff]  }
  0xfe   :  { %2136 = vmatpush1.bf16.msra.mxu0 %v7793_v49  ;;  %2055 = vmatprep.subr.bf16.mxu1 %v7798_v50  ;;  %v7888_v49 = vld [vmem:[#allocation7 + $0x78c] ss:$24 sps:$4 sm:$0xff]  }
  0xff   :  { %2137 = vmatprep.subr.bf16.mxu0 %v7801_v52  ;;  %v7891_v50 = vld [vmem:[#allocation7 + $0x494] ss:$24 sps:$4 sm:$0xff]   ;;  %v7886_v52 = vld [vmem:[#allocation7 + $0x788] ss:$24 sps:$4 sm:$0xff]  }
 0x101   :  { %2056 = vmatpush1.bf16.msra.mxu1 %v7796_v53  ;;  %v7889_v53 = vld [vmem:[#allocation7 + $0x490] ss:$24 sps:$4 sm:$0xff]  }
 0x102   :  { %2138 = vmatpush1.bf16.msra.mxu0 %v7799_v54  ;;  %2057 = vmatprep.subr.bf16.mxu1 %v7804_v55  ;;  %v7894_v54 = vld [vmem:[#allocation7 + $0x7bc] ss:$24 sps:$4 sm:$0xff]  }
 0x103   :  { %2139 = vmatprep.subr.bf16.mxu0 %v7807_v56  ;;  %v7897_v55 = vld [vmem:[#allocation7 + $0x4c4] ss:$24 sps:$4 sm:$0xff]   ;;  %v7892_v56 = vld [vmem:[#allocation7 + $0x7b8] ss:$24 sps:$4 sm:$0xff]  }
 0x105   :  { %2058 = vmatpush1.bf16.msra.mxu1 %v7802_v57  ;;  %v7895_v57 = vld [vmem:[#allocation7 + $0x4c0] ss:$24 sps:$4 sm:$0xff]  }
 0x106   :  { %2140 = vmatpush1.bf16.msra.mxu0 %v7805_v58  ;;  %2059 = vmatprep.subr.bf16.mxu1 %v7810_v59  ;;  %v7900_v58 = vld [vmem:[#allocation7 + $0x7ec] ss:$24 sps:$4 sm:$0xff]  }
 0x107   :  { %2141 = vmatprep.subr.bf16.mxu0 %v7813_v60  ;;  %v7903_v59 = vld [vmem:[#allocation7 + $0x4f4] ss:$24 sps:$4 sm:$0xff]   ;;  %v7898_v60 = vld [vmem:[#allocation7 + $0x7e8] ss:$24 sps:$4 sm:$0xff]  }
 0x109   :  { %2060 = vmatpush1.bf16.msra.mxu1 %v7808_v61  ;;  %v7901_v61 = vld [vmem:[#allocation7 + $0x4f0] ss:$24 sps:$4 sm:$0xff]  }
 0x10a   :  { %2142 = vmatpush1.bf16.msra.mxu0 %v7811_v62  ;;  %2061 = vmatprep.subr.bf16.mxu1 %v7816_v63  ;;  %v7906_v62 = vld [vmem:[#allocation7 + $0x81c] ss:$24 sps:$4 sm:$0xff]  }
 0x10b   :  { %2143 = vmatprep.subr.bf16.mxu0 %v7819_v0  ;;  %v7909_v63 = vld [vmem:[#allocation7 + $0x524] ss:$24 sps:$4 sm:$0xff]   ;;  %v7904_v0 = vld [vmem:[#allocation7 + $0x818] ss:$24 sps:$4 sm:$0xff]  }
 0x10d   :  { %2062 = vmatpush1.bf16.msra.mxu1 %v7814_v1  ;;  %v7907_v1 = vld [vmem:[#allocation7 + $0x520] ss:$24 sps:$4 sm:$0xff]  }
 0x10e   :  { %2144 = vmatpush1.bf16.msra.mxu0 %v7817_v2  ;;  %2063 = vmatprep.subr.bf16.mxu1 %v7822_v3  ;;  %v7912_v2 = vld [vmem:[#allocation7 + $0x84c] ss:$24 sps:$4 sm:$0xff]  }
 0x10f   :  { %2145 = vmatprep.subr.bf16.mxu0 %v7825_v4  ;;  %v7915_v3 = vld [vmem:[#allocation7 + $0x554] ss:$24 sps:$4 sm:$0xff]   ;;  %v7910_v4 = vld [vmem:[#allocation7 + $0x848] ss:$24 sps:$4 sm:$0xff]  }
 0x111   :  { %2064 = vmatpush1.bf16.msra.mxu1 %v7820_v5  ;;  %v7913_v5 = vld [vmem:[#allocation7 + $0x550] ss:$24 sps:$4 sm:$0xff]  }
 0x112   :  { %2146 = vmatpush1.bf16.msra.mxu0 %v7823_v8  ;;  %2065 = vmatprep.subr.bf16.mxu1 %v7828_v9  ;;  %v7918_v8 = vld [vmem:[#allocation7 + $0x87c] ss:$24 sps:$4 sm:$0xff]  }
 0x113   :  { %2147 = vmatprep.subr.bf16.mxu0 %v7831_v10  ;;  %v7921_v9 = vld [vmem:[#allocation7 + $0x584] ss:$24 sps:$4 sm:$0xff]   ;;  %v7916_v10 = vld [vmem:[#allocation7 + $0x878] ss:$24 sps:$4 sm:$0xff]  }
 0x115   :  { %2066 = vmatpush1.bf16.msra.mxu1 %v7826_v11  ;;  %v7919_v11 = vld [vmem:[#allocation7 + $0x580] ss:$24 sps:$4 sm:$0xff]  }
 0x116   :  { %2148 = vmatpush1.bf16.msra.mxu0 %v7829_v12  ;;  %2067 = vmatprep.subr.bf16.mxu1 %v7834_v13  ;;  %v7924_v12 = vld [vmem:[#allocation7 + $0x8ac] ss:$24 sps:$4 sm:$0xff]  }
 0x117   :  { %2149 = vmatprep.subr.bf16.mxu0 %v7837_v15  ;;  %v7927_v13 = vld [vmem:[#allocation7 + $0x5b4] ss:$24 sps:$4 sm:$0xff]   ;;  %v7922_v15 = vld [vmem:[#allocation7 + $0x8a8] ss:$24 sps:$4 sm:$0xff]  }
 0x119   :  { %2068 = vmatpush1.bf16.msra.mxu1 %v7832_v16  ;;  %v7925_v16 = vld [vmem:[#allocation7 + $0x5b0] ss:$24 sps:$4 sm:$0xff]  }
 0x11a   :  { %2150 = vmatpush1.bf16.msra.mxu0 %v7835_v17  ;;  %2078 = vmatprep.subr.bf16.mxu1 %v7840_v18  ;;  %v7930_v17 = vld [vmem:[#allocation7 + $0x8dc] ss:$24 sps:$4 sm:$0xff]  }
 0x11b   :  { %2160 = vmatprep.subr.bf16.mxu0 %v7843_v19  ;;  %v7933_v18 = vld [vmem:[#allocation7 + $0x5e4] ss:$24 sps:$4 sm:$0xff]   ;;  %v7928_v19 = vld [vmem:[#allocation7 + $0x8d8] ss:$24 sps:$4 sm:$0xff]  }
 0x11c   :  { %2070 = vmatmul.mubr.bf16.vlgmr.msra.gmra.mrb[4].mxu1 %v9170_v7 }
 0x11d   :  { %2152 = vmatmul.mubr.bf16.vlgmr.msra.gmra.mrb[4].mxu0 %v9168_v6  ;;  %2079 = vmatpush1.bf16.msra.mxu1 %v7838_v20  ;;  %v7861_v6 = vld [vmem:[#allocation7 + $0x3a4] ss:$24 sps:$4 sm:$0xff]   ;;  %v7931_v20 = vld [vmem:[#allocation7 + $0x5e0] ss:$24 sps:$4 sm:$0xff]  }
 0x11e   :  { %2161 = vmatpush1.bf16.msra.mxu0 %v7841_v21  ;;  %2080 = vmatprep.subr.bf16.mxu1 %v7846_v22  ;;  %v7936_v21 = vld [vmem:[#allocation7 + $0x614] ss:$24 sps:$4 sm:$0xff]  }
 0x11f   :  { %2162 = vmatprep.subr.bf16.mxu0 %v7849_v23  ;;  %2110 = vmatprep.mubr.bf16.mxu1 %v9179_v34  ;;  %v7966_v22 = vld [vmem:[#allocation10 + $0x4] ss:$48 sps:$4 sm:$0xff]  }
 0x120   :  { %2192 = vmatprep.mubr.bf16.mxu0 %v9164_v51  ;;  %v7870_v51 = vld [vmem:[#allocation7 + $0x6fc] ss:$24 sps:$4 sm:$0xff]   ;;  %v7934_v23 = vld [vmem:[#allocation7 + $0x610] ss:$24 sps:$4 sm:$0xff]  }
 0x121   :  { %2081 = vmatpush1.bf16.msra.mxu1 %v7844_v24  ;;  %v7964_v24 = vld [vmem:[#allocation10] ss:$48 sps:$4 sm:$0xff]  }
 0x122   :  { %2163 = vmatpush1.bf16.msra.mxu0 %v7847_v25  ;;  %2082 = vmatprep.subr.bf16.mxu1 %v7852_v26  ;;  %v7939_v25 = vld [vmem:[#allocation7 + $0x644] ss:$24 sps:$4 sm:$0xff]  }
 0x123   :  { %2164 = vmatprep.subr.bf16.mxu0 %v7855_v27  ;;  %v7972_v26 = vld [vmem:[#allocation10 + $0x64] ss:$48 sps:$4 sm:$0xff]  }
 0x124   :  { %v7937_v27 = vld [vmem:[#allocation7 + $0x640] ss:$24 sps:$4 sm:$0xff]  }
 0x125   :  { %2083 = vmatpush1.bf16.msra.mxu1 %v7850_v28  ;;  %v7970_v28 = vld [vmem:[#allocation10 + $0x60] ss:$48 sps:$4 sm:$0xff]  }
 0x126   :  { %2165 = vmatpush1.bf16.msra.mxu0 %v7853_v29  ;;  %2084 = vmatprep.subr.bf16.mxu1 %v7858_v30  ;;  %v7942_v29 = vld [vmem:[#allocation7 + $0x674] ss:$24 sps:$4 sm:$0xff]  }
 0x127   :  { %2166 = vmatprep.subr.bf16.mxu0 %v7861_v6  ;;  %v7978_v30 = vld [vmem:[#allocation10 + $0xc4] ss:$48 sps:$4 sm:$0xff]  }
 0x128   :  { %v7940_v6 = vld [vmem:[#allocation7 + $0x670] ss:$24 sps:$4 sm:$0xff]  }
 0x129   :  { %2085 = vmatpush1.bf16.msra.mxu1 %v7856_v31  ;;  %v7945_v31 = vld [vmem:[#allocation7 + $0x6a4] ss:$24 sps:$4 sm:$0xff]  }
 0x12a   :  { %2167 = vmatpush1.bf16.msra.mxu0 %v7859_v47  ;;  %2086 = vmatprep.subr.bf16.mxu1 %v7864_v32  ;;  %v7976_v47 = vld [vmem:[#allocation10 + $0xc0] ss:$48 sps:$4 sm:$0xff]   ;;  %v7984_v32 = vld [vmem:[#allocation10 + $0x124] ss:$48 sps:$4 sm:$0xff]  }
 0x12b   :  { %2168 = vmatprep.subr.bf16.mxu0 %v7867_v33  ;;  %v7948_v33 = vld [vmem:[#allocation7 + $0x6d4] ss:$24 sps:$4 sm:$0xff]  }
 0x12d   :  { %2087 = vmatpush1.bf16.msra.mxu1 %v7862_v35  ;;  %v7982_v35 = vld [vmem:[#allocation10 + $0x120] ss:$48 sps:$4 sm:$0xff]  }
 0x12e   :  { %2169 = vmatpush1.bf16.msra.mxu0 %v7865_v36  ;;  %2088 = vmatprep.subr.bf16.mxu1 %v7870_v51  ;;  %v7990_v36 = vld [vmem:[#allocation10 + $0x184] ss:$48 sps:$4 sm:$0xff]  }
 0x12f   :  { %2170 = vmatprep.subr.bf16.mxu0 %v7873_v37  ;;  %v7946_v51 = vld [vmem:[#allocation7 + $0x6d0] ss:$24 sps:$4 sm:$0xff]   ;;  %v7951_v37 = vld [vmem:[#allocation7 + $0x704] ss:$24 sps:$4 sm:$0xff]  }
 0x131   :  { %2089 = vmatpush1.bf16.msra.mxu1 %v7868_v38  ;;  %v7996_v38 = vld [vmem:[#allocation10 + $0x1e4] ss:$48 sps:$4 sm:$0xff]  }
 0x132   :  { %2171 = vmatpush1.bf16.msra.mxu0 %v7871_v39  ;;  %2090 = vmatprep.subr.bf16.mxu1 %v7876_v40  ;;  %v7949_v39 = vld [vmem:[#allocation7 + $0x700] ss:$24 sps:$4 sm:$0xff]   ;;  %v7954_v40 = vld [vmem:[#allocation7 + $0x734] ss:$24 sps:$4 sm:$0xff]  }
 0x133   :  { %2172 = vmatprep.subr.bf16.mxu0 %v7879_v41  ;;  %v7994_v41 = vld [vmem:[#allocation10 + $0x1e0] ss:$48 sps:$4 sm:$0xff]  }
 0x135   :  { %2091 = vmatpush1.bf16.msra.mxu1 %v7874_v42  ;;  %v8002_v42 = vld [vmem:[#allocation10 + $0x244] ss:$48 sps:$4 sm:$0xff]  }
 0x136   :  { %2173 = vmatpush1.bf16.msra.mxu0 %v7877_v43  ;;  %2092 = vmatprep.subr.bf16.mxu1 %v7882_v44 }
 0x137   :  { %2174 = vmatprep.subr.bf16.mxu0 %v7885_v45 }
 0x139   :  { %2093 = vmatpush1.bf16.msra.mxu1 %v7880_v46  ;;  %v7952_v46 = vld [vmem:[#allocation7 + $0x730] ss:$24 sps:$4 sm:$0xff]  }
 0x13a   :  { %2175 = vmatpush1.bf16.msra.mxu0 %v7883_v48  ;;  %2094 = vmatprep.subr.bf16.mxu1 %v7888_v49  ;;  %v8000_v48 = vld [vmem:[#allocation10 + $0x240] ss:$48 sps:$4 sm:$0xff]  }
 0x13b   :  { %2176 = vmatprep.subr.bf16.mxu0 %v7891_v50  ;;  %v7957_v50 = vld [vmem:[#allocation7 + $0x764] ss:$24 sps:$4 sm:$0xff]  }
 0x13d   :  { %2095 = vmatpush1.bf16.msra.mxu1 %v7886_v52  ;;  %v8008_v52 = vld [vmem:[#allocation10 + $0x2a4] ss:$48 sps:$4 sm:$0xff]  }
 0x13e   :  { %2177 = vmatpush1.bf16.msra.mxu0 %v7889_v53  ;;  %2096 = vmatprep.subr.bf16.mxu1 %v7894_v54  ;;  %v7955_v53 = vld [vmem:[#allocation7 + $0x760] ss:$24 sps:$4 sm:$0xff]   ;;  %v7960_v54 = vld [vmem:[#allocation7 + $0x794] ss:$24 sps:$4 sm:$0xff]  }
 0x13f   :  { %2178 = vmatprep.subr.bf16.mxu0 %v7897_v55  ;;  %v8006_v55 = vld [vmem:[#allocation10 + $0x2a0] ss:$48 sps:$4 sm:$0xff]  }
 0x141   :  { %2097 = vmatpush1.bf16.msra.mxu1 %v7892_v56  ;;  %v8014_v56 = vld [vmem:[#allocation10 + $0x304] ss:$48 sps:$4 sm:$0xff]  }
 0x142   :  { %2179 = vmatpush1.bf16.msra.mxu0 %v7895_v57  ;;  %2098 = vmatprep.subr.bf16.mxu1 %v7900_v58  ;;  %v7958_v57 = vld [vmem:[#allocation7 + $0x790] ss:$24 sps:$4 sm:$0xff]   ;;  %v7963_v58 = vld [vmem:[#allocation7 + $0x7c4] ss:$24 sps:$4 sm:$0xff]  }
 0x143   :  { %2180 = vmatprep.subr.bf16.mxu0 %v7903_v59  ;;  %v8012_v59 = vld [vmem:[#allocation10 + $0x300] ss:$48 sps:$4 sm:$0xff]  }
 0x145   :  { %2099 = vmatpush1.bf16.msra.mxu1 %v7898_v60  ;;  %v8020_v60 = vld [vmem:[#allocation10 + $0x364] ss:$48 sps:$4 sm:$0xff]  }
 0x146   :  { %2181 = vmatpush1.bf16.msra.mxu0 %v7901_v61  ;;  %2100 = vmatprep.subr.bf16.mxu1 %v7906_v62  ;;  %v7961_v61 = vld [vmem:[#allocation7 + $0x7c0] ss:$24 sps:$4 sm:$0xff]   ;;  %v7969_v62 = vld [vmem:[#allocation7 + $0x7f4] ss:$24 sps:$4 sm:$0xff]  }
 0x147   :  { %2182 = vmatprep.subr.bf16.mxu0 %v7909_v63  ;;  %v8018_v63 = vld [vmem:[#allocation10 + $0x360] ss:$48 sps:$4 sm:$0xff]  }
 0x149   :  { %2101 = vmatpush1.bf16.msra.mxu1 %v7904_v0  ;;  %v8026_v0 = vld [vmem:[#allocation10 + $0x3c4] ss:$48 sps:$4 sm:$0xff]  }
 0x14a   :  { %2183 = vmatpush1.bf16.msra.mxu0 %v7907_v1  ;;  %2102 = vmatprep.subr.bf16.mxu1 %v7912_v2  ;;  %v7967_v1 = vld [vmem:[#allocation7 + $0x7f0] ss:$24 sps:$4 sm:$0xff]   ;;  %v7975_v2 = vld [vmem:[#allocation7 + $0x824] ss:$24 sps:$4 sm:$0xff]  }
 0x14b   :  { %2184 = vmatprep.subr.bf16.mxu0 %v7915_v3  ;;  %v8024_v3 = vld [vmem:[#allocation10 + $0x3c0] ss:$48 sps:$4 sm:$0xff]  }
 0x14d   :  { %2103 = vmatpush1.bf16.msra.mxu1 %v7910_v4  ;;  %v8032_v4 = vld [vmem:[#allocation10 + $0x424] ss:$48 sps:$4 sm:$0xff]  }
 0x14e   :  { %2185 = vmatpush1.bf16.msra.mxu0 %v7913_v5  ;;  %2104 = vmatprep.subr.bf16.mxu1 %v7918_v8  ;;  %v7973_v5 = vld [vmem:[#allocation7 + $0x820] ss:$24 sps:$4 sm:$0xff]   ;;  %v7981_v8 = vld [vmem:[#allocation7 + $0x854] ss:$24 sps:$4 sm:$0xff]  }
 0x14f   :  { %2186 = vmatprep.subr.bf16.mxu0 %v7921_v9  ;;  %v8030_v9 = vld [vmem:[#allocation10 + $0x420] ss:$48 sps:$4 sm:$0xff]  }
 0x151   :  { %2105 = vmatpush1.bf16.msra.mxu1 %v7916_v10  ;;  %v8038_v10 = vld [vmem:[#allocation10 + $0x484] ss:$48 sps:$4 sm:$0xff]  }
 0x152   :  { %2187 = vmatpush1.bf16.msra.mxu0 %v7919_v11  ;;  %2106 = vmatprep.subr.bf16.mxu1 %v7924_v12  ;;  %v7979_v11 = vld [vmem:[#allocation7 + $0x850] ss:$24 sps:$4 sm:$0xff]  }
 0x153   :  { %2188 = vmatprep.subr.bf16.mxu0 %v7927_v13  ;;  %v8036_v12 = vld [vmem:[#allocation10 + $0x480] ss:$48 sps:$4 sm:$0xff]  }
 0x154   :  { %v7987_v13 = vld [vmem:[#allocation7 + $0x884] ss:$24 sps:$4 sm:$0xff]  }
 0x155   :  { %2107 = vmatpush1.bf16.msra.mxu1 %v7922_v15  ;;  %v8044_v15 = vld [vmem:[#allocation10 + $0x4e4] ss:$48 sps:$4 sm:$0xff]  }
 0x156   :  { %2189 = vmatpush1.bf16.msra.mxu0 %v7925_v16  ;;  %2108 = vmatprep.subr.bf16.mxu1 %v7930_v17  ;;  %v7985_v16 = vld [vmem:[#allocation7 + $0x880] ss:$24 sps:$4 sm:$0xff]  }
 0x157   :  { %2190 = vmatprep.subr.bf16.mxu0 %v7933_v18  ;;  %v8042_v17 = vld [vmem:[#allocation10 + $0x4e0] ss:$48 sps:$4 sm:$0xff]  }
 0x158   :  { %v7993_v18 = vld [vmem:[#allocation7 + $0x8b4] ss:$24 sps:$4 sm:$0xff]  }
 0x159   :  { %2109 = vmatpush1.bf16.msra.mxu1 %v7928_v19  ;;  %v8050_v19 = vld [vmem:[#allocation10 + $0x544] ss:$48 sps:$4 sm:$0xff]  }
 0x15a   :  { %2191 = vmatpush1.bf16.msra.mxu0 %v7931_v20  ;;  %5780 = vmatprep.subr.bf16.mxu1 %v7966_v22  ;;  %v7991_v20 = vld [vmem:[#allocation7 + $0x8b0] ss:$24 sps:$4 sm:$0xff]   ;;  %v7999_v22 = vld [vmem:[#allocation7 + $0x8e4] ss:$24 sps:$4 sm:$0xff]  }
 0x15b   :  { %2201 = vmatprep.subr.bf16.mxu0 %v7936_v21  ;;  %v8048_v21 = vld [vmem:[#allocation10 + $0x540] ss:$48 sps:$4 sm:$0xff]  }
 0x15c   :  { %2111 = vmatmul.mubr.bf16.vlgmr.msra.gmra.mrb[4].mxu1 %v9184_v14 }
 0x15d   :  { %2193 = vmatmul.mubr.bf16.vlgmr.msra.gmra.mrb[4].mxu0 %v9170_v7  ;;  %5781 = vmatpush1.bf16.msra.mxu1 %v7964_v24  ;;  %v7943_v7 = vld [vmem:[#allocation7 + $0x6a0] ss:$24 sps:$4 sm:$0xff]  }
 0x15e   :  { %2202 = vmatpush1.bf16.msra.mxu0 %v7934_v23  ;;  %5782 = vmatprep.subr.bf16.mxu1 %v7972_v26  ;;  %v8056_v23 = vld [vmem:[#allocation10 + $0x5a4] ss:$48 sps:$4 sm:$0xff]   ;;  %v8005_v26 = vld [vmem:[#allocation10 + $0xc] ss:$48 sps:$4 sm:$0xff]  }
 0x15f   :  { %2203 = vmatprep.subr.bf16.mxu0 %v7939_v25  ;;  %2233 = vmatprep.mubr.bf16.mxu0 %v9179_v34  ;;  %v7988_v34 = vld [vmem:[#allocation10 + $0x180] ss:$48 sps:$4 sm:$0xff]  }
 0x160   :  { %v7997_v24 = vld [vmem:[#allocation7 + $0x8e0] ss:$24 sps:$4 sm:$0xff]  }
 0x161   :  { %5783 = vmatpush1.bf16.msra.mxu1 %v7970_v28  ;;  %v8054_v25 = vld [vmem:[#allocation10 + $0x5a0] ss:$48 sps:$4 sm:$0xff]   ;;  %v8003_v28 = vld [vmem:[#allocation10 + $0x8] ss:$48 sps:$4 sm:$0xff]  }
 0x162   :  { %2204 = vmatpush1.bf16.msra.mxu0 %v7937_v27  ;;  %5784 = vmatprep.subr.bf16.mxu1 %v7978_v30  ;;  %v8080_v27 = vld [vmem:[#allocation10 + $0x604] ss:$48 sps:$4 sm:$0xff]   ;;  %v8009_v30 = vld [vmem:[#allocation10 + $0x68] ss:$48 sps:$4 sm:$0xff]  }
 0x163   :  { %2205 = vmatprep.subr.bf16.mxu0 %v7942_v29  ;;  %v8011_v29 = vld [vmem:[#allocation10 + $0x6c] ss:$48 sps:$4 sm:$0xff]  }
 0x165   :  { %5785 = vmatpush1.bf16.msra.mxu1 %v7976_v47  ;;  %v8015_v47 = vld [vmem:[#allocation10 + $0xc8] ss:$48 sps:$4 sm:$0xff]  }
 0x166   :  { %2206 = vmatpush1.bf16.msra.mxu0 %v7940_v6  ;;  %5786 = vmatprep.subr.bf16.mxu1 %v7984_v32  ;;  %v8017_v6 = vld [vmem:[#allocation10 + $0xcc] ss:$48 sps:$4 sm:$0xff]  }
 0x167   :  { %2207 = vmatprep.subr.bf16.mxu0 %v7945_v31  ;;  %v382_v31 = vlaneseq  ;;  %v8023_v32 = vld [vmem:[#allocation10 + $0x12c] ss:$48 sps:$4 sm:$0xff]  }
 0x169   :  { %5787 = vmatpush1.bf16.msra.mxu1 %v7982_v35  ;;  %v8029_v35 = vld [vmem:[#allocation10 + $0x18c] ss:$48 sps:$4 sm:$0xff]  }
 0x16a   :  { %2208 = vmatpush1.bf16.msra.mxu0 %v7943_v7  ;;  %5788 = vmatprep.subr.bf16.mxu1 %v7990_v36  ;;  %v9202_v7 = vshrl.u32 %v382_v31, 7  ;;  %v9204_v36 = vld [vmem:[#allocation9] sm:$0x3f] }
 0x16b   :  { %2209 = vmatprep.subr.bf16.mxu0 %v7948_v33  ;;  %v8021_v33 = vld [vmem:[#allocation10 + $0x128] ss:$48 sps:$4 sm:$0xff]  }
 0x16c   :  { %v8087_v31 = vld [vmem:[#allocation10 + $0x668] ss:$48 sps:$4 sm:$0xff]  }
 0x16d   :  { %5789 = vmatpush1.bf16.msra.mxu1 %v7988_v34  ;;  %v8035_v34 = vld [vmem:[#allocation10 + $0x1ec] ss:$48 sps:$4 sm:$0xff]  }
 0x16e   :  { %2210 = vmatpush1.bf16.msra.mxu0 %v7946_v51  ;;  %5790 = vmatprep.subr.bf16.mxu1 %v7996_v38  ;;  %v9207_v51 = vsub.s32 0, %v9202_v7 }
 0x16f   :  { %2211 = vmatprep.subr.bf16.mxu0 %v7951_v37  ;;  %v9197_v43 = vpop.f32.mrb[0].mxu1  ;;  %v8027_v37 = vld [vmem:[#allocation10 + $0x188] ss:$48 sps:$4 sm:$0xff]  }
 0x170   :  { %v9199_v44 = vpop.f32.mrb[1].mxu1  ;;  %v385_v38 = vrot.slane %v9204_v36, %v9207_v51 }
 0x171   :  { %v1911_v45 = vpop.f32.mrb[2].mxu1  ;;  %5791 = vmatpush1.bf16.msra.mxu1 %v7994_v41 }
 0x172   :  { %2212 = vmatpush1.bf16.msra.mxu0 %v7949_v39  ;;  %v1912_v49 = vpop.f32.mrb[3].mxu1  ;;  %5792 = vmatprep.subr.bf16.mxu1 %v8002_v42  ;;  %v1908_v41 = vadd.f32 %v9197_v43, %v385_v38  ;;  %v8041_v42 = vld [vmem:[#allocation10 + $0x24c] ss:$48 sps:$4 sm:$0xff]   ;;  %v8132_v38 = vld [vmem:[#allocation10 + $0x960] ss:$48 sps:$4 sm:$0xff]  }
 0x173   :  { %2213 = vmatprep.subr.bf16.mxu0 %v7954_v40  ;;  %v8033_v40 = vld [vmem:[#allocation10 + $0x1e8] ss:$48 sps:$4 sm:$0xff]   ;;  %v8053_v43 = vld [vmem:[#allocation10 + $0x30c] ss:$48 sps:$4 sm:$0xff]  }
 0x175   :  { %5793 = vmatpush1.bf16.msra.mxu1 %v8000_v48  ;;  %v8039_v48 = vld [vmem:[#allocation10 + $0x248] ss:$48 sps:$4 sm:$0xff]  }
 0x176   :  { %2214 = vmatpush1.bf16.msra.mxu0 %v7952_v46  ;;  %5794 = vmatprep.subr.bf16.mxu1 %v8008_v52 }
 0x177   :  { %2215 = vmatprep.subr.bf16.mxu0 %v7957_v50 }
 0x179   :  { %5795 = vmatpush1.bf16.msra.mxu1 %v8006_v55  ;;  %v8047_v55 = vld [vmem:[#allocation10 + $0x2ac] ss:$48 sps:$4 sm:$0xff]  }
 0x17a   :  { %2216 = vmatpush1.bf16.msra.mxu0 %v7955_v53  ;;  %5796 = vmatprep.subr.bf16.mxu1 %v8014_v56  ;;  %v8045_v56 = vld [vmem:[#allocation10 + $0x2a8] ss:$48 sps:$4 sm:$0xff]  }
 0x17b   :  { %2217 = vmatprep.subr.bf16.mxu0 %v7960_v54 }
 0x17d   :  { %5797 = vmatpush1.bf16.msra.mxu1 %v8012_v59 }
 0x17e   :  { %2218 = vmatpush1.bf16.msra.mxu0 %v7958_v57  ;;  %5798 = vmatprep.subr.bf16.mxu1 %v8020_v60  ;;  %v8051_v57 = vld [vmem:[#allocation10 + $0x308] ss:$48 sps:$4 sm:$0xff]  }
 0x17f   :  { %2219 = vmatprep.subr.bf16.mxu0 %v7963_v58  ;;  %v8057_v58 = vld [vmem:[#allocation10 + $0x368] ss:$48 sps:$4 sm:$0xff]  }
 0x181   :  { %5799 = vmatpush1.bf16.msra.mxu1 %v8018_v63  ;;  %v8078_v63 = vld [vmem:[#allocation10 + $0x600] ss:$48 sps:$4 sm:$0xff]  }
 0x182   :  { %2220 = vmatpush1.bf16.msra.mxu0 %v7961_v61  ;;  %5800 = vmatprep.subr.bf16.mxu1 %v8026_v0 }
 0x183   :  { %2221 = vmatprep.subr.bf16.mxu0 %v7969_v62  ;;  %v8062_v62 = vld [vmem:[#allocation10 + $0x3cc] ss:$48 sps:$4 sm:$0xff]  }
 0x185   :  { %5801 = vmatpush1.bf16.msra.mxu1 %v8024_v3  ;;  %v8065_v3 = vld [vmem:[#allocation10 + $0x42c] ss:$48 sps:$4 sm:$0xff]  }
 0x186   :  { %2222 = vmatpush1.bf16.msra.mxu0 %v7967_v1  ;;  %5802 = vmatprep.subr.bf16.mxu1 %v8032_v4  ;;  %v8060_v1 = vld [vmem:[#allocation10 + $0x3c8] ss:$48 sps:$4 sm:$0xff]   ;;  %v8084_v4 = vld [vmem:[#allocation10 + $0x660] ss:$48 sps:$4 sm:$0xff]  }
 0x187   :  { %2223 = vmatprep.subr.bf16.mxu0 %v7975_v2  ;;  %v8086_v2 = vld [vmem:[#allocation10 + $0x664] ss:$48 sps:$4 sm:$0xff]  }
 0x189   :  { %5803 = vmatpush1.bf16.msra.mxu1 %v8030_v9  ;;  %v8068_v9 = vld [vmem:[#allocation10 + $0x48c] ss:$48 sps:$4 sm:$0xff]  }
 0x18a   :  { %2224 = vmatpush1.bf16.msra.mxu0 %v7973_v5  ;;  %5804 = vmatprep.subr.bf16.mxu1 %v8038_v10  ;;  %v8063_v5 = vld [vmem:[#allocation10 + $0x428] ss:$48 sps:$4 sm:$0xff]   ;;  %v8090_v10 = vld [vmem:[#allocation10 + $0x6c0] ss:$48 sps:$4 sm:$0xff]  }
 0x18b   :  { %2225 = vmatprep.subr.bf16.mxu0 %v7981_v8  ;;  %v8092_v8 = vld [vmem:[#allocation10 + $0x6c4] ss:$48 sps:$4 sm:$0xff]  }
 0x18d   :  { %5805 = vmatpush1.bf16.msra.mxu1 %v8036_v12  ;;  %v8098_v12 = vld [vmem:[#allocation10 + $0x724] ss:$48 sps:$4 sm:$0xff]  }
 0x18e   :  { %2226 = vmatpush1.bf16.msra.mxu0 %v7979_v11  ;;  %5806 = vmatprep.subr.bf16.mxu1 %v8044_v15  ;;  %v8066_v11 = vld [vmem:[#allocation10 + $0x488] ss:$48 sps:$4 sm:$0xff]   ;;  %v8096_v15 = vld [vmem:[#allocation10 + $0x720] ss:$48 sps:$4 sm:$0xff]  }
 0x18f   :  { %2227 = vmatprep.subr.bf16.mxu0 %v7987_v13  ;;  %v8071_v13 = vld [vmem:[#allocation10 + $0x4ec] ss:$48 sps:$4 sm:$0xff]  }
 0x191   :  { %5807 = vmatpush1.bf16.msra.mxu1 %v8042_v17  ;;  %v8104_v17 = vld [vmem:[#allocation10 + $0x784] ss:$48 sps:$4 sm:$0xff]  }
 0x192   :  { %2228 = vmatpush1.bf16.msra.mxu0 %v7985_v16  ;;  %5808 = vmatprep.subr.bf16.mxu1 %v8050_v19  ;;  %v8069_v16 = vld [vmem:[#allocation10 + $0x4e8] ss:$48 sps:$4 sm:$0xff]   ;;  %v8102_v19 = vld [vmem:[#allocation10 + $0x780] ss:$48 sps:$4 sm:$0xff]  }
 0x193   :  { %2229 = vmatprep.subr.bf16.mxu0 %v7993_v18  ;;  %v8074_v18 = vld [vmem:[#allocation10 + $0x54c] ss:$48 sps:$4 sm:$0xff]  }
 0x195   :  { %5809 = vmatpush1.bf16.msra.mxu1 %v8048_v21  ;;  %v8110_v21 = vld [vmem:[#allocation10 + $0x7e4] ss:$48 sps:$4 sm:$0xff]  }
 0x196   :  { %2230 = vmatpush1.bf16.msra.mxu0 %v7991_v20  ;;  %5810 = vmatprep.subr.bf16.mxu1 %v8056_v23  ;;  %v8072_v20 = vld [vmem:[#allocation10 + $0x548] ss:$48 sps:$4 sm:$0xff]   ;;  %v8108_v23 = vld [vmem:[#allocation10 + $0x7e0] ss:$48 sps:$4 sm:$0xff]  }
 0x197   :  { %2231 = vmatprep.subr.bf16.mxu0 %v7999_v22  ;;  %v8077_v22 = vld [vmem:[#allocation10 + $0x5ac] ss:$48 sps:$4 sm:$0xff]  }
 0x199   :  { %5811 = vmatpush1.bf16.msra.mxu1 %v8054_v25  ;;  %v8116_v25 = vld [vmem:[#allocation10 + $0x844] ss:$48 sps:$4 sm:$0xff]  }
 0x19a   :  { %2232 = vmatpush1.bf16.msra.mxu0 %v7997_v24  ;;  %5821 = vmatprep.subr.bf16.mxu1 %v8080_v27  ;;  %v8075_v24 = vld [vmem:[#allocation10 + $0x5a8] ss:$48 sps:$4 sm:$0xff]   ;;  %v8114_v27 = vld [vmem:[#allocation10 + $0x840] ss:$48 sps:$4 sm:$0xff]  }
 0x19b   :  { %5903 = vmatprep.subr.bf16.mxu0 %v8005_v26  ;;  %v8083_v26 = vld [vmem:[#allocation10 + $0x60c] ss:$48 sps:$4 sm:$0xff]  }
 0x19d   :  { %2234 = vmatmul.mubr.bf16.vlgmr.msra.gmra.mrb[4].mxu0 %v9184_v14  ;;  %v9210_v14 = vsub.s32 1, %v9202_v7 }
 0x19e   :  { %5904 = vmatpush1.bf16.msra.mxu0 %v8003_v28  ;;  %v8081_v28 = vld [vmem:[#allocation10 + $0x608] ss:$48 sps:$4 sm:$0xff]  }
 0x19f   :  { %5905 = vmatprep.subr.bf16.mxu0 %v8011_v29  ;;  %v389_v39 = vrot.slane %v9204_v36, %v9210_v14  ;;  %v8122_v29 = vld [vmem:[#allocation10 + $0x8a4] ss:$48 sps:$4 sm:$0xff]  }
 0x1a1   :  { %v1910_v45 = vadd.f32 %v9199_v44, %v389_v39  ;;  %v8059_v44 = vld [vmem:[#allocation10 + $0x36c] ss:$48 sps:$4 sm:$0xff]   ;;  %v8099_v39 = vld [vmem:[#allocation10 + $0x728] ss:$48 sps:$4 sm:$0xff]  }
 0x1a2   :  { %5906 = vmatpush1.bf16.msra.mxu0 %v8009_v30  ;;  %v8089_v30 = vld [vmem:[#allocation10 + $0x66c] ss:$48 sps:$4 sm:$0xff]  }
 0x1a3   :  { %5907 = vmatprep.subr.bf16.mxu0 %v8017_v6  ;;  %v8120_v6 = vld [vmem:[#allocation10 + $0x8a0] ss:$48 sps:$4 sm:$0xff]  }
 0x1a6   :  { %5908 = vmatpush1.bf16.msra.mxu0 %v8015_v47  ;;  %v8128_v47 = vld [vmem:[#allocation10 + $0x904] ss:$48 sps:$4 sm:$0xff]  }
 0x1a7   :  { %5909 = vmatprep.subr.bf16.mxu0 %v8023_v32  ;;  %v8095_v32 = vld [vmem:[#allocation10 + $0x6cc] ss:$48 sps:$4 sm:$0xff]  }
 0x1aa   :  { %5910 = vmatpush1.bf16.msra.mxu0 %v8021_v33  ;;  %v8126_v33 = vld [vmem:[#allocation10 + $0x900] ss:$48 sps:$4 sm:$0xff]  }
 0x1ab   :  { %5911 = vmatprep.subr.bf16.mxu0 %v8029_v35  ;;  %v8093_v35 = vld [vmem:[#allocation10 + $0x6c8] ss:$48 sps:$4 sm:$0xff]  }
 0x1ae   :  { %5912 = vmatpush1.bf16.msra.mxu0 %v8027_v37  ;;  %v8134_v37 = vld [vmem:[#allocation10 + $0x964] ss:$48 sps:$4 sm:$0xff]  }
 0x1af   :  { %5913 = vmatprep.subr.bf16.mxu0 %v8035_v34  ;;  %v8101_v34 = vld [vmem:[#allocation10 + $0x72c] ss:$48 sps:$4 sm:$0xff]  }
 0x1b0   :  { %v1989_v46 = vpop.f32.mrb[0].mxu0 }
 0x1b1   :  { %v7445_v49 = vadd.f32 %v1989_v46, %v1908_v41  ;;  %v1991_v50 = vpop.f32.mrb[1].mxu0  ;;  %v8107_v41 = vld [vmem:[#allocation10 + $0x78c] ss:$48 sps:$4 sm:$0xff]   ;;  %v8146_v46 = vld [vmem:[#allocation10 + $0xa24] ss:$48 sps:$4 sm:$0xff]  }
 0x1b2   :  { %v7447_v52 = vadd.f32 %v1991_v50, %v1910_v45  ;;  %v1993_v53 = vpop.f32.mrb[2].mxu0  ;;  %5914 = vmatpush1.bf16.msra.mxu0 %v8033_v40  ;;  %v8140_v40 = vld [vmem:[#allocation10 + $0x9c4] ss:$48 sps:$4 sm:$0xff]   ;;  %v8105_v45 = vld [vmem:[#allocation10 + $0x788] ss:$48 sps:$4 sm:$0xff]  }
 0x1b3   :  { %8846 = vtanh.f32 %v7445_v49  ;;  %v1994_v54 = vpop.f32.mrb[3].mxu0  ;;  %5915 = vmatprep.subr.bf16.mxu0 %v8041_v42  ;;  %v8138_v42 = vld [vmem:[#allocation10 + $0x9c0] ss:$48 sps:$4 sm:$0xff]   ;;  %v8111_v50 = vld [vmem:[#allocation10 + $0x7e8] ss:$48 sps:$4 sm:$0xff]  }
 0x1b4   :  { %8848 = vtanh.f32 %v7447_v52  ;;  %v8144_v49 = vld [vmem:[#allocation10 + $0xa20] ss:$48 sps:$4 sm:$0xff]   ;;  %v8152_v52 = vld [vmem:[#allocation10 + $0xa84] ss:$48 sps:$4 sm:$0xff]   ;;  %v8119_v53 = vld [vmem:[#allocation10 + $0x84c] ss:$48 sps:$4 sm:$0xff]  }
 0x1b5   :  { %v8150_v54 = vld [vmem:[#allocation10 + $0xa80] ss:$48 sps:$4 sm:$0xff]  }
 0x1b6   :  { %5916 = vmatpush1.bf16.msra.mxu0 %v8039_v48  ;;  %v8113_v48 = vld [vmem:[#allocation10 + $0x7ec] ss:$48 sps:$4 sm:$0xff]  }
 0x1b7   :  { %5917 = vmatprep.subr.bf16.mxu0 %v8047_v55  ;;  %v8117_v55 = vld [vmem:[#allocation10 + $0x848] ss:$48 sps:$4 sm:$0xff]  }
 0x1ba   :  { %5918 = vmatpush1.bf16.msra.mxu0 %v8045_v56  ;;  %v8158_v56 = vld [vmem:[#allocation10 + $0xae4] ss:$48 sps:$4 sm:$0xff]  }
 0x1bb   :  { %5919 = vmatprep.subr.bf16.mxu0 %v8053_v43  ;;  %v8125_v43 = vld [vmem:[#allocation10 + $0x8ac] ss:$48 sps:$4 sm:$0xff]  }
 0x1bd   :  { %v8847_v59 = vpop.eup %8846 }
 0x1be   :  { %v8849_v60 = vpop.eup %8848  ;;  %2248 = vst [vmem:[#allocation16] sm:$0xff] %v8847_v59  ;;  %5920 = vmatpush1.bf16.msra.mxu0 %v8051_v57  ;;  %v9220_v0 = vpack.c.bf16 %v8847_v59, %v8847_v59  ;;  %v8156_v57 = vld [vmem:[#allocation10 + $0xae0] ss:$48 sps:$4 sm:$0xff]   ;;  %v8131_v59 = vld [vmem:[#allocation10 + $0x90c] ss:$48 sps:$4 sm:$0xff]  }
 0x1bf   :  { %2249 = vst [vmem:[#allocation16 + $0x8] sm:$0xff] %v8849_v60  ;;  %v9218_v61 = vpack.c.bf16 %v8849_v60, %v8849_v60  ;;  %5921 = vmatprep.subr.bf16.mxu0 %v8059_v44  ;;  %v8123_v44 = vld [vmem:[#allocation10 + $0x8a8] ss:$48 sps:$4 sm:$0xff]   ;;  %v8162_v60 = vld [vmem:[#allocation10 + $0xb40] ss:$48 sps:$4 sm:$0xff]  }
 0x1c1   :  { %5812 = vmatprep.mubr.bf16.mxu1 %v9218_v61  ;;  %5935 = vmatprep.mubr.bf16.mxu0 %v9218_v61 }
 0x1c2   :  { %5813 = vmatmul.mubr.bf16.vlgmr.msra.gmra.mrb[8].mxu1 %v9220_v0  ;;  %5922 = vmatpush1.bf16.msra.mxu0 %v8057_v58  ;;  %v8164_v58 = vld [vmem:[#allocation10 + $0xb44] ss:$48 sps:$4 sm:$0xff]  }
 0x1c3   :  { %5923 = vmatprep.subr.bf16.mxu0 %v8062_v62  ;;  %5822 = vmatpush1.bf16.msra.mxu1 %v8078_v63  ;;  %v8129_v62 = vld [vmem:[#allocation10 + $0x908] ss:$48 sps:$4 sm:$0xff]   ;;  %v8170_v63 = vld [vmem:[#allocation10 + $0xba4] ss:$48 sps:$4 sm:$0xff]  }
 0x1c4   :  { %5823 = vmatprep.subr.bf16.mxu1 %v8086_v2  ;;  %v8168_v2 = vld [vmem:[#allocation10 + $0xba0] ss:$48 sps:$4 sm:$0xff]  }
 0x1c6   :  { %5924 = vmatpush1.bf16.msra.mxu0 %v8060_v1  ;;  %v8137_v1 = vld [vmem:[#allocation10 + $0x96c] ss:$48 sps:$4 sm:$0xff]  }
 0x1c7   :  { %5925 = vmatprep.subr.bf16.mxu0 %v8065_v3  ;;  %5824 = vmatpush1.bf16.msra.mxu1 %v8084_v4  ;;  %v8176_v3 = vld [vmem:[#allocation10 + $0xc04] ss:$48 sps:$4 sm:$0xff]   ;;  %v8135_v4 = vld [vmem:[#allocation10 + $0x968] ss:$48 sps:$4 sm:$0xff]  }
 0x1c8   :  { %5825 = vmatprep.subr.bf16.mxu1 %v8092_v8  ;;  %v8141_v8 = vld [vmem:[#allocation10 + $0x9c8] ss:$48 sps:$4 sm:$0xff]  }
 0x1ca   :  { %5926 = vmatpush1.bf16.msra.mxu0 %v8063_v5  ;;  %v8143_v5 = vld [vmem:[#allocation10 + $0x9cc] ss:$48 sps:$4 sm:$0xff]  }
 0x1cb   :  { %5927 = vmatprep.subr.bf16.mxu0 %v8068_v9  ;;  %5826 = vmatpush1.bf16.msra.mxu1 %v8090_v10  ;;  %v8149_v9 = vld [vmem:[#allocation10 + $0xa2c] ss:$48 sps:$4 sm:$0xff]   ;;  %v8147_v10 = vld [vmem:[#allocation10 + $0xa28] ss:$48 sps:$4 sm:$0xff]  }
 0x1cc   :  { %5827 = vmatprep.subr.bf16.mxu1 %v8098_v12  ;;  %v8153_v12 = vld [vmem:[#allocation10 + $0xa88] ss:$48 sps:$4 sm:$0xff]  }
 0x1ce   :  { %5928 = vmatpush1.bf16.msra.mxu0 %v8066_v11  ;;  %v8155_v11 = vld [vmem:[#allocation10 + $0xa8c] ss:$48 sps:$4 sm:$0xff]  }
 0x1cf   :  { %5929 = vmatprep.subr.bf16.mxu0 %v8071_v13  ;;  %5828 = vmatpush1.bf16.msra.mxu1 %v8096_v15  ;;  %v8161_v13 = vld [vmem:[#allocation10 + $0xaec] ss:$48 sps:$4 sm:$0xff]   ;;  %v8159_v15 = vld [vmem:[#allocation10 + $0xae8] ss:$48 sps:$4 sm:$0xff]  }
 0x1d0   :  { %5829 = vmatprep.subr.bf16.mxu1 %v8104_v17  ;;  %v8165_v17 = vld [vmem:[#allocation10 + $0xb48] ss:$48 sps:$4 sm:$0xff]  }
 0x1d2   :  { %5930 = vmatpush1.bf16.msra.mxu0 %v8069_v16  ;;  %v8167_v16 = vld [vmem:[#allocation10 + $0xb4c] ss:$48 sps:$4 sm:$0xff]  }
 0x1d3   :  { %5931 = vmatprep.subr.bf16.mxu0 %v8074_v18  ;;  %5830 = vmatpush1.bf16.msra.mxu1 %v8102_v19  ;;  %v8173_v18 = vld [vmem:[#allocation10 + $0xbac] ss:$48 sps:$4 sm:$0xff]   ;;  %v8171_v19 = vld [vmem:[#allocation10 + $0xba8] ss:$48 sps:$4 sm:$0xff]  }
 0x1d4   :  { %5831 = vmatprep.subr.bf16.mxu1 %v8110_v21  ;;  %v9227_v21 = vsub.s32 2, %v9202_v7 }
 0x1d6   :  { %5932 = vmatpush1.bf16.msra.mxu0 %v8072_v20  ;;  %v8179_v20 = vld [vmem:[#allocation10 + $0xc0c] ss:$48 sps:$4 sm:$0xff]  }
 0x1d7   :  { %5933 = vmatprep.subr.bf16.mxu0 %v8077_v22  ;;  %5832 = vmatpush1.bf16.msra.mxu1 %v8108_v23  ;;  %v9230_v22 = vsub.s32 3, %v9202_v7  ;;  %v393_v23 = vrot.slane %v9204_v36, %v9227_v21 }
 0x1d8   :  { %5833 = vmatprep.subr.bf16.mxu1 %v8116_v25 }
 0x1da   :  { %5934 = vmatpush1.bf16.msra.mxu0 %v8075_v24  ;;  %v397_v24 = vrot.slane %v9204_v36, %v9230_v22  ;;  %v8185_v36 = vld [vmem:[#allocation10 + $0xc6c] ss:$48 sps:$4 sm:$0xff]  }
 0x1db   :  { %5944 = vmatprep.subr.bf16.mxu0 %v8083_v26  ;;  %5834 = vmatpush1.bf16.msra.mxu1 %v8114_v27 }
 0x1dc   :  { %5835 = vmatprep.subr.bf16.mxu1 %v8122_v29 }
 0x1dd   :  { %5936 = vmatmul.mubr.bf16.vlgmr.msra.gmra.mrb[8].mxu0 %v9220_v0 }
 0x1de   :  { %5945 = vmatpush1.bf16.msra.mxu0 %v8081_v28 }
 0x1df   :  { %5946 = vmatprep.subr.bf16.mxu0 %v8089_v30  ;;  %5836 = vmatpush1.bf16.msra.mxu1 %v8120_v6 }
 0x1e0   :  { %5837 = vmatprep.subr.bf16.mxu1 %v8128_v47 }
 0x1e2   :  { %5947 = vmatpush1.bf16.msra.mxu0 %v8087_v31 }
 0x1e3   :  { %5948 = vmatprep.subr.bf16.mxu0 %v8095_v32  ;;  %5838 = vmatpush1.bf16.msra.mxu1 %v8126_v33  ;;  %v8174_v32 = vld [vmem:[#allocation10 + $0xc00] ss:$48 sps:$4 sm:$0xff]   ;;  %v8177_v33 = vld [vmem:[#allocation10 + $0xc08] ss:$48 sps:$4 sm:$0xff]  }
 0x1e4   :  { %5839 = vmatprep.subr.bf16.mxu1 %v8134_v37  ;;  %v8182_v37 = vld [vmem:[#allocation10 + $0xc64] ss:$48 sps:$4 sm:$0xff]  }
 0x1e6   :  { %5949 = vmatpush1.bf16.msra.mxu0 %v8093_v35 }
 0x1e7   :  { %5950 = vmatprep.subr.bf16.mxu0 %v8101_v34  ;;  %5840 = vmatpush1.bf16.msra.mxu1 %v8132_v38  ;;  %v8180_v34 = vld [vmem:[#allocation10 + $0xc60] ss:$48 sps:$4 sm:$0xff]   ;;  %v8183_v38 = vld [vmem:[#allocation10 + $0xc68] ss:$48 sps:$4 sm:$0xff]  }
 0x1e8   :  { %5841 = vmatprep.subr.bf16.mxu1 %v8140_v40  ;;  %v8191_v40 = vld [vmem:[#allocation10 + $0xccc] ss:$48 sps:$4 sm:$0xff]  }
 0x1ea   :  { %5951 = vmatpush1.bf16.msra.mxu0 %v8099_v39  ;;  %v8188_v39 = vld [vmem:[#allocation10 + $0xcc4] ss:$48 sps:$4 sm:$0xff]  }
 0x1eb   :  { %5952 = vmatprep.subr.bf16.mxu0 %v8107_v41  ;;  %5842 = vmatpush1.bf16.msra.mxu1 %v8138_v42  ;;  %v8186_v41 = vld [vmem:[#allocation10 + $0xcc0] ss:$48 sps:$4 sm:$0xff]   ;;  %v8189_v42 = vld [vmem:[#allocation10 + $0xcc8] ss:$48 sps:$4 sm:$0xff]  }
 0x1ec   :  { %5843 = vmatprep.subr.bf16.mxu1 %v8146_v46  ;;  %v8197_v46 = vld [vmem:[#allocation10 + $0xd2c] ss:$48 sps:$4 sm:$0xff]  }
 0x1ee   :  { %5953 = vmatpush1.bf16.msra.mxu0 %v8105_v45  ;;  %v8194_v45 = vld [vmem:[#allocation10 + $0xd24] ss:$48 sps:$4 sm:$0xff]  }
 0x1ef   :  { %5954 = vmatprep.subr.bf16.mxu0 %v8113_v48  ;;  %5844 = vmatpush1.bf16.msra.mxu1 %v8144_v49  ;;  %v8192_v48 = vld [vmem:[#allocation10 + $0xd20] ss:$48 sps:$4 sm:$0xff]   ;;  %v8195_v49 = vld [vmem:[#allocation10 + $0xd28] ss:$48 sps:$4 sm:$0xff]  }
 0x1f0   :  { %5845 = vmatprep.subr.bf16.mxu1 %v8152_v52  ;;  %v8203_v52 = vld [vmem:[#allocation10 + $0xd8c] ss:$48 sps:$4 sm:$0xff]  }
 0x1f2   :  { %5955 = vmatpush1.bf16.msra.mxu0 %v8111_v50  ;;  %v8200_v50 = vld [vmem:[#allocation10 + $0xd84] ss:$48 sps:$4 sm:$0xff]  }
 0x1f3   :  { %5956 = vmatprep.subr.bf16.mxu0 %v8119_v53  ;;  %5846 = vmatpush1.bf16.msra.mxu1 %v8150_v54  ;;  %v8198_v53 = vld [vmem:[#allocation10 + $0xd80] ss:$48 sps:$4 sm:$0xff]   ;;  %v8201_v54 = vld [vmem:[#allocation10 + $0xd88] ss:$48 sps:$4 sm:$0xff]  }
 0x1f4   :  { %5847 = vmatprep.subr.bf16.mxu1 %v8158_v56  ;;  %v8209_v56 = vld [vmem:[#allocation10 + $0xdec] ss:$48 sps:$4 sm:$0xff]  }
 0x1f6   :  { %5957 = vmatpush1.bf16.msra.mxu0 %v8117_v55  ;;  %v8206_v55 = vld [vmem:[#allocation10 + $0xde4] ss:$48 sps:$4 sm:$0xff]  }
 0x1f7   :  { %5958 = vmatprep.subr.bf16.mxu0 %v8125_v43  ;;  %5848 = vmatpush1.bf16.msra.mxu1 %v8156_v57  ;;  %v8204_v43 = vld [vmem:[#allocation10 + $0xde0] ss:$48 sps:$4 sm:$0xff]   ;;  %v8207_v57 = vld [vmem:[#allocation10 + $0xde8] ss:$48 sps:$4 sm:$0xff]  }
 0x1f8   :  { %5849 = vmatprep.subr.bf16.mxu1 %v8164_v58  ;;  %v8215_v58 = vld [vmem:[#allocation10 + $0xe4c] ss:$48 sps:$4 sm:$0xff]  }
 0x1fa   :  { %5959 = vmatpush1.bf16.msra.mxu0 %v8123_v44  ;;  %v8212_v44 = vld [vmem:[#allocation10 + $0xe44] ss:$48 sps:$4 sm:$0xff]  }
 0x1fb   :  { %5960 = vmatprep.subr.bf16.mxu0 %v8131_v59  ;;  %5850 = vmatpush1.bf16.msra.mxu1 %v8162_v60  ;;  %v8210_v59 = vld [vmem:[#allocation10 + $0xe40] ss:$48 sps:$4 sm:$0xff]   ;;  %v8213_v60 = vld [vmem:[#allocation10 + $0xe48] ss:$48 sps:$4 sm:$0xff]  }
 0x1fc   :  { %5851 = vmatprep.subr.bf16.mxu1 %v8170_v63  ;;  %v8221_v63 = vld [vmem:[#allocation10 + $0xeac] ss:$48 sps:$4 sm:$0xff]  }
 0x1fe   :  { %5961 = vmatpush1.bf16.msra.mxu0 %v8129_v62  ;;  %v8218_v62 = vld [vmem:[#allocation10 + $0xea4] ss:$48 sps:$4 sm:$0xff]  }
 0x1ff   :  { %5962 = vmatprep.subr.bf16.mxu0 %v8137_v1  ;;  %5852 = vmatpush1.bf16.msra.mxu1 %v8168_v2  ;;  %v8216_v1 = vld [vmem:[#allocation10 + $0xea0] ss:$48 sps:$4 sm:$0xff]   ;;  %v8219_v2 = vld [vmem:[#allocation10 + $0xea8] ss:$48 sps:$4 sm:$0xff]  }
 0x200   :  { %5862 = vmatprep.subr.bf16.mxu1 %v8176_v3  ;;  %v8224_v3 = vld [vmem:[#allocation10 + $0xf04] ss:$48 sps:$4 sm:$0xff]  }
 0x202   :  { %5963 = vmatpush1.bf16.msra.mxu0 %v8135_v4  ;;  %v8227_v4 = vld [vmem:[#allocation10 + $0xf0c] ss:$48 sps:$4 sm:$0xff]  }
 0x203   :  { %5964 = vmatprep.subr.bf16.mxu0 %v8143_v5  ;;  %v8222_v5 = vld [vmem:[#allocation10 + $0xf00] ss:$48 sps:$4 sm:$0xff]  }
 0x206   :  { %5965 = vmatpush1.bf16.msra.mxu0 %v8141_v8  ;;  %v8225_v8 = vld [vmem:[#allocation10 + $0xf08] ss:$48 sps:$4 sm:$0xff]  }
 0x207   :  { %5966 = vmatprep.subr.bf16.mxu0 %v8149_v9  ;;  %v8230_v9 = vld [vmem:[#allocation10 + $0xf64] ss:$48 sps:$4 sm:$0xff]  }
 0x20a   :  { %5967 = vmatpush1.bf16.msra.mxu0 %v8147_v10  ;;  %v8233_v10 = vld [vmem:[#allocation10 + $0xf6c] ss:$48 sps:$4 sm:$0xff]  }
 0x20b   :  { %5968 = vmatprep.subr.bf16.mxu0 %v8155_v11  ;;  %v8228_v11 = vld [vmem:[#allocation10 + $0xf60] ss:$48 sps:$4 sm:$0xff]  }
 0x20e   :  { %5969 = vmatpush1.bf16.msra.mxu0 %v8153_v12  ;;  %v8231_v12 = vld [vmem:[#allocation10 + $0xf68] ss:$48 sps:$4 sm:$0xff]  }
 0x20f   :  { %5970 = vmatprep.subr.bf16.mxu0 %v8161_v13  ;;  %v8236_v13 = vld [vmem:[#allocation10 + $0xfc4] ss:$48 sps:$4 sm:$0xff]  }
 0x212   :  { %5971 = vmatpush1.bf16.msra.mxu0 %v8159_v15  ;;  %v8239_v15 = vld [vmem:[#allocation10 + $0xfcc] ss:$48 sps:$4 sm:$0xff]  }
 0x213   :  { %5972 = vmatprep.subr.bf16.mxu0 %v8167_v16  ;;  %v8234_v16 = vld [vmem:[#allocation10 + $0xfc0] ss:$48 sps:$4 sm:$0xff]  }
 0x216   :  { %5973 = vmatpush1.bf16.msra.mxu0 %v8165_v17  ;;  %v8237_v17 = vld [vmem:[#allocation10 + $0xfc8] ss:$48 sps:$4 sm:$0xff]  }
 0x217   :  { %5974 = vmatprep.subr.bf16.mxu0 %v8173_v18  ;;  %v8242_v18 = vld [vmem:[#allocation10 + $0x1024] ss:$48 sps:$4 sm:$0xff]  }
 0x21a   :  { %5975 = vmatpush1.bf16.msra.mxu0 %v8171_v19  ;;  %v8245_v19 = vld [vmem:[#allocation10 + $0x102c] ss:$48 sps:$4 sm:$0xff]  }
 0x21b   :  { %5985 = vmatprep.subr.bf16.mxu0 %v8179_v20  ;;  %v400_v20 = vsub.s32 4, %v9202_v7 }
 0x22f   :  { %v2112_v25 = vpop.f32.mrb[4].mxu1 }
 0x230   :  { %v7448_v26 = vadd.f32 %v2112_v25, %v393_v23  ;;  %v2114_v27 = vpop.f32.mrb[5].mxu1  ;;  %v404_v23 = vsub.s32 5, %v9202_v7  ;;  %v8243_v25 = vld [vmem:[#allocation10 + $0x1028] ss:$48 sps:$4 sm:$0xff]  }
 0x231   :  { %v7449_v28 = vadd.f32 %v2114_v27, %v397_v24  ;;  %v2116_v29 = vpop.f32.mrb[6].mxu1  ;;  %v8240_v24 = vld [vmem:[#allocation10 + $0x1020] ss:$48 sps:$4 sm:$0xff]   ;;  %v8251_v27 = vld [vmem:[#allocation10 + $0x108c] ss:$48 sps:$4 sm:$0xff]  }
 0x232   :  { %8850 = vtanh.f32 %v7448_v26  ;;  %v2117_v30 = vpop.f32.mrb[7].mxu1  ;;  %v8248_v26 = vld [vmem:[#allocation10 + $0x1084] ss:$48 sps:$4 sm:$0xff]  }
 0x233   :  { %8852 = vtanh.f32 %v7449_v28  ;;  %v8858_v28 = vld [vmem:[#allocation9] sm:$0x3f] }
 0x234   :  { %v401_v29 = vrot.slane %v8858_v28, %v400_v20  ;;  %v405_v30 = vrot.slane %v8858_v28, %v404_v23  ;;  %v8306_v28 = vld [vmem:[#allocation10 + $0x250] ss:$48 sps:$4 sm:$0xff]  }
 0x23c   :  { %v8851_v6 = vpop.eup %8850 }
 0x23d   :  { %v8853_v31 = vpop.eup %8852  ;;  %2250 = vst [vmem:[#allocation16 + $0x10] sm:$0xff] %v8851_v6  ;;  %v9238_v35 = vpack.c.bf16 %v8851_v6, %v8851_v6  ;;  %v8246_v6 = vld [vmem:[#allocation10 + $0x1080] ss:$48 sps:$4 sm:$0xff]  }
 0x23e   :  { %2251 = vst [vmem:[#allocation16 + $0x18] sm:$0xff] %v8853_v31  ;;  %v9236_v47 = vpack.c.bf16 %v8853_v31, %v8853_v31  ;;  %v8249_v31 = vld [vmem:[#allocation10 + $0x1088] ss:$48 sps:$4 sm:$0xff]  }
 0x240   :  { %5853 = vmatprep.mubr.bf16.mxu1 %v9236_v47  ;;  %5976 = vmatprep.mubr.bf16.mxu0 %v9236_v47 }
 0x241   :  { %5854 = vmatmul.mubr.bf16.vlgmr.msra.gmra.mrb[8].mxu1 %v9238_v35  ;;  %5977 = vmatmul.mubr.bf16.vlgmr.msra.gmra.mrb[8].mxu0 %v9238_v35 }
 0x242   :  { %5863 = vmatpush1.bf16.msra.mxu1 %v8174_v32  ;;  %5986 = vmatpush1.bf16.msra.mxu0 %v8177_v33  ;;  %v8254_v33 = vld [vmem:[#allocation10 + $0x10e4] ss:$48 sps:$4 sm:$0xff]  }
 0x243   :  { %5864 = vmatprep.subr.bf16.mxu1 %v8182_v37  ;;  %5987 = vmatprep.subr.bf16.mxu0 %v8185_v36  ;;  %v8257_v37 = vld [vmem:[#allocation10 + $0x10ec] ss:$48 sps:$4 sm:$0xff]  }
 0x246   :  { %5865 = vmatpush1.bf16.msra.mxu1 %v8180_v34  ;;  %5988 = vmatpush1.bf16.msra.mxu0 %v8183_v38 }
 0x247   :  { %5866 = vmatprep.subr.bf16.mxu1 %v8188_v39  ;;  %5989 = vmatprep.subr.bf16.mxu0 %v8191_v40 }
 0x24a   :  { %5867 = vmatpush1.bf16.msra.mxu1 %v8186_v41  ;;  %5990 = vmatpush1.bf16.msra.mxu0 %v8189_v42  ;;  %v8252_v41 = vld [vmem:[#allocation10 + $0x10e0] ss:$48 sps:$4 sm:$0xff]   ;;  %v8255_v42 = vld [vmem:[#allocation10 + $0x10e8] ss:$48 sps:$4 sm:$0xff]  }
 0x24b   :  { %5868 = vmatprep.subr.bf16.mxu1 %v8194_v45  ;;  %5991 = vmatprep.subr.bf16.mxu0 %v8197_v46  ;;  %v8260_v45 = vld [vmem:[#allocation10 + $0x1144] ss:$48 sps:$4 sm:$0xff]   ;;  %v8263_v46 = vld [vmem:[#allocation10 + $0x114c] ss:$48 sps:$4 sm:$0xff]  }
 0x24e   :  { %5869 = vmatpush1.bf16.msra.mxu1 %v8192_v48  ;;  %5992 = vmatpush1.bf16.msra.mxu0 %v8195_v49  ;;  %v8258_v48 = vld [vmem:[#allocation10 + $0x1140] ss:$48 sps:$4 sm:$0xff]   ;;  %v8261_v49 = vld [vmem:[#allocation10 + $0x1148] ss:$48 sps:$4 sm:$0xff]  }
 0x24f   :  { %5870 = vmatprep.subr.bf16.mxu1 %v8200_v50  ;;  %5993 = vmatprep.subr.bf16.mxu0 %v8203_v52  ;;  %v8266_v50 = vld [vmem:[#allocation10 + $0x11a4] ss:$48 sps:$4 sm:$0xff]   ;;  %v8269_v52 = vld [vmem:[#allocation10 + $0x11ac] ss:$48 sps:$4 sm:$0xff]  }
 0x252   :  { %5871 = vmatpush1.bf16.msra.mxu1 %v8198_v53  ;;  %5994 = vmatpush1.bf16.msra.mxu0 %v8201_v54  ;;  %v8264_v53 = vld [vmem:[#allocation10 + $0x11a0] ss:$48 sps:$4 sm:$0xff]   ;;  %v8267_v54 = vld [vmem:[#allocation10 + $0x11a8] ss:$48 sps:$4 sm:$0xff]  }
 0x253   :  { %5872 = vmatprep.subr.bf16.mxu1 %v8206_v55  ;;  %5995 = vmatprep.subr.bf16.mxu0 %v8209_v56  ;;  %v8272_v55 = vld [vmem:[#allocation10 + $0x14] ss:$48 sps:$4 sm:$0xff]   ;;  %v8275_v56 = vld [vmem:[#allocation10 + $0x1c] ss:$48 sps:$4 sm:$0xff]  }
 0x256   :  { %5873 = vmatpush1.bf16.msra.mxu1 %v8204_v43  ;;  %5996 = vmatpush1.bf16.msra.mxu0 %v8207_v57 }
 0x257   :  { %5874 = vmatprep.subr.bf16.mxu1 %v8212_v44  ;;  %5997 = vmatprep.subr.bf16.mxu0 %v8215_v58  ;;  %v8270_v58 = vld [vmem:[#allocation10 + $0x10] ss:$48 sps:$4 sm:$0xff]  }
 0x25a   :  { %5875 = vmatpush1.bf16.msra.mxu1 %v8210_v59  ;;  %5998 = vmatpush1.bf16.msra.mxu0 %v8213_v60  ;;  %v8273_v59 = vld [vmem:[#allocation10 + $0x18] ss:$48 sps:$4 sm:$0xff]  }
 0x25b   :  { %5876 = vmatprep.subr.bf16.mxu1 %v8218_v62  ;;  %5999 = vmatprep.subr.bf16.mxu0 %v8221_v63  ;;  %v8278_v62 = vld [vmem:[#allocation10 + $0x74] ss:$48 sps:$4 sm:$0xff]   ;;  %v8281_v63 = vld [vmem:[#allocation10 + $0x7c] ss:$48 sps:$4 sm:$0xff]  }
 0x25e   :  { %5877 = vmatpush1.bf16.msra.mxu1 %v8216_v1  ;;  %6000 = vmatpush1.bf16.msra.mxu0 %v8219_v2  ;;  %v8276_v1 = vld [vmem:[#allocation10 + $0x70] ss:$48 sps:$4 sm:$0xff]   ;;  %v8279_v2 = vld [vmem:[#allocation10 + $0x78] ss:$48 sps:$4 sm:$0xff]  }
 0x25f   :  { %5878 = vmatprep.subr.bf16.mxu1 %v8224_v3  ;;  %6001 = vmatprep.subr.bf16.mxu0 %v8227_v4  ;;  %v8284_v3 = vld [vmem:[#allocation10 + $0xd4] ss:$48 sps:$4 sm:$0xff]   ;;  %v8287_v4 = vld [vmem:[#allocation10 + $0xdc] ss:$48 sps:$4 sm:$0xff]  }
 0x262   :  { %5879 = vmatpush1.bf16.msra.mxu1 %v8222_v5  ;;  %6002 = vmatpush1.bf16.msra.mxu0 %v8225_v8  ;;  %v8282_v5 = vld [vmem:[#allocation10 + $0xd0] ss:$48 sps:$4 sm:$0xff]   ;;  %v8285_v8 = vld [vmem:[#allocation10 + $0xd8] ss:$48 sps:$4 sm:$0xff]  }
 0x263   :  { %5880 = vmatprep.subr.bf16.mxu1 %v8230_v9  ;;  %6003 = vmatprep.subr.bf16.mxu0 %v8233_v10  ;;  %v8290_v9 = vld [vmem:[#allocation10 + $0x134] ss:$48 sps:$4 sm:$0xff]   ;;  %v8293_v10 = vld [vmem:[#allocation10 + $0x13c] ss:$48 sps:$4 sm:$0xff]  }
 0x266   :  { %5881 = vmatpush1.bf16.msra.mxu1 %v8228_v11  ;;  %6004 = vmatpush1.bf16.msra.mxu0 %v8231_v12  ;;  %v8288_v11 = vld [vmem:[#allocation10 + $0x130] ss:$48 sps:$4 sm:$0xff]   ;;  %v8291_v12 = vld [vmem:[#allocation10 + $0x138] ss:$48 sps:$4 sm:$0xff]  }
 0x267   :  { %5882 = vmatprep.subr.bf16.mxu1 %v8236_v13  ;;  %6005 = vmatprep.subr.bf16.mxu0 %v8239_v15  ;;  %v8296_v13 = vld [vmem:[#allocation10 + $0x194] ss:$48 sps:$4 sm:$0xff]   ;;  %v8299_v15 = vld [vmem:[#allocation10 + $0x19c] ss:$48 sps:$4 sm:$0xff]  }
 0x26a   :  { %5883 = vmatpush1.bf16.msra.mxu1 %v8234_v16  ;;  %6006 = vmatpush1.bf16.msra.mxu0 %v8237_v17  ;;  %v8294_v16 = vld [vmem:[#allocation10 + $0x190] ss:$48 sps:$4 sm:$0xff]   ;;  %v8297_v17 = vld [vmem:[#allocation10 + $0x198] ss:$48 sps:$4 sm:$0xff]  }
 0x26b   :  { %5884 = vmatprep.subr.bf16.mxu1 %v8242_v18  ;;  %6007 = vmatprep.subr.bf16.mxu0 %v8245_v19  ;;  %v8302_v18 = vld [vmem:[#allocation10 + $0x1f4] ss:$48 sps:$4 sm:$0xff]   ;;  %v8305_v19 = vld [vmem:[#allocation10 + $0x1fc] ss:$48 sps:$4 sm:$0xff]  }
 0x26e   :  { %5885 = vmatpush1.bf16.msra.mxu1 %v8240_v24  ;;  %6008 = vmatpush1.bf16.msra.mxu0 %v8243_v25  ;;  %v8300_v24 = vld [vmem:[#allocation10 + $0x1f0] ss:$48 sps:$4 sm:$0xff]   ;;  %v8303_v25 = vld [vmem:[#allocation10 + $0x1f8] ss:$48 sps:$4 sm:$0xff]  }
 0x26f   :  { %5886 = vmatprep.subr.bf16.mxu1 %v8248_v26  ;;  %6009 = vmatprep.subr.bf16.mxu0 %v8251_v27  ;;  %v8308_v26 = vld [vmem:[#allocation10 + $0x254] ss:$48 sps:$4 sm:$0xff]   ;;  %v8311_v27 = vld [vmem:[#allocation10 + $0x25c] ss:$48 sps:$4 sm:$0xff]  }
 0x270   :  { %v2235_v32 = vpop.f32.mrb[4].mxu0 }
 0x271   :  { %v7450_v36 = vadd.f32 %v2235_v32, %v401_v29  ;;  %v2237_v34 = vpop.f32.mrb[5].mxu0  ;;  %v8309_v29 = vld [vmem:[#allocation10 + $0x258] ss:$48 sps:$4 sm:$0xff]  }
 0x272   :  { %v7451_v38 = vadd.f32 %v2237_v34, %v405_v30  ;;  %v2239_v39 = vpop.f32.mrb[6].mxu0  ;;  %5887 = vmatpush1.bf16.msra.mxu1 %v8246_v6  ;;  %6010 = vmatpush1.bf16.msra.mxu0 %v8249_v31  ;;  %v8314_v30 = vld [vmem:[#allocation10 + $0x2b4] ss:$48 sps:$4 sm:$0xff]   ;;  %v8317_v6 = vld [vmem:[#allocation10 + $0x2bc] ss:$48 sps:$4 sm:$0xff]  }
 0x273   :  { %8854 = vtanh.f32 %v7450_v36  ;;  %v2240_v40 = vpop.f32.mrb[7].mxu0  ;;  %5888 = vmatprep.subr.bf16.mxu1 %v8254_v33  ;;  %6011 = vmatprep.subr.bf16.mxu0 %v8257_v37  ;;  %v8312_v31 = vld [vmem:[#allocation10 + $0x2b0] ss:$48 sps:$4 sm:$0xff]   ;;  %v8315_v32 = vld [vmem:[#allocation10 + $0x2b8] ss:$48 sps:$4 sm:$0xff]  }
 0x274   :  { %8856 = vtanh.f32 %v7451_v38  ;;  %v8320_v33 = vld [vmem:[#allocation10 + $0x314] ss:$48 sps:$4 sm:$0xff]   ;;  %v8323_v37 = vld [vmem:[#allocation10 + $0x31c] ss:$48 sps:$4 sm:$0xff]   ;;  %v8318_v36 = vld [vmem:[#allocation10 + $0x310] ss:$48 sps:$4 sm:$0xff]  }
 0x275   :  { %v8321_v34 = vld [vmem:[#allocation10 + $0x318] ss:$48 sps:$4 sm:$0xff]   ;;  %v8326_v38 = vld [vmem:[#allocation10 + $0x374] ss:$48 sps:$4 sm:$0xff]   ;;  %v8329_v39 = vld [vmem:[#allocation10 + $0x37c] ss:$48 sps:$4 sm:$0xff]  }
 0x276   :  { %5889 = vmatpush1.bf16.msra.mxu1 %v8252_v41  ;;  %6012 = vmatpush1.bf16.msra.mxu0 %v8255_v42  ;;  %v8324_v40 = vld [vmem:[#allocation10 + $0x370] ss:$48 sps:$4 sm:$0xff]   ;;  %v8327_v41 = vld [vmem:[#allocation10 + $0x378] ss:$48 sps:$4 sm:$0xff]   ;;  %v8332_v42 = vld [vmem:[#allocation10 + $0x3d4] ss:$48 sps:$4 sm:$0xff]  }
 0x277   :  { %5890 = vmatprep.subr.bf16.mxu1 %v8260_v45  ;;  %6013 = vmatprep.subr.bf16.mxu0 %v8263_v46  ;;  %v8335_v45 = vld [vmem:[#allocation10 + $0x3dc] ss:$48 sps:$4 sm:$0xff]   ;;  %v8330_v46 = vld [vmem:[#allocation10 + $0x3d0] ss:$48 sps:$4 sm:$0xff]  }
 0x27a   :  { %5891 = vmatpush1.bf16.msra.mxu1 %v8258_v48  ;;  %6014 = vmatpush1.bf16.msra.mxu0 %v8261_v49  ;;  %v8333_v48 = vld [vmem:[#allocation10 + $0x3d8] ss:$48 sps:$4 sm:$0xff]   ;;  %v8338_v49 = vld [vmem:[#allocation10 + $0x434] ss:$48 sps:$4 sm:$0xff]  }
 0x27b   :  { %5892 = vmatprep.subr.bf16.mxu1 %v8266_v50  ;;  %6015 = vmatprep.subr.bf16.mxu0 %v8269_v52  ;;  %v8341_v50 = vld [vmem:[#allocation10 + $0x43c] ss:$48 sps:$4 sm:$0xff]   ;;  %v8336_v52 = vld [vmem:[#allocation10 + $0x430] ss:$48 sps:$4 sm:$0xff]  }
 0x27d   :  { %v8855_v43 = vpop.eup %8854 }
 0x27e   :  { %v8857_v57 = vpop.eup %8856  ;;  %2252 = vst [vmem:[#allocation16 + $0x20] sm:$0xff] %v8855_v43  ;;  %5893 = vmatpush1.bf16.msra.mxu1 %v8264_v53  ;;  %6016 = vmatpush1.bf16.msra.mxu0 %v8267_v54  ;;  %v9252_v60 = vpack.c.bf16 %v8855_v43, %v8855_v43  ;;  %v8339_v53 = vld [vmem:[#allocation10 + $0x438] ss:$48 sps:$4 sm:$0xff]   ;;  %v8344_v54 = vld [vmem:[#allocation10 + $0x494] ss:$48 sps:$4 sm:$0xff]  }
 0x27f   :  { %2253 = vst [vmem:[#allocation16 + $0x28] sm:$0xff] %v8857_v57  ;;  %v9250_v44 = vpack.c.bf16 %v8857_v57, %v8857_v57  ;;  %6026 = vmatprep.subr.bf16.mxu1 %v8272_v55  ;;  %6149 = vmatprep.subr.bf16.mxu0 %v8275_v56  ;;  %v8347_v55 = vld [vmem:[#allocation10 + $0x49c] ss:$48 sps:$4 sm:$0xff]   ;;  %v8342_v56 = vld [vmem:[#allocation10 + $0x490] ss:$48 sps:$4 sm:$0xff]  }
 0x280   :  { %v8345_v43 = vld [vmem:[#allocation10 + $0x498] ss:$48 sps:$4 sm:$0xff]   ;;  %v8350_v57 = vld [vmem:[#allocation10 + $0x4f4] ss:$48 sps:$4 sm:$0xff]  }
 0x281   :  { %5894 = vmatprep.mubr.bf16.mxu1 %v9250_v44  ;;  %6017 = vmatprep.mubr.bf16.mxu0 %v9250_v44 }
 0x282   :  { %5895 = vmatmul.mubr.bf16.vlgmr.msra.gmra.mrb[8].mxu1 %v9252_v60  ;;  %6018 = vmatmul.mubr.bf16.vlgmr.msra.gmra.mrb[8].mxu0 %v9252_v60 }
 0x283   :  { %6027 = vmatpush1.bf16.msra.mxu1 %v8270_v58  ;;  %6150 = vmatpush1.bf16.msra.mxu0 %v8273_v59  ;;  %v8353_v58 = vld [vmem:[#allocation10 + $0x4fc] ss:$48 sps:$4 sm:$0xff]   ;;  %v8348_v59 = vld [vmem:[#allocation10 + $0x4f0] ss:$48 sps:$4 sm:$0xff]  }
 0x284   :  { %6058 = vmatprep.mubr.bf16.mxu1 %v9218_v61  ;;  %6181 = vmatprep.mubr.bf16.mxu0 %v9218_v61 }
 0x285   :  { %6028 = vmatprep.subr.bf16.mxu1 %v8278_v62  ;;  %6151 = vmatprep.subr.bf16.mxu0 %v8281_v63  ;;  %v8351_v62 = vld [vmem:[#allocation10 + $0x4f8] ss:$48 sps:$4 sm:$0xff]   ;;  %v8356_v63 = vld [vmem:[#allocation10 + $0x554] ss:$48 sps:$4 sm:$0xff]  }
 0x287   :  { %6029 = vmatpush1.bf16.msra.mxu1 %v8276_v1  ;;  %6152 = vmatpush1.bf16.msra.mxu0 %v8279_v2  ;;  %v8359_v1 = vld [vmem:[#allocation10 + $0x55c] ss:$48 sps:$4 sm:$0xff]   ;;  %v8354_v2 = vld [vmem:[#allocation10 + $0x550] ss:$48 sps:$4 sm:$0xff]  }
 0x288   :  { %6030 = vmatprep.subr.bf16.mxu1 %v8284_v3  ;;  %6153 = vmatprep.subr.bf16.mxu0 %v8287_v4  ;;  %v8357_v3 = vld [vmem:[#allocation10 + $0x558] ss:$48 sps:$4 sm:$0xff]   ;;  %v8362_v4 = vld [vmem:[#allocation10 + $0x5b4] ss:$48 sps:$4 sm:$0xff]  }
 0x28b   :  { %6031 = vmatpush1.bf16.msra.mxu1 %v8282_v5  ;;  %6154 = vmatpush1.bf16.msra.mxu0 %v8285_v8  ;;  %v8365_v5 = vld [vmem:[#allocation10 + $0x5bc] ss:$48 sps:$4 sm:$0xff]   ;;  %v8360_v8 = vld [vmem:[#allocation10 + $0x5b0] ss:$48 sps:$4 sm:$0xff]  }
 0x28c   :  { %6032 = vmatprep.subr.bf16.mxu1 %v8290_v9  ;;  %6155 = vmatprep.subr.bf16.mxu0 %v8293_v10  ;;  %v8363_v9 = vld [vmem:[#allocation10 + $0x5b8] ss:$48 sps:$4 sm:$0xff]   ;;  %v8368_v10 = vld [vmem:[#allocation10 + $0x614] ss:$48 sps:$4 sm:$0xff]  }
 0x28f   :  { %6033 = vmatpush1.bf16.msra.mxu1 %v8288_v11  ;;  %6156 = vmatpush1.bf16.msra.mxu0 %v8291_v12  ;;  %v8371_v11 = vld [vmem:[#allocation10 + $0x61c] ss:$48 sps:$4 sm:$0xff]   ;;  %v8366_v12 = vld [vmem:[#allocation10 + $0x610] ss:$48 sps:$4 sm:$0xff]  }
 0x290   :  { %6034 = vmatprep.subr.bf16.mxu1 %v8296_v13  ;;  %6157 = vmatprep.subr.bf16.mxu0 %v8299_v15  ;;  %v8369_v13 = vld [vmem:[#allocation10 + $0x618] ss:$48 sps:$4 sm:$0xff]   ;;  %v8374_v15 = vld [vmem:[#allocation10 + $0x674] ss:$48 sps:$4 sm:$0xff]  }
 0x293   :  { %6035 = vmatpush1.bf16.msra.mxu1 %v8294_v16  ;;  %6158 = vmatpush1.bf16.msra.mxu0 %v8297_v17  ;;  %v8377_v16 = vld [vmem:[#allocation10 + $0x67c] ss:$48 sps:$4 sm:$0xff]   ;;  %v8372_v17 = vld [vmem:[#allocation10 + $0x670] ss:$48 sps:$4 sm:$0xff]  }
 0x294   :  { %6036 = vmatprep.subr.bf16.mxu1 %v8302_v18  ;;  %6159 = vmatprep.subr.bf16.mxu0 %v8305_v19  ;;  %v8375_v18 = vld [vmem:[#allocation10 + $0x678] ss:$48 sps:$4 sm:$0xff]   ;;  %v8380_v19 = vld [vmem:[#allocation10 + $0x6d4] ss:$48 sps:$4 sm:$0xff]  }
 0x297   :  { %6037 = vmatpush1.bf16.msra.mxu1 %v8300_v24  ;;  %6160 = vmatpush1.bf16.msra.mxu0 %v8303_v25  ;;  %v8383_v24 = vld [vmem:[#allocation10 + $0x6dc] ss:$48 sps:$4 sm:$0xff]   ;;  %v8378_v25 = vld [vmem:[#allocation10 + $0x6d0] ss:$48 sps:$4 sm:$0xff]  }
 0x298   :  { %6038 = vmatprep.subr.bf16.mxu1 %v8308_v26  ;;  %6161 = vmatprep.subr.bf16.mxu0 %v8311_v27  ;;  %v8381_v26 = vld [vmem:[#allocation10 + $0x6d8] ss:$48 sps:$4 sm:$0xff]   ;;  %v8386_v27 = vld [vmem:[#allocation10 + $0x734] ss:$48 sps:$4 sm:$0xff]  }
 0x29b   :  { %6039 = vmatpush1.bf16.msra.mxu1 %v8306_v28  ;;  %6162 = vmatpush1.bf16.msra.mxu0 %v8309_v29  ;;  %v8389_v28 = vld [vmem:[#allocation10 + $0x73c] ss:$48 sps:$4 sm:$0xff]   ;;  %v8384_v29 = vld [vmem:[#allocation10 + $0x730] ss:$48 sps:$4 sm:$0xff]  }
 0x29c   :  { %6040 = vmatprep.subr.bf16.mxu1 %v8314_v30  ;;  %6163 = vmatprep.subr.bf16.mxu0 %v8317_v6  ;;  %v8387_v30 = vld [vmem:[#allocation10 + $0x738] ss:$48 sps:$4 sm:$0xff]   ;;  %v8392_v6 = vld [vmem:[#allocation10 + $0x794] ss:$48 sps:$4 sm:$0xff]  }
 0x29f   :  { %6041 = vmatpush1.bf16.msra.mxu1 %v8312_v31  ;;  %6164 = vmatpush1.bf16.msra.mxu0 %v8315_v32  ;;  %v8395_v31 = vld [vmem:[#allocation10 + $0x79c] ss:$48 sps:$4 sm:$0xff]   ;;  %v8390_v32 = vld [vmem:[#allocation10 + $0x790] ss:$48 sps:$4 sm:$0xff]  }
 0x2a0   :  { %6042 = vmatprep.subr.bf16.mxu1 %v8320_v33  ;;  %6165 = vmatprep.subr.bf16.mxu0 %v8323_v37  ;;  %v8393_v33 = vld [vmem:[#allocation10 + $0x798] ss:$48 sps:$4 sm:$0xff]   ;;  %v8398_v37 = vld [vmem:[#allocation10 + $0x7f4] ss:$48 sps:$4 sm:$0xff]  }
 0x2a3   :  { %6043 = vmatpush1.bf16.msra.mxu1 %v8318_v36  ;;  %6166 = vmatpush1.bf16.msra.mxu0 %v8321_v34  ;;  %v8401_v36 = vld [vmem:[#allocation10 + $0x7fc] ss:$48 sps:$4 sm:$0xff]   ;;  %v8396_v34 = vld [vmem:[#allocation10 + $0x7f0] ss:$48 sps:$4 sm:$0xff]  }
 0x2a4   :  { %6044 = vmatprep.subr.bf16.mxu1 %v8326_v38  ;;  %6167 = vmatprep.subr.bf16.mxu0 %v8329_v39  ;;  %v8399_v38 = vld [vmem:[#allocation10 + $0x7f8] ss:$48 sps:$4 sm:$0xff]   ;;  %v8404_v39 = vld [vmem:[#allocation10 + $0x854] ss:$48 sps:$4 sm:$0xff]  }
 0x2a7   :  { %6045 = vmatpush1.bf16.msra.mxu1 %v8324_v40  ;;  %6168 = vmatpush1.bf16.msra.mxu0 %v8327_v41  ;;  %v8407_v40 = vld [vmem:[#allocation10 + $0x85c] ss:$48 sps:$4 sm:$0xff]   ;;  %v8402_v41 = vld [vmem:[#allocation10 + $0x850] ss:$48 sps:$4 sm:$0xff]  }
 0x2a8   :  { %6046 = vmatprep.subr.bf16.mxu1 %v8332_v42  ;;  %6169 = vmatprep.subr.bf16.mxu0 %v8335_v45  ;;  %v8405_v42 = vld [vmem:[#allocation10 + $0x858] ss:$48 sps:$4 sm:$0xff]   ;;  %v8410_v45 = vld [vmem:[#allocation10 + $0x8b4] ss:$48 sps:$4 sm:$0xff]  }
 0x2ab   :  { %6047 = vmatpush1.bf16.msra.mxu1 %v8330_v46  ;;  %6170 = vmatpush1.bf16.msra.mxu0 %v8333_v48  ;;  %v8413_v46 = vld [vmem:[#allocation10 + $0x8bc] ss:$48 sps:$4 sm:$0xff]   ;;  %v8408_v48 = vld [vmem:[#allocation10 + $0x8b0] ss:$48 sps:$4 sm:$0xff]  }
 0x2ac   :  { %6048 = vmatprep.subr.bf16.mxu1 %v8338_v49  ;;  %6171 = vmatprep.subr.bf16.mxu0 %v8341_v50  ;;  %v8411_v49 = vld [vmem:[#allocation10 + $0x8b8] ss:$48 sps:$4 sm:$0xff]   ;;  %v8416_v50 = vld [vmem:[#allocation10 + $0x914] ss:$48 sps:$4 sm:$0xff]  }
 0x2af   :  { %6049 = vmatpush1.bf16.msra.mxu1 %v8336_v52  ;;  %6172 = vmatpush1.bf16.msra.mxu0 %v8339_v53  ;;  %v8419_v52 = vld [vmem:[#allocation10 + $0x91c] ss:$48 sps:$4 sm:$0xff]   ;;  %v8414_v53 = vld [vmem:[#allocation10 + $0x910] ss:$48 sps:$4 sm:$0xff]  }
 0x2b0   :  { %6050 = vmatprep.subr.bf16.mxu1 %v8344_v54  ;;  %6173 = vmatprep.subr.bf16.mxu0 %v8347_v55  ;;  %v8417_v54 = vld [vmem:[#allocation10 + $0x918] ss:$48 sps:$4 sm:$0xff]   ;;  %v8422_v55 = vld [vmem:[#allocation10 + $0x974] ss:$48 sps:$4 sm:$0xff]  }
 0x2b3   :  { %6051 = vmatpush1.bf16.msra.mxu1 %v8342_v56  ;;  %6174 = vmatpush1.bf16.msra.mxu0 %v8345_v43  ;;  %v8425_v56 = vld [vmem:[#allocation10 + $0x97c] ss:$48 sps:$4 sm:$0xff]   ;;  %v8420_v43 = vld [vmem:[#allocation10 + $0x970] ss:$48 sps:$4 sm:$0xff]  }
 0x2b4   :  { %6052 = vmatprep.subr.bf16.mxu1 %v8350_v57  ;;  %6175 = vmatprep.subr.bf16.mxu0 %v8353_v58  ;;  %v8423_v57 = vld [vmem:[#allocation10 + $0x978] ss:$48 sps:$4 sm:$0xff]   ;;  %v8428_v58 = vld [vmem:[#allocation10 + $0x9d4] ss:$48 sps:$4 sm:$0xff]  }
 0x2b7   :  { %6053 = vmatpush1.bf16.msra.mxu1 %v8348_v59  ;;  %6176 = vmatpush1.bf16.msra.mxu0 %v8351_v62  ;;  %v8431_v59 = vld [vmem:[#allocation10 + $0x9dc] ss:$48 sps:$4 sm:$0xff]   ;;  %v8426_v62 = vld [vmem:[#allocation10 + $0x9d0] ss:$48 sps:$4 sm:$0xff]  }
 0x2b8   :  { %6054 = vmatprep.subr.bf16.mxu1 %v8356_v63  ;;  %6177 = vmatprep.subr.bf16.mxu0 %v8359_v1  ;;  %v8429_v63 = vld [vmem:[#allocation10 + $0x9d8] ss:$48 sps:$4 sm:$0xff]   ;;  %v8434_v1 = vld [vmem:[#allocation10 + $0xa34] ss:$48 sps:$4 sm:$0xff]  }
 0x2bb   :  { %6055 = vmatpush1.bf16.msra.mxu1 %v8354_v2  ;;  %6178 = vmatpush1.bf16.msra.mxu0 %v8357_v3  ;;  %v8437_v2 = vld [vmem:[#allocation10 + $0xa3c] ss:$48 sps:$4 sm:$0xff]   ;;  %v8432_v3 = vld [vmem:[#allocation10 + $0xa30] ss:$48 sps:$4 sm:$0xff]  }
 0x2bc   :  { %6056 = vmatprep.subr.bf16.mxu1 %v8362_v4  ;;  %6179 = vmatprep.subr.bf16.mxu0 %v8365_v5  ;;  %v8435_v4 = vld [vmem:[#allocation10 + $0xa38] ss:$48 sps:$4 sm:$0xff]   ;;  %v8440_v5 = vld [vmem:[#allocation10 + $0xa94] ss:$48 sps:$4 sm:$0xff]  }
 0x2bf   :  { %6057 = vmatpush1.bf16.msra.mxu1 %v8360_v8  ;;  %6180 = vmatpush1.bf16.msra.mxu0 %v8363_v9  ;;  %v8443_v8 = vld [vmem:[#allocation10 + $0xa9c] ss:$48 sps:$4 sm:$0xff]   ;;  %v8438_v9 = vld [vmem:[#allocation10 + $0xa90] ss:$48 sps:$4 sm:$0xff]  }
 0x2c0   :  { %6067 = vmatprep.subr.bf16.mxu1 %v8368_v10  ;;  %6190 = vmatprep.subr.bf16.mxu0 %v8371_v11  ;;  %v8441_v10 = vld [vmem:[#allocation10 + $0xa98] ss:$48 sps:$4 sm:$0xff]   ;;  %v8446_v11 = vld [vmem:[#allocation10 + $0xaf4] ss:$48 sps:$4 sm:$0xff]  }
 0x2c2   :  { %6059 = vmatmul.mubr.bf16.vlgmr.msra.gmra.mrb[12].mxu1 %v9220_v0  ;;  %6182 = vmatmul.mubr.bf16.vlgmr.msra.gmra.mrb[12].mxu0 %v9220_v0 }
 0x2c3   :  { %6068 = vmatpush1.bf16.msra.mxu1 %v8366_v12  ;;  %6099 = vmatprep.mubr.bf16.mxu1 %v9236_v47  ;;  %v8449_v12 = vld [vmem:[#allocation10 + $0xafc] ss:$48 sps:$4 sm:$0xff]  }
 0x2c4   :  { %6191 = vmatpush1.bf16.msra.mxu0 %v8369_v13  ;;  %6222 = vmatprep.mubr.bf16.mxu0 %v9236_v47  ;;  %v8444_v13 = vld [vmem:[#allocation10 + $0xaf0] ss:$48 sps:$4 sm:$0xff]  }
 0x2c5   :  { %6069 = vmatprep.subr.bf16.mxu1 %v8374_v15  ;;  %6192 = vmatprep.subr.bf16.mxu0 %v8377_v16  ;;  %v8447_v15 = vld [vmem:[#allocation10 + $0xaf8] ss:$48 sps:$4 sm:$0xff]   ;;  %v8452_v16 = vld [vmem:[#allocation10 + $0xb54] ss:$48 sps:$4 sm:$0xff]  }
 0x2c7   :  { %6070 = vmatpush1.bf16.msra.mxu1 %v8372_v17  ;;  %v8455_v17 = vld [vmem:[#allocation10 + $0xb5c] ss:$48 sps:$4 sm:$0xff]  }
 0x2c8   :  { %6193 = vmatpush1.bf16.msra.mxu0 %v8375_v18  ;;  %6071 = vmatprep.subr.bf16.mxu1 %v8380_v19  ;;  %v8450_v18 = vld [vmem:[#allocation10 + $0xb50] ss:$48 sps:$4 sm:$0xff]   ;;  %v8453_v19 = vld [vmem:[#allocation10 + $0xb58] ss:$48 sps:$4 sm:$0xff]  }
 0x2c9   :  { %6194 = vmatprep.subr.bf16.mxu0 %v8383_v24  ;;  %v8458_v24 = vld [vmem:[#allocation10 + $0xbb4] ss:$48 sps:$4 sm:$0xff]  }
 0x2cb   :  { %6072 = vmatpush1.bf16.msra.mxu1 %v8378_v25  ;;  %v8461_v25 = vld [vmem:[#allocation10 + $0xbbc] ss:$48 sps:$4 sm:$0xff]  }
 0x2cc   :  { %6195 = vmatpush1.bf16.msra.mxu0 %v8381_v26  ;;  %6073 = vmatprep.subr.bf16.mxu1 %v8386_v27  ;;  %v8456_v26 = vld [vmem:[#allocation10 + $0xbb0] ss:$48 sps:$4 sm:$0xff]   ;;  %v8459_v27 = vld [vmem:[#allocation10 + $0xbb8] ss:$48 sps:$4 sm:$0xff]  }
 0x2cd   :  { %6196 = vmatprep.subr.bf16.mxu0 %v8389_v28  ;;  %v8464_v28 = vld [vmem:[#allocation10 + $0xc14] ss:$48 sps:$4 sm:$0xff]  }
 0x2cf   :  { %6074 = vmatpush1.bf16.msra.mxu1 %v8384_v29  ;;  %v8467_v29 = vld [vmem:[#allocation10 + $0xc1c] ss:$48 sps:$4 sm:$0xff]  }
 0x2d0   :  { %6197 = vmatpush1.bf16.msra.mxu0 %v8387_v30  ;;  %6075 = vmatprep.subr.bf16.mxu1 %v8392_v6  ;;  %v8462_v30 = vld [vmem:[#allocation10 + $0xc10] ss:$48 sps:$4 sm:$0xff]   ;;  %v8465_v6 = vld [vmem:[#allocation10 + $0xc18] ss:$48 sps:$4 sm:$0xff]  }
 0x2d1   :  { %6198 = vmatprep.subr.bf16.mxu0 %v8395_v31  ;;  %v8470_v31 = vld [vmem:[#allocation10 + $0xc74] ss:$48 sps:$4 sm:$0xff]  }
 0x2d3   :  { %6076 = vmatpush1.bf16.msra.mxu1 %v8390_v32  ;;  %v8473_v32 = vld [vmem:[#allocation10 + $0xc7c] ss:$48 sps:$4 sm:$0xff]  }
 0x2d4   :  { %6199 = vmatpush1.bf16.msra.mxu0 %v8393_v33  ;;  %6077 = vmatprep.subr.bf16.mxu1 %v8398_v37  ;;  %v8468_v33 = vld [vmem:[#allocation10 + $0xc70] ss:$48 sps:$4 sm:$0xff]   ;;  %v8471_v37 = vld [vmem:[#allocation10 + $0xc78] ss:$48 sps:$4 sm:$0xff]  }
 0x2d5   :  { %6200 = vmatprep.subr.bf16.mxu0 %v8401_v36  ;;  %v8476_v36 = vld [vmem:[#allocation10 + $0xcd4] ss:$48 sps:$4 sm:$0xff]  }
 0x2d7   :  { %6078 = vmatpush1.bf16.msra.mxu1 %v8396_v34  ;;  %v8479_v34 = vld [vmem:[#allocation10 + $0xcdc] ss:$48 sps:$4 sm:$0xff]  }
 0x2d8   :  { %6201 = vmatpush1.bf16.msra.mxu0 %v8399_v38  ;;  %6079 = vmatprep.subr.bf16.mxu1 %v8404_v39  ;;  %v8474_v38 = vld [vmem:[#allocation10 + $0xcd0] ss:$48 sps:$4 sm:$0xff]   ;;  %v8477_v39 = vld [vmem:[#allocation10 + $0xcd8] ss:$48 sps:$4 sm:$0xff]  }
 0x2d9   :  { %6202 = vmatprep.subr.bf16.mxu0 %v8407_v40  ;;  %v8482_v40 = vld [vmem:[#allocation10 + $0xd34] ss:$48 sps:$4 sm:$0xff]  }
 0x2db   :  { %6080 = vmatpush1.bf16.msra.mxu1 %v8402_v41  ;;  %v8485_v41 = vld [vmem:[#allocation10 + $0xd3c] ss:$48 sps:$4 sm:$0xff]  }
 0x2dc   :  { %6203 = vmatpush1.bf16.msra.mxu0 %v8405_v42  ;;  %6081 = vmatprep.subr.bf16.mxu1 %v8410_v45  ;;  %v8480_v42 = vld [vmem:[#allocation10 + $0xd30] ss:$48 sps:$4 sm:$0xff]   ;;  %v8483_v45 = vld [vmem:[#allocation10 + $0xd38] ss:$48 sps:$4 sm:$0xff]  }
 0x2dd   :  { %6204 = vmatprep.subr.bf16.mxu0 %v8413_v46  ;;  %v8488_v46 = vld [vmem:[#allocation10 + $0xd94] ss:$48 sps:$4 sm:$0xff]  }
 0x2df   :  { %6082 = vmatpush1.bf16.msra.mxu1 %v8408_v48  ;;  %v8491_v48 = vld [vmem:[#allocation10 + $0xd9c] ss:$48 sps:$4 sm:$0xff]  }
 0x2e0   :  { %6205 = vmatpush1.bf16.msra.mxu0 %v8411_v49  ;;  %6083 = vmatprep.subr.bf16.mxu1 %v8416_v50  ;;  %v8486_v49 = vld [vmem:[#allocation10 + $0xd90] ss:$48 sps:$4 sm:$0xff]   ;;  %v8489_v50 = vld [vmem:[#allocation10 + $0xd98] ss:$48 sps:$4 sm:$0xff]  }
 0x2e1   :  { %6206 = vmatprep.subr.bf16.mxu0 %v8419_v52  ;;  %v8494_v52 = vld [vmem:[#allocation10 + $0xdf4] ss:$48 sps:$4 sm:$0xff]  }
 0x2e3   :  { %6084 = vmatpush1.bf16.msra.mxu1 %v8414_v53  ;;  %v8497_v53 = vld [vmem:[#allocation10 + $0xdfc] ss:$48 sps:$4 sm:$0xff]  }
 0x2e4   :  { %6207 = vmatpush1.bf16.msra.mxu0 %v8417_v54  ;;  %6085 = vmatprep.subr.bf16.mxu1 %v8422_v55  ;;  %v8492_v54 = vld [vmem:[#allocation10 + $0xdf0] ss:$48 sps:$4 sm:$0xff]   ;;  %v8495_v55 = vld [vmem:[#allocation10 + $0xdf8] ss:$48 sps:$4 sm:$0xff]  }
 0x2e5   :  { %6208 = vmatprep.subr.bf16.mxu0 %v8425_v56  ;;  %v8500_v56 = vld [vmem:[#allocation10 + $0xe54] ss:$48 sps:$4 sm:$0xff]  }
 0x2e7   :  { %6086 = vmatpush1.bf16.msra.mxu1 %v8420_v43  ;;  %v8503_v43 = vld [vmem:[#allocation10 + $0xe5c] ss:$48 sps:$4 sm:$0xff]  }
 0x2e8   :  { %6209 = vmatpush1.bf16.msra.mxu0 %v8423_v57  ;;  %6087 = vmatprep.subr.bf16.mxu1 %v8428_v58  ;;  %v8498_v57 = vld [vmem:[#allocation10 + $0xe50] ss:$48 sps:$4 sm:$0xff]   ;;  %v8501_v58 = vld [vmem:[#allocation10 + $0xe58] ss:$48 sps:$4 sm:$0xff]  }
 0x2e9   :  { %6210 = vmatprep.subr.bf16.mxu0 %v8431_v59  ;;  %v8506_v59 = vld [vmem:[#allocation10 + $0xeb4] ss:$48 sps:$4 sm:$0xff]  }
 0x2eb   :  { %6088 = vmatpush1.bf16.msra.mxu1 %v8426_v62  ;;  %v8509_v62 = vld [vmem:[#allocation10 + $0xebc] ss:$48 sps:$4 sm:$0xff]  }
 0x2ec   :  { %6211 = vmatpush1.bf16.msra.mxu0 %v8429_v63  ;;  %6089 = vmatprep.subr.bf16.mxu1 %v8434_v1  ;;  %v8504_v63 = vld [vmem:[#allocation10 + $0xeb0] ss:$48 sps:$4 sm:$0xff]   ;;  %v8507_v1 = vld [vmem:[#allocation10 + $0xeb8] ss:$48 sps:$4 sm:$0xff]  }
 0x2ed   :  { %6212 = vmatprep.subr.bf16.mxu0 %v8437_v2  ;;  %v8512_v2 = vld [vmem:[#allocation10 + $0xf14] ss:$48 sps:$4 sm:$0xff]  }
 0x2ef   :  { %6090 = vmatpush1.bf16.msra.mxu1 %v8432_v3  ;;  %v8515_v3 = vld [vmem:[#allocation10 + $0xf1c] ss:$48 sps:$4 sm:$0xff]  }
 0x2f0   :  { %6213 = vmatpush1.bf16.msra.mxu0 %v8435_v4  ;;  %6091 = vmatprep.subr.bf16.mxu1 %v8440_v5  ;;  %v8510_v4 = vld [vmem:[#allocation10 + $0xf10] ss:$48 sps:$4 sm:$0xff]   ;;  %v8513_v5 = vld [vmem:[#allocation10 + $0xf18] ss:$48 sps:$4 sm:$0xff]  }
 0x2f1   :  { %6214 = vmatprep.subr.bf16.mxu0 %v8443_v8  ;;  %v8518_v8 = vld [vmem:[#allocation10 + $0xf74] ss:$48 sps:$4 sm:$0xff]  }
 0x2f3   :  { %6092 = vmatpush1.bf16.msra.mxu1 %v8438_v9  ;;  %v8521_v9 = vld [vmem:[#allocation10 + $0xf7c] ss:$48 sps:$4 sm:$0xff]  }
 0x2f4   :  { %6215 = vmatpush1.bf16.msra.mxu0 %v8441_v10  ;;  %6093 = vmatprep.subr.bf16.mxu1 %v8446_v11  ;;  %v8516_v10 = vld [vmem:[#allocation10 + $0xf70] ss:$48 sps:$4 sm:$0xff]   ;;  %v8519_v11 = vld [vmem:[#allocation10 + $0xf78] ss:$48 sps:$4 sm:$0xff]  }
 0x2f5   :  { %6216 = vmatprep.subr.bf16.mxu0 %v8449_v12  ;;  %v8524_v12 = vld [vmem:[#allocation10 + $0xfd4] ss:$48 sps:$4 sm:$0xff]  }
 0x2f7   :  { %6094 = vmatpush1.bf16.msra.mxu1 %v8444_v13  ;;  %v8527_v13 = vld [vmem:[#allocation10 + $0xfdc] ss:$48 sps:$4 sm:$0xff]  }
 0x2f8   :  { %6217 = vmatpush1.bf16.msra.mxu0 %v8447_v15  ;;  %6095 = vmatprep.subr.bf16.mxu1 %v8452_v16  ;;  %v8522_v15 = vld [vmem:[#allocation10 + $0xfd0] ss:$48 sps:$4 sm:$0xff]   ;;  %v8525_v16 = vld [vmem:[#allocation10 + $0xfd8] ss:$48 sps:$4 sm:$0xff]  }
 0x2f9   :  { %6218 = vmatprep.subr.bf16.mxu0 %v8455_v17  ;;  %v8530_v17 = vld [vmem:[#allocation10 + $0x1034] ss:$48 sps:$4 sm:$0xff]  }
 0x2fb   :  { %6096 = vmatpush1.bf16.msra.mxu1 %v8450_v18  ;;  %v8533_v18 = vld [vmem:[#allocation10 + $0x103c] ss:$48 sps:$4 sm:$0xff]  }
 0x2fc   :  { %6219 = vmatpush1.bf16.msra.mxu0 %v8453_v19  ;;  %6097 = vmatprep.subr.bf16.mxu1 %v8458_v24  ;;  %v8528_v19 = vld [vmem:[#allocation10 + $0x1030] ss:$48 sps:$4 sm:$0xff]   ;;  %v8531_v24 = vld [vmem:[#allocation10 + $0x1038] ss:$48 sps:$4 sm:$0xff]  }
 0x2fd   :  { %6220 = vmatprep.subr.bf16.mxu0 %v8461_v25  ;;  %v8536_v25 = vld [vmem:[#allocation10 + $0x1094] ss:$48 sps:$4 sm:$0xff]  }
 0x2ff   :  { %6098 = vmatpush1.bf16.msra.mxu1 %v8456_v26  ;;  %v8539_v26 = vld [vmem:[#allocation10 + $0x109c] ss:$48 sps:$4 sm:$0xff]  }
 0x300   :  { %6221 = vmatpush1.bf16.msra.mxu0 %v8459_v27  ;;  %6108 = vmatprep.subr.bf16.mxu1 %v8464_v28  ;;  %v8534_v27 = vld [vmem:[#allocation10 + $0x1090] ss:$48 sps:$4 sm:$0xff]   ;;  %v8537_v28 = vld [vmem:[#allocation10 + $0x1098] ss:$48 sps:$4 sm:$0xff]  }
 0x301   :  { %6231 = vmatprep.subr.bf16.mxu0 %v8467_v29  ;;  %v8542_v29 = vld [vmem:[#allocation10 + $0x10f4] ss:$48 sps:$4 sm:$0xff]  }
 0x302   :  { %6100 = vmatmul.mubr.bf16.vlgmr.msra.gmra.mrb[12].mxu1 %v9238_v35 }
 0x303   :  { %6223 = vmatmul.mubr.bf16.vlgmr.msra.gmra.mrb[12].mxu0 %v9238_v35  ;;  %6109 = vmatpush1.bf16.msra.mxu1 %v8462_v30  ;;  %v8545_v30 = vld [vmem:[#allocation10 + $0x10fc] ss:$48 sps:$4 sm:$0xff]  }
 0x304   :  { %6140 = vmatprep.mubr.bf16.mxu1 %v9250_v44  ;;  %6232 = vmatpush1.bf16.msra.mxu0 %v8465_v6  ;;  %v8540_v6 = vld [vmem:[#allocation10 + $0x10f0] ss:$48 sps:$4 sm:$0xff]  }
 0x305   :  { %6263 = vmatprep.mubr.bf16.mxu0 %v9250_v44  ;;  %6110 = vmatprep.subr.bf16.mxu1 %v8470_v31  ;;  %v8543_v31 = vld [vmem:[#allocation10 + $0x10f8] ss:$48 sps:$4 sm:$0xff]  }
 0x306   :  { %6233 = vmatprep.subr.bf16.mxu0 %v8473_v32  ;;  %v8548_v32 = vld [vmem:[#allocation10 + $0x1154] ss:$48 sps:$4 sm:$0xff]  }
 0x307   :  { %6111 = vmatpush1.bf16.msra.mxu1 %v8468_v33  ;;  %v8551_v33 = vld [vmem:[#allocation10 + $0x115c] ss:$48 sps:$4 sm:$0xff]  }
 0x308   :  { %6234 = vmatpush1.bf16.msra.mxu0 %v8471_v37  ;;  %6112 = vmatprep.subr.bf16.mxu1 %v8476_v36  ;;  %v8546_v37 = vld [vmem:[#allocation10 + $0x1150] ss:$48 sps:$4 sm:$0xff]   ;;  %v8549_v36 = vld [vmem:[#allocation10 + $0x1158] ss:$48 sps:$4 sm:$0xff]  }
 0x309   :  { %6235 = vmatprep.subr.bf16.mxu0 %v8479_v34  ;;  %v8554_v34 = vld [vmem:[#allocation10 + $0x11b4] ss:$48 sps:$4 sm:$0xff]  }
 0x30b   :  { %6113 = vmatpush1.bf16.msra.mxu1 %v8474_v38  ;;  %v8557_v38 = vld [vmem:[#allocation10 + $0x11bc] ss:$48 sps:$4 sm:$0xff]  }
 0x30c   :  { %6236 = vmatpush1.bf16.msra.mxu0 %v8477_v39  ;;  %6114 = vmatprep.subr.bf16.mxu1 %v8482_v40  ;;  %v8552_v39 = vld [vmem:[#allocation10 + $0x11b0] ss:$48 sps:$4 sm:$0xff]   ;;  %v8555_v40 = vld [vmem:[#allocation10 + $0x11b8] ss:$48 sps:$4 sm:$0xff]  }
 0x30d   :  { %6237 = vmatprep.subr.bf16.mxu0 %v8485_v41  ;;  %v8560_v41 = vld [vmem:[#allocation10 + $0x24] ss:$48 sps:$4 sm:$0xff]  }
 0x30f   :  { %6115 = vmatpush1.bf16.msra.mxu1 %v8480_v42  ;;  %v8563_v42 = vld [vmem:[#allocation10 + $0x2c] ss:$48 sps:$4 sm:$0xff]  }
 0x310   :  { %6238 = vmatpush1.bf16.msra.mxu0 %v8483_v45  ;;  %6116 = vmatprep.subr.bf16.mxu1 %v8488_v46  ;;  %v8558_v45 = vld [vmem:[#allocation10 + $0x20] ss:$48 sps:$4 sm:$0xff]   ;;  %v8561_v46 = vld [vmem:[#allocation10 + $0x28] ss:$48 sps:$4 sm:$0xff]  }
 0x311   :  { %6239 = vmatprep.subr.bf16.mxu0 %v8491_v48  ;;  %v8566_v48 = vld [vmem:[#allocation10 + $0x84] ss:$48 sps:$4 sm:$0xff]  }
 0x313   :  { %6117 = vmatpush1.bf16.msra.mxu1 %v8486_v49  ;;  %v8569_v49 = vld [vmem:[#allocation10 + $0x8c] ss:$48 sps:$4 sm:$0xff]  }
 0x314   :  { %6240 = vmatpush1.bf16.msra.mxu0 %v8489_v50  ;;  %6118 = vmatprep.subr.bf16.mxu1 %v8494_v52  ;;  %v8564_v50 = vld [vmem:[#allocation10 + $0x80] ss:$48 sps:$4 sm:$0xff]   ;;  %v8567_v52 = vld [vmem:[#allocation10 + $0x88] ss:$48 sps:$4 sm:$0xff]  }
 0x315   :  { %6241 = vmatprep.subr.bf16.mxu0 %v8497_v53  ;;  %v8572_v53 = vld [vmem:[#allocation10 + $0xe4] ss:$48 sps:$4 sm:$0xff]  }
 0x317   :  { %6119 = vmatpush1.bf16.msra.mxu1 %v8492_v54  ;;  %v8575_v54 = vld [vmem:[#allocation10 + $0xec] ss:$48 sps:$4 sm:$0xff]  }
 0x318   :  { %6242 = vmatpush1.bf16.msra.mxu0 %v8495_v55  ;;  %6120 = vmatprep.subr.bf16.mxu1 %v8500_v56  ;;  %v8570_v55 = vld [vmem:[#allocation10 + $0xe0] ss:$48 sps:$4 sm:$0xff]   ;;  %v8573_v56 = vld [vmem:[#allocation10 + $0xe8] ss:$48 sps:$4 sm:$0xff]  }
 0x319   :  { %6243 = vmatprep.subr.bf16.mxu0 %v8503_v43  ;;  %v8578_v43 = vld [vmem:[#allocation10 + $0x144] ss:$48 sps:$4 sm:$0xff]  }
 0x31b   :  { %6121 = vmatpush1.bf16.msra.mxu1 %v8498_v57  ;;  %v8581_v57 = vld [vmem:[#allocation10 + $0x14c] ss:$48 sps:$4 sm:$0xff]  }
 0x31c   :  { %6244 = vmatpush1.bf16.msra.mxu0 %v8501_v58  ;;  %6122 = vmatprep.subr.bf16.mxu1 %v8506_v59  ;;  %v8576_v58 = vld [vmem:[#allocation10 + $0x140] ss:$48 sps:$4 sm:$0xff]   ;;  %v8579_v59 = vld [vmem:[#allocation10 + $0x148] ss:$48 sps:$4 sm:$0xff]  }
 0x31d   :  { %6245 = vmatprep.subr.bf16.mxu0 %v8509_v62  ;;  %v8584_v62 = vld [vmem:[#allocation10 + $0x1a4] ss:$48 sps:$4 sm:$0xff]  }
 0x31f   :  { %6123 = vmatpush1.bf16.msra.mxu1 %v8504_v63  ;;  %v8587_v63 = vld [vmem:[#allocation10 + $0x1ac] ss:$48 sps:$4 sm:$0xff]  }
 0x320   :  { %6246 = vmatpush1.bf16.msra.mxu0 %v8507_v1  ;;  %6124 = vmatprep.subr.bf16.mxu1 %v8512_v2  ;;  %v9272_v1 = vld [vmem:[#allocation12] sm:$0xff]  ;;  %v8585_v2 = vld [vmem:[#allocation10 + $0x1a8] ss:$48 sps:$4 sm:$0xff]  }
 0x321   :  { %6247 = vmatprep.subr.bf16.mxu0 %v8515_v3  ;;  %v8590_v3 = vld [vmem:[#allocation10 + $0x204] ss:$48 sps:$4 sm:$0xff]  }
 0x323   :  { %6125 = vmatpush1.bf16.msra.mxu1 %v8510_v4  ;;  %v8593_v4 = vld [vmem:[#allocation10 + $0x20c] ss:$48 sps:$4 sm:$0xff]  }
 0x324   :  { %6248 = vmatpush1.bf16.msra.mxu0 %v8513_v5  ;;  %6126 = vmatprep.subr.bf16.mxu1 %v8518_v8  ;;  %v2843_v5 = vrot.slane %v9272_v1, %v9207_v51  ;;  %v2851_v8 = vrot.slane %v9272_v1, %v9227_v21 }
 0x325   :  { %6249 = vmatprep.subr.bf16.mxu0 %v8521_v9  ;;  %v8588_v9 = vld [vmem:[#allocation10 + $0x200] ss:$48 sps:$4 sm:$0xff]  }
 0x327   :  { %6127 = vmatpush1.bf16.msra.mxu1 %v8516_v10  ;;  %v2847_v10 = vrot.slane %v9272_v1, %v9210_v14 }
 0x328   :  { %6250 = vmatpush1.bf16.msra.mxu0 %v8519_v11  ;;  %6128 = vmatprep.subr.bf16.mxu1 %v8524_v12  ;;  %v2855_v11 = vrot.slane %v9272_v1, %v9230_v22  ;;  %v8591_v12 = vld [vmem:[#allocation10 + $0x208] ss:$48 sps:$4 sm:$0xff]  }
 0x329   :  { %6251 = vmatprep.subr.bf16.mxu0 %v8527_v13  ;;  %v8596_v13 = vld [vmem:[#allocation10 + $0x264] ss:$48 sps:$4 sm:$0xff]  }
 0x32b   :  { %6129 = vmatpush1.bf16.msra.mxu1 %v8522_v15 }
 0x32c   :  { %6252 = vmatpush1.bf16.msra.mxu0 %v8525_v16  ;;  %6130 = vmatprep.subr.bf16.mxu1 %v8530_v17  ;;  %v8599_v17 = vld [vmem:[#allocation10 + $0x26c] ss:$48 sps:$4 sm:$0xff]  }
 0x32d   :  { %6253 = vmatprep.subr.bf16.mxu0 %v8533_v18 }
 0x32f   :  { %6131 = vmatpush1.bf16.msra.mxu1 %v8528_v19 }
 0x330   :  { %6254 = vmatpush1.bf16.msra.mxu0 %v8531_v24  ;;  %6132 = vmatprep.subr.bf16.mxu1 %v8536_v25 }
 0x331   :  { %6255 = vmatprep.subr.bf16.mxu0 %v8539_v26 }
 0x333   :  { %6133 = vmatpush1.bf16.msra.mxu1 %v8534_v27 }
 0x334   :  { %6256 = vmatpush1.bf16.msra.mxu0 %v8537_v28  ;;  %6134 = vmatprep.subr.bf16.mxu1 %v8542_v29 }
 0x335   :  { %6257 = vmatprep.subr.bf16.mxu0 %v8545_v30  ;;  %v8594_v30 = vld [vmem:[#allocation10 + $0x260] ss:$48 sps:$4 sm:$0xff]  }
 0x337   :  { %6135 = vmatpush1.bf16.msra.mxu1 %v8540_v6 }
 0x338   :  { %6258 = vmatpush1.bf16.msra.mxu0 %v8543_v31  ;;  %6136 = vmatprep.subr.bf16.mxu1 %v8548_v32  ;;  %v8597_v32 = vld [vmem:[#allocation10 + $0x268] ss:$48 sps:$4 sm:$0xff]  }
 0x339   :  { %6259 = vmatprep.subr.bf16.mxu0 %v8551_v33  ;;  %v8602_v33 = vld [vmem:[#allocation10 + $0x2c4] ss:$48 sps:$4 sm:$0xff]  }
 0x33b   :  { %6137 = vmatpush1.bf16.msra.mxu1 %v8546_v37  ;;  %v8605_v37 = vld [vmem:[#allocation10 + $0x2cc] ss:$48 sps:$4 sm:$0xff]  }
 0x33c   :  { %6260 = vmatpush1.bf16.msra.mxu0 %v8549_v36  ;;  %6138 = vmatprep.subr.bf16.mxu1 %v8554_v34  ;;  %v8600_v36 = vld [vmem:[#allocation10 + $0x2c0] ss:$48 sps:$4 sm:$0xff]   ;;  %v8603_v34 = vld [vmem:[#allocation10 + $0x2c8] ss:$48 sps:$4 sm:$0xff]  }
 0x33d   :  { %6261 = vmatprep.subr.bf16.mxu0 %v8557_v38  ;;  %v8608_v38 = vld [vmem:[#allocation10 + $0x324] ss:$48 sps:$4 sm:$0xff]  }
 0x33f   :  { %6139 = vmatpush1.bf16.msra.mxu1 %v8552_v39  ;;  %v8611_v39 = vld [vmem:[#allocation10 + $0x32c] ss:$48 sps:$4 sm:$0xff]  }
 0x340   :  { %6262 = vmatpush1.bf16.msra.mxu0 %v8555_v40  ;;  %6272 = vmatprep.subr.bf16.mxu1 %v8560_v41  ;;  %v8606_v40 = vld [vmem:[#allocation10 + $0x320] ss:$48 sps:$4 sm:$0xff]   ;;  %v8609_v41 = vld [vmem:[#allocation10 + $0x328] ss:$48 sps:$4 sm:$0xff]  }
 0x341   :  { %6395 = vmatprep.subr.bf16.mxu0 %v8563_v42  ;;  %v8614_v42 = vld [vmem:[#allocation10 + $0x384] ss:$48 sps:$4 sm:$0xff]  }
 0x342   :  { %6141 = vmatmul.mubr.bf16.vlgmr.msra.gmra.mrb[12].mxu1 %v9252_v60 }
 0x343   :  { %6264 = vmatmul.mubr.bf16.vlgmr.msra.gmra.mrb[12].mxu0 %v9252_v60  ;;  %6273 = vmatpush1.bf16.msra.mxu1 %v8558_v45  ;;  %v8617_v45 = vld [vmem:[#allocation10 + $0x38c] ss:$48 sps:$4 sm:$0xff]  }
 0x344   :  { %6304 = vmatprep.mubr.bf16.mxu1 %v9218_v61  ;;  %6396 = vmatpush1.bf16.msra.mxu0 %v8561_v46  ;;  %v8612_v46 = vld [vmem:[#allocation10 + $0x380] ss:$48 sps:$4 sm:$0xff]  }
 0x345   :  { %6427 = vmatprep.mubr.bf16.mxu0 %v9218_v61  ;;  %6274 = vmatprep.subr.bf16.mxu1 %v8566_v48  ;;  %v8582_v61 = vld [vmem:[#allocation10 + $0x1a0] ss:$48 sps:$4 sm:$0xff]   ;;  %v8615_v48 = vld [vmem:[#allocation10 + $0x388] ss:$48 sps:$4 sm:$0xff]  }
 0x346   :  { %6397 = vmatprep.subr.bf16.mxu0 %v8569_v49  ;;  %v8620_v49 = vld [vmem:[#allocation10 + $0x3e4] ss:$48 sps:$4 sm:$0xff]  }
 0x347   :  { %6275 = vmatpush1.bf16.msra.mxu1 %v8564_v50  ;;  %v8623_v50 = vld [vmem:[#allocation10 + $0x3ec] ss:$48 sps:$4 sm:$0xff]  }
 0x348   :  { %6398 = vmatpush1.bf16.msra.mxu0 %v8567_v52  ;;  %6276 = vmatprep.subr.bf16.mxu1 %v8572_v53  ;;  %v8618_v52 = vld [vmem:[#allocation10 + $0x3e0] ss:$48 sps:$4 sm:$0xff]   ;;  %v8621_v53 = vld [vmem:[#allocation10 + $0x3e8] ss:$48 sps:$4 sm:$0xff]  }
 0x349   :  { %6399 = vmatprep.subr.bf16.mxu0 %v8575_v54  ;;  %v8626_v54 = vld [vmem:[#allocation10 + $0x444] ss:$48 sps:$4 sm:$0xff]  }
 0x34b   :  { %6277 = vmatpush1.bf16.msra.mxu1 %v8570_v55  ;;  %v8629_v55 = vld [vmem:[#allocation10 + $0x44c] ss:$48 sps:$4 sm:$0xff]  }
 0x34c   :  { %6400 = vmatpush1.bf16.msra.mxu0 %v8573_v56  ;;  %6278 = vmatprep.subr.bf16.mxu1 %v8578_v43  ;;  %v8624_v56 = vld [vmem:[#allocation10 + $0x440] ss:$48 sps:$4 sm:$0xff]   ;;  %v8627_v43 = vld [vmem:[#allocation10 + $0x448] ss:$48 sps:$4 sm:$0xff]  }
 0x34d   :  { %6401 = vmatprep.subr.bf16.mxu0 %v8581_v57  ;;  %v8632_v57 = vld [vmem:[#allocation10 + $0x4a4] ss:$48 sps:$4 sm:$0xff]  }
 0x34f   :  { %6279 = vmatpush1.bf16.msra.mxu1 %v8576_v58  ;;  %v8635_v58 = vld [vmem:[#allocation10 + $0x4ac] ss:$48 sps:$4 sm:$0xff]  }
 0x350   :  { %6402 = vmatpush1.bf16.msra.mxu0 %v8579_v59  ;;  %6280 = vmatprep.subr.bf16.mxu1 %v8584_v62  ;;  %v8630_v59 = vld [vmem:[#allocation10 + $0x4a0] ss:$48 sps:$4 sm:$0xff]   ;;  %v8633_v62 = vld [vmem:[#allocation10 + $0x4a8] ss:$48 sps:$4 sm:$0xff]  }
 0x351   :  { %6403 = vmatprep.subr.bf16.mxu0 %v8587_v63  ;;  %v8638_v63 = vld [vmem:[#allocation10 + $0x504] ss:$48 sps:$4 sm:$0xff]  }
 0x353   :  { %6281 = vmatpush1.bf16.msra.mxu1 %v8582_v61  ;;  %v8641_v61 = vld [vmem:[#allocation10 + $0x50c] ss:$48 sps:$4 sm:$0xff]  }
 0x354   :  { %6404 = vmatpush1.bf16.msra.mxu0 %v8585_v2  ;;  %6282 = vmatprep.subr.bf16.mxu1 %v8590_v3  ;;  %v8636_v2 = vld [vmem:[#allocation10 + $0x500] ss:$48 sps:$4 sm:$0xff]   ;;  %v8639_v3 = vld [vmem:[#allocation10 + $0x508] ss:$48 sps:$4 sm:$0xff]  }
 0x355   :  { %v5896_v15 = vpop.f32.mrb[8].mxu1  ;;  %v6019_v16 = vpop.f32.mrb[8].mxu0  ;;  %6405 = vmatprep.subr.bf16.mxu0 %v8593_v4  ;;  %v8644_v4 = vld [vmem:[#allocation10 + $0x564] ss:$48 sps:$4 sm:$0xff]  }
 0x356   :  { %v7452_v18 = vadd.f32 %v5896_v15, %v2843_v5  ;;  %v7454_v19 = vadd.f32 %v6019_v16, %v2851_v8  ;;  %v5898_v24 = vpop.f32.mrb[9].mxu1  ;;  %v6021_v25 = vpop.f32.mrb[9].mxu0  ;;  %v8647_v5 = vld [vmem:[#allocation10 + $0x56c] ss:$48 sps:$4 sm:$0xff]   ;;  %v8642_v8 = vld [vmem:[#allocation10 + $0x560] ss:$48 sps:$4 sm:$0xff]  }
 0x357   :  { %v7453_v26 = vadd.f32 %v5898_v24, %v2847_v10  ;;  %v7455_v27 = vadd.f32 %v6021_v25, %v2855_v11  ;;  %6283 = vmatpush1.bf16.msra.mxu1 %v8588_v9  ;;  %v5900_v28 = vpop.f32.mrb[10].mxu1  ;;  %v6023_v29 = vpop.f32.mrb[10].mxu0  ;;  %v8645_v9 = vld [vmem:[#allocation10 + $0x568] ss:$48 sps:$4 sm:$0xff]   ;;  %v8650_v10 = vld [vmem:[#allocation10 + $0x5c4] ss:$48 sps:$4 sm:$0xff]  }
 0x358   :  { %6518 = vst [vmem:[#allocation13] sm:$0xff] %v7452_v18  ;;  %6520 = vst [vmem:[#allocation13 + $0x10] sm:$0xff] %v7454_v19  ;;  %6406 = vmatpush1.bf16.msra.mxu0 %v8591_v12  ;;  %v5901_v6 = vpop.f32.mrb[11].mxu1  ;;  %v6024_v31 = vpop.f32.mrb[11].mxu0  ;;  %6284 = vmatprep.subr.bf16.mxu1 %v8596_v13  ;;  %v8653_v11 = vld [vmem:[#allocation10 + $0x5cc] ss:$48 sps:$4 sm:$0xff]  }
 0x359   :  { %6519 = vst [vmem:[#allocation13 + $0x8] sm:$0xff] %v7453_v26  ;;  %6521 = vst [vmem:[#allocation13 + $0x18] sm:$0xff] %v7455_v27  ;;  %6407 = vmatprep.subr.bf16.mxu0 %v8599_v17  ;;  %v8648_v12 = vld [vmem:[#allocation10 + $0x5c0] ss:$48 sps:$4 sm:$0xff]   ;;  %v8651_v13 = vld [vmem:[#allocation10 + $0x5c8] ss:$48 sps:$4 sm:$0xff]  }
 0x35a   :  { %v8656_v15 = vld [vmem:[#allocation10 + $0x624] ss:$48 sps:$4 sm:$0xff]   ;;  %v8659_v16 = vld [vmem:[#allocation10 + $0x62c] ss:$48 sps:$4 sm:$0xff]   ;;  %v8654_v17 = vld [vmem:[#allocation10 + $0x620] ss:$48 sps:$4 sm:$0xff]  }
 0x35b   :  { %6285 = vmatpush1.bf16.msra.mxu1 %v8594_v30  ;;  %v8657_v18 = vld [vmem:[#allocation10 + $0x628] ss:$48 sps:$4 sm:$0xff]   ;;  %v8662_v19 = vld [vmem:[#allocation10 + $0x684] ss:$48 sps:$4 sm:$0xff]   ;;  %v8665_v24 = vld [vmem:[#allocation10 + $0x68c] ss:$48 sps:$4 sm:$0xff]  }
 0x35c   :  { %6408 = vmatpush1.bf16.msra.mxu0 %v8597_v32  ;;  %6286 = vmatprep.subr.bf16.mxu1 %v8602_v33  ;;  %v8660_v25 = vld [vmem:[#allocation10 + $0x680] ss:$48 sps:$4 sm:$0xff]   ;;  %v8663_v26 = vld [vmem:[#allocation10 + $0x688] ss:$48 sps:$4 sm:$0xff]   ;;  %v8668_v27 = vld [vmem:[#allocation10 + $0x6e4] ss:$48 sps:$4 sm:$0xff]  }
 0x35d   :  { %6409 = vmatprep.subr.bf16.mxu0 %v8605_v37  ;;  %v8671_v28 = vld [vmem:[#allocation10 + $0x6ec] ss:$48 sps:$4 sm:$0xff]   ;;  %v8666_v29 = vld [vmem:[#allocation10 + $0x6e0] ss:$48 sps:$4 sm:$0xff]   ;;  %v8669_v30 = vld [vmem:[#allocation10 + $0x6e8] ss:$48 sps:$4 sm:$0xff]  }
 0x35e   :  { %v8674_v6 = vld [vmem:[#allocation10 + $0x744] ss:$48 sps:$4 sm:$0xff]   ;;  %v8672_v31 = vld [vmem:[#allocation10 + $0x740] ss:$48 sps:$4 sm:$0xff]   ;;  %v8675_v32 = vld [vmem:[#allocation10 + $0x748] ss:$48 sps:$4 sm:$0xff]  }
 0x35f   :  { %6287 = vmatpush1.bf16.msra.mxu1 %v8600_v36  ;;  %v8680_v33 = vld [vmem:[#allocation10 + $0x7a4] ss:$48 sps:$4 sm:$0xff]   ;;  %v8683_v37 = vld [vmem:[#allocation10 + $0x7ac] ss:$48 sps:$4 sm:$0xff]   ;;  %v8681_v36 = vld [vmem:[#allocation10 + $0x7a8] ss:$48 sps:$4 sm:$0xff]  }
 0x360   :  { %6410 = vmatpush1.bf16.msra.mxu0 %v8603_v34  ;;  %6288 = vmatprep.subr.bf16.mxu1 %v8608_v38  ;;  %v8686_v34 = vld [vmem:[#allocation10 + $0x804] ss:$48 sps:$4 sm:$0xff]   ;;  %v8689_v38 = vld [vmem:[#allocation10 + $0x80c] ss:$48 sps:$4 sm:$0xff]  }
 0x361   :  { %6411 = vmatprep.subr.bf16.mxu0 %v8611_v39  ;;  %v8684_v39 = vld [vmem:[#allocation10 + $0x800] ss:$48 sps:$4 sm:$0xff]  }
 0x363   :  { %6289 = vmatpush1.bf16.msra.mxu1 %v8606_v40  ;;  %v8687_v40 = vld [vmem:[#allocation10 + $0x808] ss:$48 sps:$4 sm:$0xff]  }
 0x364   :  { %6412 = vmatpush1.bf16.msra.mxu0 %v8609_v41  ;;  %6290 = vmatprep.subr.bf16.mxu1 %v8614_v42  ;;  %v8692_v41 = vld [vmem:[#allocation10 + $0x864] ss:$48 sps:$4 sm:$0xff]   ;;  %v8695_v42 = vld [vmem:[#allocation10 + $0x86c] ss:$48 sps:$4 sm:$0xff]  }
 0x365   :  { %6413 = vmatprep.subr.bf16.mxu0 %v8617_v45  ;;  %v8690_v45 = vld [vmem:[#allocation10 + $0x860] ss:$48 sps:$4 sm:$0xff]  }
 0x367   :  { %6291 = vmatpush1.bf16.msra.mxu1 %v8612_v46  ;;  %v8693_v46 = vld [vmem:[#allocation10 + $0x868] ss:$48 sps:$4 sm:$0xff]  }
 0x368   :  { %6414 = vmatpush1.bf16.msra.mxu0 %v8615_v48  ;;  %6292 = vmatprep.subr.bf16.mxu1 %v8620_v49  ;;  %v8698_v48 = vld [vmem:[#allocation10 + $0x8c4] ss:$48 sps:$4 sm:$0xff]   ;;  %v8701_v49 = vld [vmem:[#allocation10 + $0x8cc] ss:$48 sps:$4 sm:$0xff]  }
 0x369   :  { %6415 = vmatprep.subr.bf16.mxu0 %v8623_v50  ;;  %v8696_v50 = vld [vmem:[#allocation10 + $0x8c0] ss:$48 sps:$4 sm:$0xff]  }
 0x36b   :  { %6293 = vmatpush1.bf16.msra.mxu1 %v8618_v52  ;;  %v8699_v52 = vld [vmem:[#allocation10 + $0x8c8] ss:$48 sps:$4 sm:$0xff]  }
 0x36c   :  { %6416 = vmatpush1.bf16.msra.mxu0 %v8621_v53  ;;  %6294 = vmatprep.subr.bf16.mxu1 %v8626_v54  ;;  %v8704_v53 = vld [vmem:[#allocation10 + $0x924] ss:$48 sps:$4 sm:$0xff]   ;;  %v8707_v54 = vld [vmem:[#allocation10 + $0x92c] ss:$48 sps:$4 sm:$0xff]  }
 0x36d   :  { %6417 = vmatprep.subr.bf16.mxu0 %v8629_v55  ;;  %v8702_v55 = vld [vmem:[#allocation10 + $0x920] ss:$48 sps:$4 sm:$0xff]  }
 0x36f   :  { %6295 = vmatpush1.bf16.msra.mxu1 %v8624_v56  ;;  %v8705_v56 = vld [vmem:[#allocation10 + $0x928] ss:$48 sps:$4 sm:$0xff]  }
 0x370   :  { %6418 = vmatpush1.bf16.msra.mxu0 %v8627_v43  ;;  %6296 = vmatprep.subr.bf16.mxu1 %v8632_v57  ;;  %v8710_v43 = vld [vmem:[#allocation10 + $0x984] ss:$48 sps:$4 sm:$0xff]   ;;  %v8713_v57 = vld [vmem:[#allocation10 + $0x98c] ss:$48 sps:$4 sm:$0xff]  }
 0x371   :  { %6419 = vmatprep.subr.bf16.mxu0 %v8635_v58  ;;  %v8708_v58 = vld [vmem:[#allocation10 + $0x980] ss:$48 sps:$4 sm:$0xff]  }
 0x373   :  { %6297 = vmatpush1.bf16.msra.mxu1 %v8630_v59  ;;  %v8711_v59 = vld [vmem:[#allocation10 + $0x988] ss:$48 sps:$4 sm:$0xff]  }
 0x374   :  { %6420 = vmatpush1.bf16.msra.mxu0 %v8633_v62  ;;  %6298 = vmatprep.subr.bf16.mxu1 %v8638_v63  ;;  %v8716_v62 = vld [vmem:[#allocation10 + $0x9e4] ss:$48 sps:$4 sm:$0xff]   ;;  %v8719_v63 = vld [vmem:[#allocation10 + $0x9ec] ss:$48 sps:$4 sm:$0xff]  }
 0x375   :  { %6421 = vmatprep.subr.bf16.mxu0 %v8641_v61  ;;  %v8714_v61 = vld [vmem:[#allocation10 + $0x9e0] ss:$48 sps:$4 sm:$0xff]  }
 0x377   :  { %6299 = vmatpush1.bf16.msra.mxu1 %v8636_v2  ;;  %v8717_v2 = vld [vmem:[#allocation10 + $0x9e8] ss:$48 sps:$4 sm:$0xff]  }
 0x378   :  { %6422 = vmatpush1.bf16.msra.mxu0 %v8639_v3  ;;  %6300 = vmatprep.subr.bf16.mxu1 %v8644_v4  ;;  %v8722_v3 = vld [vmem:[#allocation10 + $0xa44] ss:$48 sps:$4 sm:$0xff]   ;;  %v8725_v4 = vld [vmem:[#allocation10 + $0xa4c] ss:$48 sps:$4 sm:$0xff]  }
 0x379   :  { %6423 = vmatprep.subr.bf16.mxu0 %v8647_v5  ;;  %v8720_v5 = vld [vmem:[#allocation10 + $0xa40] ss:$48 sps:$4 sm:$0xff]  }
 0x37b   :  { %6301 = vmatpush1.bf16.msra.mxu1 %v8642_v8  ;;  %v8723_v8 = vld [vmem:[#allocation10 + $0xa48] ss:$48 sps:$4 sm:$0xff]  }
 0x37c   :  { %6424 = vmatpush1.bf16.msra.mxu0 %v8645_v9  ;;  %6302 = vmatprep.subr.bf16.mxu1 %v8650_v10  ;;  %v8728_v9 = vld [vmem:[#allocation10 + $0xaa4] ss:$48 sps:$4 sm:$0xff]   ;;  %v8731_v10 = vld [vmem:[#allocation10 + $0xaac] ss:$48 sps:$4 sm:$0xff]  }
 0x37d   :  { %6425 = vmatprep.subr.bf16.mxu0 %v8653_v11  ;;  %v8726_v11 = vld [vmem:[#allocation10 + $0xaa0] ss:$48 sps:$4 sm:$0xff]  }
 0x37f   :  { %6303 = vmatpush1.bf16.msra.mxu1 %v8648_v12  ;;  %v8729_v12 = vld [vmem:[#allocation10 + $0xaa8] ss:$48 sps:$4 sm:$0xff]  }
 0x380   :  { %6426 = vmatpush1.bf16.msra.mxu0 %v8651_v13  ;;  %6313 = vmatprep.subr.bf16.mxu1 %v8656_v15  ;;  %v8734_v13 = vld [vmem:[#allocation10 + $0xb04] ss:$48 sps:$4 sm:$0xff]   ;;  %v8737_v15 = vld [vmem:[#allocation10 + $0xb0c] ss:$48 sps:$4 sm:$0xff]  }
 0x381   :  { %6436 = vmatprep.subr.bf16.mxu0 %v8659_v16  ;;  %v8732_v16 = vld [vmem:[#allocation10 + $0xb00] ss:$48 sps:$4 sm:$0xff]  }
 0x382   :  { %6305 = vmatmul.mubr.bf16.vlgmr.msra.gmra.mrb[16].mxu1 %v9220_v0 }
 0x383   :  { %6428 = vmatmul.mubr.bf16.vlgmr.msra.gmra.mrb[16].mxu0 %v9220_v0  ;;  %6314 = vmatpush1.bf16.msra.mxu1 %v8654_v17  ;;  %v8677_v0 = vld [vmem:[#allocation10 + $0x74c] ss:$48 sps:$4 sm:$0xff]   ;;  %v8735_v17 = vld [vmem:[#allocation10 + $0xb08] ss:$48 sps:$4 sm:$0xff]  }
 0x384   :  { %6345 = vmatprep.mubr.bf16.mxu1 %v9236_v47  ;;  %6437 = vmatpush1.bf16.msra.mxu0 %v8657_v18  ;;  %v8740_v18 = vld [vmem:[#allocation10 + $0xb64] ss:$48 sps:$4 sm:$0xff]  }
 0x385   :  { %6468 = vmatprep.mubr.bf16.mxu0 %v9236_v47  ;;  %6315 = vmatprep.subr.bf16.mxu1 %v8662_v19  ;;  %v8678_v47 = vld [vmem:[#allocation10 + $0x7a0] ss:$48 sps:$4 sm:$0xff]   ;;  %v8743_v19 = vld [vmem:[#allocation10 + $0xb6c] ss:$48 sps:$4 sm:$0xff]  }
 0x386   :  { %6438 = vmatprep.subr.bf16.mxu0 %v8665_v24  ;;  %v8738_v24 = vld [vmem:[#allocation10 + $0xb60] ss:$48 sps:$4 sm:$0xff]  }
 0x387   :  { %6316 = vmatpush1.bf16.msra.mxu1 %v8660_v25  ;;  %v8741_v25 = vld [vmem:[#allocation10 + $0xb68] ss:$48 sps:$4 sm:$0xff]  }
 0x388   :  { %6439 = vmatpush1.bf16.msra.mxu0 %v8663_v26  ;;  %6317 = vmatprep.subr.bf16.mxu1 %v8668_v27  ;;  %v8746_v26 = vld [vmem:[#allocation10 + $0xbc4] ss:$48 sps:$4 sm:$0xff]   ;;  %v8749_v27 = vld [vmem:[#allocation10 + $0xbcc] ss:$48 sps:$4 sm:$0xff]  }
 0x389   :  { %6440 = vmatprep.subr.bf16.mxu0 %v8671_v28  ;;  %v8744_v28 = vld [vmem:[#allocation10 + $0xbc0] ss:$48 sps:$4 sm:$0xff]  }
 0x38b   :  { %6318 = vmatpush1.bf16.msra.mxu1 %v8666_v29  ;;  %v8747_v29 = vld [vmem:[#allocation10 + $0xbc8] ss:$48 sps:$4 sm:$0xff]  }
 0x38c   :  { %6441 = vmatpush1.bf16.msra.mxu0 %v8669_v30  ;;  %6319 = vmatprep.subr.bf16.mxu1 %v8674_v6  ;;  %v8752_v30 = vld [vmem:[#allocation10 + $0xc24] ss:$48 sps:$4 sm:$0xff]   ;;  %v8755_v6 = vld [vmem:[#allocation10 + $0xc2c] ss:$48 sps:$4 sm:$0xff]  }
 0x38d   :  { %6442 = vmatprep.subr.bf16.mxu0 %v8677_v0  ;;  %v8750_v0 = vld [vmem:[#allocation10 + $0xc20] ss:$48 sps:$4 sm:$0xff]  }
 0x38f   :  { %6320 = vmatpush1.bf16.msra.mxu1 %v8672_v31  ;;  %v8753_v31 = vld [vmem:[#allocation10 + $0xc28] ss:$48 sps:$4 sm:$0xff]  }
 0x390   :  { %6443 = vmatpush1.bf16.msra.mxu0 %v8675_v32  ;;  %6321 = vmatprep.subr.bf16.mxu1 %v8680_v33  ;;  %v8758_v32 = vld [vmem:[#allocation10 + $0xc84] ss:$48 sps:$4 sm:$0xff]   ;;  %v8761_v33 = vld [vmem:[#allocation10 + $0xc8c] ss:$48 sps:$4 sm:$0xff]  }
 0x391   :  { %6444 = vmatprep.subr.bf16.mxu0 %v8683_v37  ;;  %v8756_v37 = vld [vmem:[#allocation10 + $0xc80] ss:$48 sps:$4 sm:$0xff]  }
 0x393   :  { %6322 = vmatpush1.bf16.msra.mxu1 %v8678_v47  ;;  %v8759_v47 = vld [vmem:[#allocation10 + $0xc88] ss:$48 sps:$4 sm:$0xff]  }
 0x394   :  { %6445 = vmatpush1.bf16.msra.mxu0 %v8681_v36  ;;  %6323 = vmatprep.subr.bf16.mxu1 %v8686_v34  ;;  %v8764_v36 = vld [vmem:[#allocation10 + $0xce4] ss:$48 sps:$4 sm:$0xff]   ;;  %v8767_v34 = vld [vmem:[#allocation10 + $0xcec] ss:$48 sps:$4 sm:$0xff]  }
 0x395   :  { %6446 = vmatprep.subr.bf16.mxu0 %v8689_v38  ;;  %v8762_v38 = vld [vmem:[#allocation10 + $0xce0] ss:$48 sps:$4 sm:$0xff]  }
 0x397   :  { %6324 = vmatpush1.bf16.msra.mxu1 %v8684_v39  ;;  %v8765_v39 = vld [vmem:[#allocation10 + $0xce8] ss:$48 sps:$4 sm:$0xff]  }
 0x398   :  { %6447 = vmatpush1.bf16.msra.mxu0 %v8687_v40  ;;  %6325 = vmatprep.subr.bf16.mxu1 %v8692_v41  ;;  %v8770_v40 = vld [vmem:[#allocation10 + $0xd44] ss:$48 sps:$4 sm:$0xff]   ;;  %v8768_v41 = vld [vmem:[#allocation10 + $0xd40] ss:$48 sps:$4 sm:$0xff]  }
 0x399   :  { %6448 = vmatprep.subr.bf16.mxu0 %v8695_v42  ;;  %v8771_v42 = vld [vmem:[#allocation10 + $0xd48] ss:$48 sps:$4 sm:$0xff]  }
 0x39b   :  { %6326 = vmatpush1.bf16.msra.mxu1 %v8690_v45  ;;  %v8776_v45 = vld [vmem:[#allocation10 + $0xda4] ss:$48 sps:$4 sm:$0xff]  }
 0x39c   :  { %6449 = vmatpush1.bf16.msra.mxu0 %v8693_v46  ;;  %6327 = vmatprep.subr.bf16.mxu1 %v8698_v48  ;;  %v8779_v46 = vld [vmem:[#allocation10 + $0xdac] ss:$48 sps:$4 sm:$0xff]   ;;  %v8777_v48 = vld [vmem:[#allocation10 + $0xda8] ss:$48 sps:$4 sm:$0xff]  }
 0x39d   :  { %6450 = vmatprep.subr.bf16.mxu0 %v8701_v49  ;;  %v8782_v49 = vld [vmem:[#allocation10 + $0xe04] ss:$48 sps:$4 sm:$0xff]  }
 0x39f   :  { %6328 = vmatpush1.bf16.msra.mxu1 %v8696_v50  ;;  %v8785_v50 = vld [vmem:[#allocation10 + $0xe0c] ss:$48 sps:$4 sm:$0xff]  }
 0x3a0   :  { %6451 = vmatpush1.bf16.msra.mxu0 %v8699_v52  ;;  %6329 = vmatprep.subr.bf16.mxu1 %v8704_v53  ;;  %v8780_v52 = vld [vmem:[#allocation10 + $0xe00] ss:$48 sps:$4 sm:$0xff]   ;;  %v8783_v53 = vld [vmem:[#allocation10 + $0xe08] ss:$48 sps:$4 sm:$0xff]  }
 0x3a1   :  { %6452 = vmatprep.subr.bf16.mxu0 %v8707_v54  ;;  %v8788_v54 = vld [vmem:[#allocation10 + $0xe64] ss:$48 sps:$4 sm:$0xff]  }
 0x3a3   :  { %6330 = vmatpush1.bf16.msra.mxu1 %v8702_v55  ;;  %v8791_v55 = vld [vmem:[#allocation10 + $0xe6c] ss:$48 sps:$4 sm:$0xff]  }
 0x3a4   :  { %6453 = vmatpush1.bf16.msra.mxu0 %v8705_v56  ;;  %6331 = vmatprep.subr.bf16.mxu1 %v8710_v43  ;;  %v8786_v56 = vld [vmem:[#allocation10 + $0xe60] ss:$48 sps:$4 sm:$0xff]   ;;  %v8789_v43 = vld [vmem:[#allocation10 + $0xe68] ss:$48 sps:$4 sm:$0xff]  }
 0x3a5   :  { %6454 = vmatprep.subr.bf16.mxu0 %v8713_v57  ;;  %v8794_v57 = vld [vmem:[#allocation10 + $0xec4] ss:$48 sps:$4 sm:$0xff]  }
 0x3a7   :  { %6332 = vmatpush1.bf16.msra.mxu1 %v8708_v58  ;;  %v8797_v58 = vld [vmem:[#allocation10 + $0xecc] ss:$48 sps:$4 sm:$0xff]  }
 0x3a8   :  { %6455 = vmatpush1.bf16.msra.mxu0 %v8711_v59  ;;  %6333 = vmatprep.subr.bf16.mxu1 %v8716_v62  ;;  %v8792_v59 = vld [vmem:[#allocation10 + $0xec0] ss:$48 sps:$4 sm:$0xff]   ;;  %v8795_v62 = vld [vmem:[#allocation10 + $0xec8] ss:$48 sps:$4 sm:$0xff]  }
 0x3a9   :  { %6456 = vmatprep.subr.bf16.mxu0 %v8719_v63  ;;  %v8800_v63 = vld [vmem:[#allocation10 + $0xf24] ss:$48 sps:$4 sm:$0xff]  }
 0x3ab   :  { %6334 = vmatpush1.bf16.msra.mxu1 %v8714_v61  ;;  %v8803_v61 = vld [vmem:[#allocation10 + $0xf2c] ss:$48 sps:$4 sm:$0xff]  }
 0x3ac   :  { %6457 = vmatpush1.bf16.msra.mxu0 %v8717_v2  ;;  %6335 = vmatprep.subr.bf16.mxu1 %v8722_v3  ;;  %v8798_v2 = vld [vmem:[#allocation10 + $0xf20] ss:$48 sps:$4 sm:$0xff]   ;;  %v8801_v3 = vld [vmem:[#allocation10 + $0xf28] ss:$48 sps:$4 sm:$0xff]  }
 0x3ad   :  { %6458 = vmatprep.subr.bf16.mxu0 %v8725_v4  ;;  %v8806_v4 = vld [vmem:[#allocation10 + $0xf84] ss:$48 sps:$4 sm:$0xff]  }
 0x3af   :  { %6336 = vmatpush1.bf16.msra.mxu1 %v8720_v5  ;;  %v8809_v5 = vld [vmem:[#allocation10 + $0xf8c] ss:$48 sps:$4 sm:$0xff]  }
 0x3b0   :  { %6459 = vmatpush1.bf16.msra.mxu0 %v8723_v8  ;;  %6337 = vmatprep.subr.bf16.mxu1 %v8728_v9  ;;  %v8804_v8 = vld [vmem:[#allocation10 + $0xf80] ss:$48 sps:$4 sm:$0xff]   ;;  %v8807_v9 = vld [vmem:[#allocation10 + $0xf88] ss:$48 sps:$4 sm:$0xff]  }
 0x3b1   :  { %6460 = vmatprep.subr.bf16.mxu0 %v8731_v10  ;;  %v8812_v10 = vld [vmem:[#allocation10 + $0xfe4] ss:$48 sps:$4 sm:$0xff]  }
 0x3b3   :  { %6338 = vmatpush1.bf16.msra.mxu1 %v8726_v11  ;;  %v8815_v11 = vld [vmem:[#allocation10 + $0xfec] ss:$48 sps:$4 sm:$0xff]  }
 0x3b4   :  { %6461 = vmatpush1.bf16.msra.mxu0 %v8729_v12  ;;  %6339 = vmatprep.subr.bf16.mxu1 %v8734_v13  ;;  %v8810_v12 = vld [vmem:[#allocation10 + $0xfe0] ss:$48 sps:$4 sm:$0xff]   ;;  %v8813_v13 = vld [vmem:[#allocation10 + $0xfe8] ss:$48 sps:$4 sm:$0xff]  }
 0x3b5   :  { %6462 = vmatprep.subr.bf16.mxu0 %v8737_v15  ;;  %v8818_v15 = vld [vmem:[#allocation10 + $0x1044] ss:$48 sps:$4 sm:$0xff]  }
 0x3b7   :  { %6340 = vmatpush1.bf16.msra.mxu1 %v8732_v16  ;;  %v8821_v16 = vld [vmem:[#allocation10 + $0x104c] ss:$48 sps:$4 sm:$0xff]  }
 0x3b8   :  { %6463 = vmatpush1.bf16.msra.mxu0 %v8735_v17  ;;  %6341 = vmatprep.subr.bf16.mxu1 %v8740_v18  ;;  %v8816_v17 = vld [vmem:[#allocation10 + $0x1040] ss:$48 sps:$4 sm:$0xff]   ;;  %v8819_v18 = vld [vmem:[#allocation10 + $0x1048] ss:$48 sps:$4 sm:$0xff]  }
 0x3b9   :  { %6464 = vmatprep.subr.bf16.mxu0 %v8743_v19  ;;  %v8824_v19 = vld [vmem:[#allocation10 + $0x10a4] ss:$48 sps:$4 sm:$0xff]  }
 0x3bb   :  { %6342 = vmatpush1.bf16.msra.mxu1 %v8738_v24  ;;  %v8827_v24 = vld [vmem:[#allocation10 + $0x10ac] ss:$48 sps:$4 sm:$0xff]  }
 0x3bc   :  { %6465 = vmatpush1.bf16.msra.mxu0 %v8741_v25  ;;  %6343 = vmatprep.subr.bf16.mxu1 %v8746_v26  ;;  %v8822_v25 = vld [vmem:[#allocation10 + $0x10a0] ss:$48 sps:$4 sm:$0xff]   ;;  %v8825_v26 = vld [vmem:[#allocation10 + $0x10a8] ss:$48 sps:$4 sm:$0xff]  }
 0x3bd   :  { %6466 = vmatprep.subr.bf16.mxu0 %v8749_v27  ;;  %v8830_v27 = vld [vmem:[#allocation10 + $0x1104] ss:$48 sps:$4 sm:$0xff]  }
 0x3bf   :  { %6344 = vmatpush1.bf16.msra.mxu1 %v8744_v28  ;;  %v8833_v28 = vld [vmem:[#allocation10 + $0x110c] ss:$48 sps:$4 sm:$0xff]  }
 0x3c0   :  { %6467 = vmatpush1.bf16.msra.mxu0 %v8747_v29  ;;  %6354 = vmatprep.subr.bf16.mxu1 %v8752_v30  ;;  %v8828_v29 = vld [vmem:[#allocation10 + $0x1100] ss:$48 sps:$4 sm:$0xff]   ;;  %v8831_v30 = vld [vmem:[#allocation10 + $0x1108] ss:$48 sps:$4 sm:$0xff]  }
 0x3c1   :  { %6477 = vmatprep.subr.bf16.mxu0 %v8755_v6  ;;  %v8836_v6 = vld [vmem:[#allocation10 + $0x1164] ss:$48 sps:$4 sm:$0xff]  }
 0x3c2   :  { %6346 = vmatmul.mubr.bf16.vlgmr.msra.gmra.mrb[16].mxu1 %v9238_v35 }
 0x3c3   :  { %6469 = vmatmul.mubr.bf16.vlgmr.msra.gmra.mrb[16].mxu0 %v9238_v35  ;;  %6355 = vmatpush1.bf16.msra.mxu1 %v8750_v0  ;;  %v8773_v35 = vld [vmem:[#allocation10 + $0xd4c] ss:$48 sps:$4 sm:$0xff]  }
 0x3c4   :  { %6386 = vmatprep.mubr.bf16.mxu1 %v9250_v44  ;;  %6478 = vmatpush1.bf16.msra.mxu0 %v8753_v31  ;;  %v8839_v0 = vld [vmem:[#allocation10 + $0x116c] ss:$48 sps:$4 sm:$0xff]   ;;  %v8834_v31 = vld [vmem:[#allocation10 + $0x1160] ss:$48 sps:$4 sm:$0xff]  }
 0x3c5   :  { %6509 = vmatprep.mubr.bf16.mxu0 %v9250_v44  ;;  %6356 = vmatprep.subr.bf16.mxu1 %v8758_v32  ;;  %v8774_v44 = vld [vmem:[#allocation10 + $0xda0] ss:$48 sps:$4 sm:$0xff]   ;;  %v8837_v32 = vld [vmem:[#allocation10 + $0x1168] ss:$48 sps:$4 sm:$0xff]  }
 0x3c6   :  { %6479 = vmatprep.subr.bf16.mxu0 %v8761_v33  ;;  %v8842_v33 = vld [vmem:[#allocation10 + $0x11c4] ss:$48 sps:$4 sm:$0xff]  }
 0x3c7   :  { %6357 = vmatpush1.bf16.msra.mxu1 %v8756_v37  ;;  %v8845_v37 = vld [vmem:[#allocation10 + $0x11cc] ss:$48 sps:$4 sm:$0xff]  }
 0x3c8   :  { %6480 = vmatpush1.bf16.msra.mxu0 %v8759_v47  ;;  %6358 = vmatprep.subr.bf16.mxu1 %v8764_v36  ;;  %v8840_v47 = vld [vmem:[#allocation10 + $0x11c0] ss:$48 sps:$4 sm:$0xff]   ;;  %v8843_v36 = vld [vmem:[#allocation10 + $0x11c8] ss:$48 sps:$4 sm:$0xff]  }
 0x3c9   :  { %6481 = vmatprep.subr.bf16.mxu0 %v8767_v34  ;;  %v2866_v34 = vsub.s32 6, %v9202_v7 }
 0x3cb   :  { %6359 = vmatpush1.bf16.msra.mxu1 %v8762_v38  ;;  %v2870_v38 = vsub.s32 7, %v9202_v7 }
 0x3cc   :  { %6482 = vmatpush1.bf16.msra.mxu0 %v8765_v39  ;;  %6360 = vmatprep.subr.bf16.mxu1 %v8770_v40  ;;  %v2859_v39 = vrot.slane %v9272_v1, %v400_v20  ;;  %v2867_v40 = vrot.slane %v9272_v1, %v2866_v34 }
 0x3cd   :  { %6483 = vmatprep.subr.bf16.mxu0 %v8773_v35  ;;  %v2863_v35 = vrot.slane %v9272_v1, %v404_v23 }
 0x3cf   :  { %6361 = vmatpush1.bf16.msra.mxu1 %v8768_v41  ;;  %v2871_v41 = vrot.slane %v9272_v1, %v2870_v38 }
 0x3d0   :  { %6484 = vmatpush1.bf16.msra.mxu0 %v8771_v42  ;;  %6362 = vmatprep.subr.bf16.mxu1 %v8776_v45 }
 0x3d1   :  { %6485 = vmatprep.subr.bf16.mxu0 %v8779_v46 }
 0x3d3   :  { %6363 = vmatpush1.bf16.msra.mxu1 %v8774_v44 }
 0x3d4   :  { %6486 = vmatpush1.bf16.msra.mxu0 %v8777_v48  ;;  %6364 = vmatprep.subr.bf16.mxu1 %v8782_v49 }
 0x3d5   :  { %6487 = vmatprep.subr.bf16.mxu0 %v8785_v50 }
 0x3d7   :  { %6365 = vmatpush1.bf16.msra.mxu1 %v8780_v52 }
 0x3d8   :  { %6488 = vmatpush1.bf16.msra.mxu0 %v8783_v53  ;;  %6366 = vmatprep.subr.bf16.mxu1 %v8788_v54 }
 0x3d9   :  { %6489 = vmatprep.subr.bf16.mxu0 %v8791_v55 }
 0x3db   :  { %6367 = vmatpush1.bf16.msra.mxu1 %v8786_v56 }
 0x3dc   :  { %6490 = vmatpush1.bf16.msra.mxu0 %v8789_v43  ;;  %6368 = vmatprep.subr.bf16.mxu1 %v8794_v57 }
 0x3dd   :  { %6491 = vmatprep.subr.bf16.mxu0 %v8797_v58 }
 0x3df   :  { %6369 = vmatpush1.bf16.msra.mxu1 %v8792_v59 }
 0x3e0   :  { %6492 = vmatpush1.bf16.msra.mxu0 %v8795_v62  ;;  %6370 = vmatprep.subr.bf16.mxu1 %v8800_v63 }
 0x3e1   :  { %6493 = vmatprep.subr.bf16.mxu0 %v8803_v61 }
 0x3e3   :  { %6371 = vmatpush1.bf16.msra.mxu1 %v8798_v2 }
 0x3e4   :  { %6494 = vmatpush1.bf16.msra.mxu0 %v8801_v3  ;;  %6372 = vmatprep.subr.bf16.mxu1 %v8806_v4 }
 0x3e5   :  { %6495 = vmatprep.subr.bf16.mxu0 %v8809_v5 }
 0x3e7   :  { %6373 = vmatpush1.bf16.msra.mxu1 %v8804_v8 }
 0x3e8   :  { %6496 = vmatpush1.bf16.msra.mxu0 %v8807_v9  ;;  %6374 = vmatprep.subr.bf16.mxu1 %v8812_v10 }
 0x3e9   :  { %6497 = vmatprep.subr.bf16.mxu0 %v8815_v11 }
 0x3eb   :  { %6375 = vmatpush1.bf16.msra.mxu1 %v8810_v12 }
 0x3ec   :  { %6498 = vmatpush1.bf16.msra.mxu0 %v8813_v13  ;;  %6376 = vmatprep.subr.bf16.mxu1 %v8818_v15 }
 0x3ed   :  { %6499 = vmatprep.subr.bf16.mxu0 %v8821_v16 }
 0x3ef   :  { %6377 = vmatpush1.bf16.msra.mxu1 %v8816_v17 }
 0x3f0   :  { %6500 = vmatpush1.bf16.msra.mxu0 %v8819_v18  ;;  %6378 = vmatprep.subr.bf16.mxu1 %v8824_v19 }
 0x3f1   :  { %6501 = vmatprep.subr.bf16.mxu0 %v8827_v24 }
 0x3f3   :  { %6379 = vmatpush1.bf16.msra.mxu1 %v8822_v25 }
 0x3f4   :  { %6502 = vmatpush1.bf16.msra.mxu0 %v8825_v26  ;;  %6380 = vmatprep.subr.bf16.mxu1 %v8830_v27 }
 0x3f5   :  { %6503 = vmatprep.subr.bf16.mxu0 %v8833_v28 }
 0x3f7   :  { %6381 = vmatpush1.bf16.msra.mxu1 %v8828_v29 }
 0x3f8   :  { %6504 = vmatpush1.bf16.msra.mxu0 %v8831_v30  ;;  %6382 = vmatprep.subr.bf16.mxu1 %v8836_v6 }
 0x3f9   :  { %6505 = vmatprep.subr.bf16.mxu0 %v8839_v0 }
 0x3fb   :  { %6383 = vmatpush1.bf16.msra.mxu1 %v8834_v31 }
 0x3fc   :  { %6506 = vmatpush1.bf16.msra.mxu0 %v8837_v32  ;;  %6384 = vmatprep.subr.bf16.mxu1 %v8842_v33 }
 0x3fd   :  { %6507 = vmatprep.subr.bf16.mxu0 %v8845_v37 }
 0x3ff   :  { %6385 = vmatpush1.bf16.msra.mxu1 %v8840_v47 }
 0x400   :  { %6508 = vmatpush1.bf16.msra.mxu0 %v8843_v36 }
 0x402   :  { %6387 = vmatmul.mubr.bf16.vlgmr.msra.gmra.mrb[16].mxu1 %v9252_v60 }
 0x403   :  { %6510 = vmatmul.mubr.bf16.vlgmr.msra.gmra.mrb[16].mxu0 %v9252_v60 }
 0x415   :  { %v6142_v42 = vpop.f32.mrb[12].mxu1 }
 0x416   :  { %v7456_v45 = vadd.f32 %v6142_v42, %v2859_v39  ;;  %v6265_v46 = vpop.f32.mrb[12].mxu0  ;;  %v6144_v60 = vpop.f32.mrb[13].mxu1 }
 0x417   :  { %v7458_v44 = vadd.f32 %v6265_v46, %v2867_v40  ;;  %v7457_v48 = vadd.f32 %v6144_v60, %v2863_v35  ;;  %v6267_v49 = vpop.f32.mrb[13].mxu0  ;;  %v6146_v50 = vpop.f32.mrb[14].mxu1 }
 0x418   :  { %6522 = vst [vmem:[#allocation13 + $0x20] sm:$0xff] %v7456_v45  ;;  %v7459_v52 = vadd.f32 %v6267_v49, %v2871_v41  ;;  %v6269_v53 = vpop.f32.mrb[14].mxu0  ;;  %v6147_v20 = vpop.f32.mrb[15].mxu1 }
 0x419   :  { %6524 = vst [vmem:[#allocation14] sm:$0xff] %v7458_v44  ;;  %6523 = vst [vmem:[#allocation13 + $0x28] sm:$0xff] %v7457_v48  ;;  %v6270_v54 = vpop.f32.mrb[15].mxu0 }
 0x41a   :  { %6525 = vst [vmem:[#allocation14 + $0x8] sm:$0xff] %v7459_v52 }
 0x41b   :  { %8980 = shalt.err (!%p8977_p2)
}
 0x41c   :  { %s8981_s20 = scalar_lea.hbm %s9348_s6, 768 }
 0x41d   :  { %p8982_p3 = scmp.ne.s32.totalorder %s9348_s6, %s8981_s20  ;;  %p8985_p4 = scmp.lt.u32.totalorder %s8981_s20, %s9348_s6 }
 0x41f   :  { %p8987_p5 = pnand %p8985_p4, %p8982_p3 }
 0x421   :  { %8990 = shalt.err (!%p8987_p5)
}
 0x422   :  { %6539 = dma.vmem_to_hbm [thread:$0]  %s6537_s17, 768, %s9348_s6, [#allocation6]   ;;  %v2837_v7 = vld [vmem:[#allocation12 + $0x8] sm:$0xf] }
 0x423   :  { %v2875_v23 = vrot.slane %v2837_v7, %v9207_v51  ;;  %v2883_v1 = vrot.slane %v2837_v7, %v9227_v21  ;;  %v2879_v55 = vrot.slane %v2837_v7, %v9210_v14  ;;  %v2887_v56 = vrot.slane %v2837_v7, %v9230_v22  ;;  %s9055_s26 = smov [#allocation14]   ;;  %s9056_s1 = smov [#allocation16]  }
 0x424   :  { %s6546_s2 = sshll.u32 %s9055_s26, 4  ;;  %s6556_s27 = sshll.u32 %s9056_s1, 4  ;;  %s6547_s2 = int_to_ptr.vmem [resolvable:$true] %s6546_s2  ;;  %s6557_s27 = int_to_ptr.vmem [resolvable:$true] %s6556_s27 }
 0x425   :  { %s8991_s6 = scalar_lea.vmem %s6547_s2, 768  ;;  %p8996_p7 = scmp.lt.s32.totalorder %s6547_s2, %s6547_s2 }
 0x426   :  { %p8992_p6 = scmp.ne.s32.totalorder %s6547_s2, %s8991_s6  ;;  %p8997_p8 = scmp.lt.s32.totalorder %s8991_s6, %s8991_s6 }
 0x428   :  { %p8998_p9 = por %p8997_p8, %p8996_p7 }
 0x42a   :  { %p8999_p10 = pnand %p8998_p9, %p8992_p6 }
 0x4d5   :  { %v6388_v43 = vpop.f32.mrb[16].mxu1 }
 0x4d6   :  { %v7460_v57 = vadd.f32 %v6388_v43, %v2875_v23  ;;  %v6511_v58 = vpop.f32.mrb[16].mxu0  ;;  %v6390_v59 = vpop.f32.mrb[17].mxu1 }
 0x4d7   :  { %v7462_v62 = vadd.f32 %v6511_v58, %v2883_v1  ;;  %v7461_v63 = vadd.f32 %v6390_v59, %v2879_v55  ;;  %v6513_v61 = vpop.f32.mrb[17].mxu0  ;;  %v6392_v2 = vpop.f32.mrb[18].mxu1 }
 0x4d8   :  { %6526 = vst [vmem:[#allocation14 + $0x10] sm:$0xff] %v7460_v57  ;;  %v7463_v51 = vadd.f32 %v6513_v61, %v2887_v56  ;;  %v6515_v3 = vpop.f32.mrb[18].mxu0  ;;  %v6393_v21 = vpop.f32.mrb[19].mxu1 }
 0x4d9   :  { %6528 = vst [vmem:[#allocation14 + $0x20] sm:$0xff] %v7462_v62  ;;  %6527 = vst [vmem:[#allocation14 + $0x18] sm:$0xff] %v7461_v63  ;;  %v6516_v14 = vpop.f32.mrb[19].mxu0 }
 0x4da   :  { %6529 = vst [vmem:[#allocation14 + $0x28] sm:$0xff] %v7463_v51 }
 0x4db   :  { %9002 = shalt.err (!%p8999_p10)
}
 0x4dc   :  { %s9003_s30 = scalar_lea.hbm %s9349_s7, 768 }
 0x4dd   :  { %p9004_p11 = scmp.ne.s32.totalorder %s9349_s7, %s9003_s30  ;;  %p9007_p12 = scmp.lt.u32.totalorder %s9003_s30, %s9349_s7 }
 0x4df   :  { %p9009_p13 = pnand %p9007_p12, %p9004_p11 }
 0x4e1   :  { %9012 = shalt.err (!%p9009_p13)
}
 0x4e2   :  { %6549 = dma.vmem_to_hbm [thread:$0]  %s6547_s2, 768, %s9349_s7, [#allocation15]  }
 0x4e3   :  { %s9013_s16 = scalar_lea.vmem %s6557_s27, 768  ;;  %p9018_p1 = scmp.lt.s32.totalorder %s6557_s27, %s6557_s27 }
 0x4e4   :  { %p9014_p0 = scmp.ne.s32.totalorder %s6557_s27, %s9013_s16  ;;  %p9019_p2 = scmp.lt.s32.totalorder %s9013_s16, %s9013_s16 }
 0x4e6   :  { %p9020_p3 = por %p9019_p2, %p9018_p1 }
 0x4e8   :  { %p9021_p4 = pnand %p9020_p3, %p9014_p0 }
 0x4ea   :  { %9024 = shalt.err (!%p9021_p4)
}
 0x4eb   :  { %s9025_s5 = scalar_lea.hbm %s9350_s8, 768 }
 0x4ec   :  { %p9026_p5 = scmp.ne.s32.totalorder %s9350_s8, %s9025_s5  ;;  %p9029_p6 = scmp.lt.u32.totalorder %s9025_s5, %s9350_s8 }
 0x4ee   :  { %p9031_p7 = pnand %p9029_p6, %p9026_p5 }
 0x4f0   :  { %9034 = shalt.err (!%p9031_p7)
}
 0x4f1   :  { %6559 = dma.vmem_to_hbm [thread:$0]  %s6557_s27, 768, %s9350_s8, [#allocation15]  }
 0x4f2   :  { %9041 = dma.done.wait [#allocation6], 768  }
 0x4f3   :  { %9042 = vsyncadd [#allocation6], 4294966528 }
 0x4f4   :  { %9043 = dma.done.wait [#allocation15], 1536  }
 0x4f5   :  { %9044 = vsyncadd [#allocation15], 4294965760 }
 0x4f6   :  { %6569 = vsyncpa [#allocation5], 1 }
 0x4f7   :  { %6570 = vsyncpa [#allocation8], 1 }
 0x4f8   :  { %6571 = vsyncpa [#allocation11], 1 }
 0x4f9   :  { %6572 = vsyncpa [#allocation6], 1 }
 0x4fa   :  { %6573 = vsyncpa [#allocation15], 1 }

</bundles_post_ra>
